<compile_context>
chip_gen: v7x
topology: tpu7x:2x2x1
jax: 0.10.0
libtpu: 0.0.40
codegen_flags: <defaults>
</compile_context>

<pallas_src>
import functools

import jax
import jax.numpy as jnp
import numpy as np
from jax.experimental import pallas as pl
from jax.experimental.pallas import tpu as pltpu

_NEG_INF = -1e30
_TRANS_B_DIMS = (((1,), (1,)), ((), ()))   # A @ B.T contraction (flash-attn style)


def _head_rows(lin):
    """[H, D] per-head attention vectors -> [H, H*D] block-row layout."""
    h, d = lin.shape
    eye = jnp.eye(h, dtype=lin.dtype)
    return (eye[:, :, None] * lin[None, :, :]).reshape(h, h * d)


# ----------------------------------------------------------------------------
# In-kernel building blocks (operate on jnp values already loaded from refs)
# ----------------------------------------------------------------------------
def _edge_attention(xs, xd, a_src_rows, a_dst_cols, adj, heads, dim, neg_slope):
    """Multi-head GAT-style attention for one edge type. Returns [N_dst, H*D]."""
    # attention coefficients for ALL heads via block-structured matmuls
    a_srcT = jax.lax.dot_general(a_src_rows, xs, _TRANS_B_DIMS,
                                 preferred_element_type=jnp.float32)      # [H, N_src]
    a_dst = jnp.dot(xd, a_dst_cols, preferred_element_type=jnp.float32)   # [N_dst, H]
    head_outs = []
    for h in range(heads):
        s = a_dst[:, h:h + 1] + a_srcT[h:h + 1, :]          # [N_dst, N_src]
        s = jnp.where(s > 0, s, neg_slope * s)              # leaky_relu
        s = jnp.where(adj > 0, s, _NEG_INF)                 # mask non-edges
        m = jnp.max(s, axis=1, keepdims=True)
        p = jnp.where(adj > 0, jnp.exp(s - m), 0.0)
        den = jnp.sum(p, axis=1, keepdims=True)
        den = jnp.where(den > 0, den, 1.0)                  # isolated dst -> zeros
        p = p * pl.reciprocal(den, approx=True)             # EUP divide
        out_h = jnp.dot(p, xs[:, h * dim:(h + 1) * dim],
                        preferred_element_type=jnp.float32)               # [N_dst, D]
        head_outs.append(jnp.maximum(out_h, 0.0))           # F.relu
    return jnp.concatenate(head_outs, axis=1)                             # [N_dst, H*D]


def _hanconv(x_vals, adjs, proj, edges, kw, kb, q, *, node_types, edge_srcdst,
             heads, dim, neg_slope, needed):
    """One HANConv layer. `needed` = destination node types actually required."""
    # per-node-type input projection (only for types present in x_vals)
    xp = {}
    for nt in node_types:
        if nt in x_vals:
            w, b = proj[nt]
            xp[nt] = (jnp.dot(x_vals[nt], w,
                              preferred_element_type=jnp.float32) + b)
    # per-edge-type attention + aggregation, only for needed destinations
    per_dst = {nt: [] for nt in node_types}
    for (src, dst), (asw, adw), adj in zip(edge_srcdst, edges, adjs):
        if dst not in needed:
            continue
        per_dst[dst].append(_edge_attention(xp[src], xp[dst], asw, adw, adj,
                                            heads, dim, neg_slope))
    # semantic ("group") attention across edge types
    out = {}
    for nt in needed:
        outs = per_dst[nt]
        if len(outs) == 1:           # softmax over one edge type == identity
            out[nt] = outs[0]
            continue
        scores = []
        for o in outs:
            k = jnp.tanh(jnp.dot(o, kw, preferred_element_type=jnp.float32) + kb)
            mk = jnp.mean(k, axis=0, keepdims=True)                       # [1, C]
            scores.append(jnp.sum(mk * q, axis=1, keepdims=True))         # [1, 1]
        sc = jnp.concatenate(scores, axis=1)                              # [1, E]
        sc = sc - jnp.max(sc, axis=1, keepdims=True)
        e = jnp.exp(sc)
        attn = e / jnp.sum(e, axis=1, keepdims=True)                      # [1, E]
        acc = attn[:, 0:1] * outs[0]
        for i in range(1, len(outs)):
            acc = acc + attn[:, i:i + 1] * outs[i]
        out[nt] = acc
    return out


# ----------------------------------------------------------------------------
# Fully fused HAN forward kernel: conv1 -> conv2 -> lin -> lin2 -> lin3 -> sigmoid
# ----------------------------------------------------------------------------
def _han_kernel(*refs, node_types, edge_srcdst, heads, dim1, dim2, neg_slope,
                needed1, needed2, final_type):
    it = iter(refs)
    x = {nt: next(it)[...] for nt in node_types}
    adjs = [next(it)[...] for _ in edge_srcdst]

    def read_conv_params():
        proj = {nt: (next(it)[...], next(it)[...]) for nt in node_types}
        edges = [(next(it)[...], next(it)[...]) for _ in edge_srcdst]
        kw = next(it)[...]
        kb = next(it)[...]
        q = next(it)[...]
        return proj, edges, kw, kb, q

    c1 = read_conv_params()
    c2 = read_conv_params()
    w1 = next(it)[...]
    b1 = next(it)[...]
    w2 = next(it)[...]
    b2 = next(it)[...]
    w3 = next(it)[...]
    b3 = next(it)[...]
    o_ref = next(it)

    h = _hanconv(x, adjs, *c1, node_types=node_types, edge_srcdst=edge_srcdst,
                 heads=heads, dim=dim1, neg_slope=neg_slope, needed=needed1)
    h = _hanconv(h, adjs, *c2, node_types=node_types, edge_srcdst=edge_srcdst,
                 heads=heads, dim=dim2, neg_slope=neg_slope, needed=needed2)

    y = jnp.dot(h[final_type], w1, preferred_element_type=jnp.float32) + b1
    y = jnp.dot(y, w2, preferred_element_type=jnp.float32) + b2
    y = jnp.dot(y, w3, preferred_element_type=jnp.float32) + b3
    o_ref[...] = jax.nn.sigmoid(y).astype(o_ref.dtype)


def han_forward(x_dict, adj_dict, params, node_types, edge_types, heads=2,
                final_type="object", neg_slope=0.2):
    node_types = tuple(node_types)
    edge_types = tuple(tuple(et) for et in edge_types)
    edge_srcdst = tuple((et[0], et[2]) for et in edge_types)

    hidden = params["conv1"]["k_w"].shape[0]
    linear_layer = params["conv2"]["k_w"].shape[0]
    dim1, dim2 = hidden // heads, linear_layer // heads

    # conv1 produces every node type that appears as a destination (PyG gives
    # None otherwise); conv2 only needs `final_type` for this forward pass.
    needed1 = tuple(nt for nt in node_types if any(d == nt for _, d in edge_srcdst))
    needed2 = (final_type,)

    inputs, in_specs = [], []

    def add(a):
        a = jnp.asarray(a, jnp.float32)
        if a.ndim == 1:
            a = a.reshape(1, -1)
        inputs.append(a)
        in_specs.append(pl.BlockSpec(a.shape, lambda i: (0, 0)))

    for nt in node_types:
        add(x_dict[nt])
    for et in edge_types:
        add(adj_dict[et])
    for layer in ("conv1", "conv2"):
        p = params[layer]
        for nt in node_types:
            add(p["proj_w"][nt])
            add(p["proj_b"][nt])
        for et in edge_types:
            name = "__".join(et)
            add(_head_rows(p["lin_src"][name]))        # [H, H*D]  (src coeffs, NT matmul)
            add(_head_rows(p["lin_dst"][name]).T)      # [H*D, H]  (dst coeffs, NN matmul)
        add(p["k_w"])
        add(p["k_b"])
        add(p["q"])
    for nm in ("lin_w", "lin_b", "lin2_w", "lin2_b", "lin3_w", "lin3_b"):
        add(params[nm])

    n_out = x_dict[final_type].shape[0]
    out_ch = params["lin3_w"].shape[1]

    kernel = functools.partial(
        _han_kernel, node_types=node_types, edge_srcdst=edge_srcdst, heads=heads,
        dim1=dim1, dim2=dim2, neg_slope=neg_slope, needed1=needed1,
        needed2=needed2, final_type=final_type)

    return pl.pallas_call(
        kernel,
        out_shape=jax.ShapeDtypeStruct((n_out, out_ch), jnp.float32),
        grid=(1,),
        in_specs=in_specs,
        out_specs=pl.BlockSpec((n_out, out_ch), lambda i: (0, 0)),
        compiler_params=pltpu.CompilerParams(dimension_semantics=("arbitrary",)),
    )(*inputs)
    # TODO(synk): HANConv attention dropout omitted (PyG default p=0.0 / eval mode).


# ----------------------------------------------------------------------------
# Pure-JAX reference (same math, no Pallas) for correctness checking
# ----------------------------------------------------------------------------
def _ref_linear(x, w, b, act="none"):
    y = jnp.dot(x, w) + b[None, :]
    if act == "tanh":
        y = jnp.tanh(y)
    elif act == "sigmoid":
        y = jax.nn.sigmoid(y)
    return y


def _ref_edge(x_src, x_dst, lin_src, lin_dst, adj, heads, dim, neg_slope=0.2):
    outs = []
    for h in range(heads):
        lo, hi = h * dim, (h + 1) * dim
        xs, xd = x_src[:, lo:hi], x_dst[:, lo:hi]
        a_s = jnp.sum(xs * lin_src[h][None, :], axis=1)
        a_d = jnp.sum(xd * lin_dst[h][None, :], axis=1)
        s = a_d[:, None] + a_s[None, :]
        s = jnp.where(s > 0, s, neg_slope * s)
        s = jnp.where(adj > 0, s, -1e30)
        m = jnp.max(s, axis=1, keepdims=True)
        p = jnp.where(adj > 0, jnp.exp(s - m), 0.0)
        den = jnp.sum(p, axis=1, keepdims=True)
        den = jnp.where(den > 0, den, 1.0)
        outs.append(jnp.maximum((p / den) @ xs, 0.0))
    return jnp.concatenate(outs, axis=1)


def _ref_conv(x_dict, adj_dict, p, node_types, edge_types, heads):
    out_ch = p["k_w"].shape[0]
    dim = out_ch // heads
    x_node = {nt: _ref_linear(x_dict[nt], p["proj_w"][nt], p["proj_b"][nt])
              for nt in node_types if x_dict.get(nt) is not None}
    out_lists = {nt: [] for nt in node_types}
    for et in edge_types:
        src, _, dst = et
        name = "__".join(et)
        out_lists[dst].append(_ref_edge(x_node[src], x_node[dst],
                                        p["lin_src"][name], p["lin_dst"][name],
                                        adj_dict[et], heads, dim))
    result = {}
    for nt in node_types:
        outs = out_lists[nt]
        if not outs:
            result[nt] = None
            continue
        stacked = jnp.stack(outs, axis=0)
        k_out = jnp.stack([_ref_linear(o, p["k_w"], p["k_b"], act="tanh") for o in outs],
                          axis=0)
        score = jnp.sum(p["q"][None, :] * jnp.mean(k_out, axis=1), axis=-1)
        attn = jax.nn.softmax(score, axis=0)
        result[nt] = jnp.sum(attn[:, None, None] * stacked, axis=0)
    return result


def ref_forward(x_dict, adj_dict, params, node_types, edge_types, heads=2):
    x = _ref_conv(x_dict, adj_dict, params["conv1"], node_types, edge_types, heads)
    x = _ref_conv(x, adj_dict, params["conv2"], node_types, edge_types, heads)
    h = _ref_linear(x["object"], params["lin_w"], params["lin_b"])
    h = _ref_linear(h, params["lin2_w"], params["lin2_b"])
    h = _ref_linear(h, params["lin3_w"], params["lin3_b"], act="sigmoid")
    return h


# ----------------------------------------------------------------------------
# Deterministic parameter init (synthetic; shapes follow HANConv/nn.Linear)
# ----------------------------------------------------------------------------
def init_hanconv(key, in_ch, out_ch, heads, node_types, edge_types):
    dim = out_ch // heads
    p = {"proj_w": {}, "proj_b": {}, "lin_src": {}, "lin_dst": {}}
    for nt in node_types:
        key, k1, k2 = jax.random.split(key, 3)
        p["proj_w"][nt] = jax.random.normal(k1, (in_ch, out_ch), jnp.float32) / np.sqrt(in_ch)
        p["proj_b"][nt] = jax.random.normal(k2, (out_ch,), jnp.float32) * 0.01
    for et in edge_types:
        name = "__".join(et)
        key, k1, k2 = jax.random.split(key, 3)
        p["lin_src"][name] = jax.random.normal(k1, (heads, dim), jnp.float32) * 0.1
        p["lin_dst"][name] = jax.random.normal(k2, (heads, dim), jnp.float32) * 0.1
    key, k1, k2, k3 = jax.random.split(key, 4)
    p["k_w"] = jax.random.normal(k1, (out_ch, out_ch), jnp.float32) / np.sqrt(out_ch)
    p["k_b"] = jax.random.normal(k2, (out_ch,), jnp.float32) * 0.01
    p["q"] = jax.random.normal(k3, (out_ch,), jnp.float32) * 0.1
    return p, key


# ----------------------------------------------------------------------------
if __name__ == "__main__":
    # HAN(in_channels=16, hidden_channels=32, linear_layer=32,
    #     linear_hidden_layer=16, linear_hidden_layer2=8, out_channels=4, metadata)
    IN_CH, HIDDEN, LINEAR_LAYER = 16, 32, 32
    LH1, LH2, OUT_CH = 16, 8, 4
    HEADS = 2

    node_types = ["object", "image"]
    edge_types = [("object", "to", "object"),
                  ("image", "to", "object"),
                  ("object", "to", "image")]
    N = {"object": 12, "image": 8}

    key = jax.random.PRNGKey(0)
    key, kx1, kx2 = jax.random.split(key, 3)
    x_dict = {
        "object": jax.random.normal(kx1, (N["object"], IN_CH), jnp.float32),
        "image": jax.random.normal(kx2, (N["image"], IN_CH), jnp.float32),
    }
    adj_dict = {}
    for et in edge_types:
        src, _, dst = et
        key, ka = jax.random.split(key)
        adj_dict[et] = jax.random.bernoulli(ka, 0.4, (N[dst], N[src])).astype(jnp.float32)

    params = {}
    params["conv1"], key = init_hanconv(key, IN_CH, HIDDEN, HEADS, node_types, edge_types)
    params["conv2"], key = init_hanconv(key, HIDDEN, LINEAR_LAYER, HEADS, node_types, edge_types)
    key, k1, k2, k3, k4, k5, k6 = jax.random.split(key, 7)
    params["lin_w"] = jax.random.normal(k1, (LINEAR_LAYER, LH1), jnp.float32) / np.sqrt(LINEAR_LAYER)
    params["lin_b"] = jax.random.normal(k2, (LH1,), jnp.float32) * 0.01
    params["lin2_w"] = jax.random.normal(k3, (LH1, LH2), jnp.float32) / np.sqrt(LH1)
    params["lin2_b"] = jax.random.normal(k4, (LH2,), jnp.float32) * 0.01
    params["lin3_w"] = jax.random.normal(k5, (LH2, OUT_CH), jnp.float32) / np.sqrt(LH2)
    params["lin3_b"] = jax.random.normal(k6, (OUT_CH,), jnp.float32) * 0.01

    out = han_forward(x_dict, adj_dict, params, node_types, edge_types, HEADS)
    out = jax.block_until_ready(out)
    assert out.shape == (N["object"], OUT_CH)

    ref = ref_forward(x_dict, adj_dict, params, node_types, edge_types, HEADS)
    np.testing.assert_allclose(np.asarray(out), np.asarray(ref), rtol=5e-3, atol=5e-3)

    print("KERNEL_OK")
</pallas_src>

<mosaic_0001>
module attributes {stable_mosaic.version = 11 : i64} {
  func.func @_han_kernel(%arg0: i32, %arg1: memref<12x16xf32, #tpu.memory_space<vmem>>, %arg2: memref<8x16xf32, #tpu.memory_space<vmem>>, %arg3: memref<12x12xf32, #tpu.memory_space<vmem>>, %arg4: memref<12x8xf32, #tpu.memory_space<vmem>>, %arg5: memref<8x12xf32, #tpu.memory_space<vmem>>, %arg6: memref<16x32xf32, #tpu.memory_space<vmem>>, %arg7: memref<1x32xf32, #tpu.memory_space<vmem>>, %arg8: memref<16x32xf32, #tpu.memory_space<vmem>>, %arg9: memref<1x32xf32, #tpu.memory_space<vmem>>, %arg10: memref<2x32xf32, #tpu.memory_space<vmem>>, %arg11: memref<32x2xf32, #tpu.memory_space<vmem>>, %arg12: memref<2x32xf32, #tpu.memory_space<vmem>>, %arg13: memref<32x2xf32, #tpu.memory_space<vmem>>, %arg14: memref<2x32xf32, #tpu.memory_space<vmem>>, %arg15: memref<32x2xf32, #tpu.memory_space<vmem>>, %arg16: memref<32x32xf32, #tpu.memory_space<vmem>>, %arg17: memref<1x32xf32, #tpu.memory_space<vmem>>, %arg18: memref<1x32xf32, #tpu.memory_space<vmem>>, %arg19: memref<32x32xf32, #tpu.memory_space<vmem>>, %arg20: memref<1x32xf32, #tpu.memory_space<vmem>>, %arg21: memref<32x32xf32, #tpu.memory_space<vmem>>, %arg22: memref<1x32xf32, #tpu.memory_space<vmem>>, %arg23: memref<2x32xf32, #tpu.memory_space<vmem>>, %arg24: memref<32x2xf32, #tpu.memory_space<vmem>>, %arg25: memref<2x32xf32, #tpu.memory_space<vmem>>, %arg26: memref<32x2xf32, #tpu.memory_space<vmem>>, %arg27: memref<2x32xf32, #tpu.memory_space<vmem>>, %arg28: memref<32x2xf32, #tpu.memory_space<vmem>>, %arg29: memref<32x32xf32, #tpu.memory_space<vmem>>, %arg30: memref<1x32xf32, #tpu.memory_space<vmem>>, %arg31: memref<1x32xf32, #tpu.memory_space<vmem>>, %arg32: memref<32x16xf32, #tpu.memory_space<vmem>>, %arg33: memref<1x16xf32, #tpu.memory_space<vmem>>, %arg34: memref<16x8xf32, #tpu.memory_space<vmem>>, %arg35: memref<1x8xf32, #tpu.memory_space<vmem>>, %arg36: memref<8x4xf32, #tpu.memory_space<vmem>>, %arg37: memref<1x4xf32, #tpu.memory_space<vmem>>, %arg38: memref<12x4xf32, #tpu.memory_space<vmem>>) attributes {dimension_semantics = [#tpu.dimension_semantics<arbitrary>], iteration_bounds = array<i64: 1>, scalar_prefetch = 0 : i64, scratch_operands = 0 : i64, tpu.core_type = #tpu.core_type<tc>, window_params = [{pipeline_mode = #tpu.pipeline_mode<synchronous>, transform_indices = @transform_0, window_bounds = array<i64: 12, 16>}, {pipeline_mode = #tpu.pipeline_mode<synchronous>, transform_indices = @transform_1, window_bounds = array<i64: 8, 16>}, {pipeline_mode = #tpu.pipeline_mode<synchronous>, transform_indices = @transform_2, window_bounds = array<i64: 12, 12>}, {pipeline_mode = #tpu.pipeline_mode<synchronous>, transform_indices = @transform_3, window_bounds = array<i64: 12, 8>}, {pipeline_mode = #tpu.pipeline_mode<synchronous>, transform_indices = @transform_4, window_bounds = array<i64: 8, 12>}, {pipeline_mode = #tpu.pipeline_mode<synchronous>, transform_indices = @transform_5, window_bounds = array<i64: 16, 32>}, {pipeline_mode = #tpu.pipeline_mode<synchronous>, transform_indices = @transform_6, window_bounds = array<i64: 1, 32>}, {pipeline_mode = #tpu.pipeline_mode<synchronous>, transform_indices = @transform_7, window_bounds = array<i64: 16, 32>}, {pipeline_mode = #tpu.pipeline_mode<synchronous>, transform_indices = @transform_8, window_bounds = array<i64: 1, 32>}, {pipeline_mode = #tpu.pipeline_mode<synchronous>, transform_indices = @transform_9, window_bounds = array<i64: 2, 32>}, {pipeline_mode = #tpu.pipeline_mode<synchronous>, transform_indices = @transform_10, window_bounds = array<i64: 32, 2>}, {pipeline_mode = #tpu.pipeline_mode<synchronous>, transform_indices = @transform_11, window_bounds = array<i64: 2, 32>}, {pipeline_mode = #tpu.pipeline_mode<synchronous>, transform_indices = @transform_12, window_bounds = array<i64: 32, 2>}, {pipeline_mode = #tpu.pipeline_mode<synchronous>, transform_indices = @transform_13, window_bounds = array<i64: 2, 32>}, {pipeline_mode = #tpu.pipeline_mode<synchronous>, transform_indices = @transform_14, window_bounds = array<i64: 32, 2>}, {pipeline_mode = #tpu.pipeline_mode<synchronous>, transform_indices = @transform_15, window_bounds = array<i64: 32, 32>}, {pipeline_mode = #tpu.pipeline_mode<synchronous>, transform_indices = @transform_16, window_bounds = array<i64: 1, 32>}, {pipeline_mode = #tpu.pipeline_mode<synchronous>, transform_indices = @transform_17, window_bounds = array<i64: 1, 32>}, {pipeline_mode = #tpu.pipeline_mode<synchronous>, transform_indices = @transform_18, window_bounds = array<i64: 32, 32>}, {pipeline_mode = #tpu.pipeline_mode<synchronous>, transform_indices = @transform_19, window_bounds = array<i64: 1, 32>}, {pipeline_mode = #tpu.pipeline_mode<synchronous>, transform_indices = @transform_20, window_bounds = array<i64: 32, 32>}, {pipeline_mode = #tpu.pipeline_mode<synchronous>, transform_indices = @transform_21, window_bounds = array<i64: 1, 32>}, {pipeline_mode = #tpu.pipeline_mode<synchronous>, transform_indices = @transform_22, window_bounds = array<i64: 2, 32>}, {pipeline_mode = #tpu.pipeline_mode<synchronous>, transform_indices = @transform_23, window_bounds = array<i64: 32, 2>}, {pipeline_mode = #tpu.pipeline_mode<synchronous>, transform_indices = @transform_24, window_bounds = array<i64: 2, 32>}, {pipeline_mode = #tpu.pipeline_mode<synchronous>, transform_indices = @transform_25, window_bounds = array<i64: 32, 2>}, {pipeline_mode = #tpu.pipeline_mode<synchronous>, transform_indices = @transform_26, window_bounds = array<i64: 2, 32>}, {pipeline_mode = #tpu.pipeline_mode<synchronous>, transform_indices = @transform_27, window_bounds = array<i64: 32, 2>}, {pipeline_mode = #tpu.pipeline_mode<synchronous>, transform_indices = @transform_28, window_bounds = array<i64: 32, 32>}, {pipeline_mode = #tpu.pipeline_mode<synchronous>, transform_indices = @transform_29, window_bounds = array<i64: 1, 32>}, {pipeline_mode = #tpu.pipeline_mode<synchronous>, transform_indices = @transform_30, window_bounds = array<i64: 1, 32>}, {pipeline_mode = #tpu.pipeline_mode<synchronous>, transform_indices = @transform_31, window_bounds = array<i64: 32, 16>}, {pipeline_mode = #tpu.pipeline_mode<synchronous>, transform_indices = @transform_32, window_bounds = array<i64: 1, 16>}, {pipeline_mode = #tpu.pipeline_mode<synchronous>, transform_indices = @transform_33, window_bounds = array<i64: 16, 8>}, {pipeline_mode = #tpu.pipeline_mode<synchronous>, transform_indices = @transform_34, window_bounds = array<i64: 1, 8>}, {pipeline_mode = #tpu.pipeline_mode<synchronous>, transform_indices = @transform_35, window_bounds = array<i64: 8, 4>}, {pipeline_mode = #tpu.pipeline_mode<synchronous>, transform_indices = @transform_36, window_bounds = array<i64: 1, 4>}, {pipeline_mode = #tpu.pipeline_mode<synchronous>, transform_indices = @transform_37, window_bounds = array<i64: 12, 4>}]} {
    %c0 = arith.constant 0 : index
    %c0_0 = arith.constant 0 : index
    %0 = vector.load %arg1[%c0, %c0_0] : memref<12x16xf32, #tpu.memory_space<vmem>>, vector<12x16xf32>
    %c0_1 = arith.constant 0 : index
    %c0_2 = arith.constant 0 : index
    %1 = vector.load %arg2[%c0_1, %c0_2] : memref<8x16xf32, #tpu.memory_space<vmem>>, vector<8x16xf32>
    %c0_3 = arith.constant 0 : index
    %c0_4 = arith.constant 0 : index
    %2 = vector.load %arg3[%c0_3, %c0_4] : memref<12x12xf32, #tpu.memory_space<vmem>>, vector<12x12xf32>
    %c0_5 = arith.constant 0 : index
    %c0_6 = arith.constant 0 : index
    %3 = vector.load %arg4[%c0_5, %c0_6] : memref<12x8xf32, #tpu.memory_space<vmem>>, vector<12x8xf32>
    %c0_7 = arith.constant 0 : index
    %c0_8 = arith.constant 0 : index
    %4 = vector.load %arg5[%c0_7, %c0_8] : memref<8x12xf32, #tpu.memory_space<vmem>>, vector<8x12xf32>
    %c0_9 = arith.constant 0 : index
    %c0_10 = arith.constant 0 : index
    %5 = vector.load %arg6[%c0_9, %c0_10] : memref<16x32xf32, #tpu.memory_space<vmem>>, vector<16x32xf32>
    %c0_11 = arith.constant 0 : index
    %c0_12 = arith.constant 0 : index
    %6 = vector.load %arg7[%c0_11, %c0_12] : memref<1x32xf32, #tpu.memory_space<vmem>>, vector<1x32xf32>
    %c0_13 = arith.constant 0 : index
    %c0_14 = arith.constant 0 : index
    %7 = vector.load %arg8[%c0_13, %c0_14] : memref<16x32xf32, #tpu.memory_space<vmem>>, vector<16x32xf32>
    %c0_15 = arith.constant 0 : index
    %c0_16 = arith.constant 0 : index
    %8 = vector.load %arg9[%c0_15, %c0_16] : memref<1x32xf32, #tpu.memory_space<vmem>>, vector<1x32xf32>
    %c0_17 = arith.constant 0 : index
    %c0_18 = arith.constant 0 : index
    %9 = vector.load %arg10[%c0_17, %c0_18] : memref<2x32xf32, #tpu.memory_space<vmem>>, vector<2x32xf32>
    %c0_19 = arith.constant 0 : index
    %c0_20 = arith.constant 0 : index
    %10 = vector.load %arg11[%c0_19, %c0_20] : memref<32x2xf32, #tpu.memory_space<vmem>>, vector<32x2xf32>
    %c0_21 = arith.constant 0 : index
    %c0_22 = arith.constant 0 : index
    %11 = vector.load %arg12[%c0_21, %c0_22] : memref<2x32xf32, #tpu.memory_space<vmem>>, vector<2x32xf32>
    %c0_23 = arith.constant 0 : index
    %c0_24 = arith.constant 0 : index
    %12 = vector.load %arg13[%c0_23, %c0_24] : memref<32x2xf32, #tpu.memory_space<vmem>>, vector<32x2xf32>
    %c0_25 = arith.constant 0 : index
    %c0_26 = arith.constant 0 : index
    %13 = vector.load %arg14[%c0_25, %c0_26] : memref<2x32xf32, #tpu.memory_space<vmem>>, vector<2x32xf32>
    %c0_27 = arith.constant 0 : index
    %c0_28 = arith.constant 0 : index
    %14 = vector.load %arg15[%c0_27, %c0_28] : memref<32x2xf32, #tpu.memory_space<vmem>>, vector<32x2xf32>
    %c0_29 = arith.constant 0 : index
    %c0_30 = arith.constant 0 : index
    %15 = vector.load %arg16[%c0_29, %c0_30] : memref<32x32xf32, #tpu.memory_space<vmem>>, vector<32x32xf32>
    %c0_31 = arith.constant 0 : index
    %c0_32 = arith.constant 0 : index
    %16 = vector.load %arg17[%c0_31, %c0_32] : memref<1x32xf32, #tpu.memory_space<vmem>>, vector<1x32xf32>
    %c0_33 = arith.constant 0 : index
    %c0_34 = arith.constant 0 : index
    %17 = vector.load %arg18[%c0_33, %c0_34] : memref<1x32xf32, #tpu.memory_space<vmem>>, vector<1x32xf32>
    %c0_35 = arith.constant 0 : index
    %c0_36 = arith.constant 0 : index
    %18 = vector.load %arg19[%c0_35, %c0_36] : memref<32x32xf32, #tpu.memory_space<vmem>>, vector<32x32xf32>
    %c0_37 = arith.constant 0 : index
    %c0_38 = arith.constant 0 : index
    %19 = vector.load %arg20[%c0_37, %c0_38] : memref<1x32xf32, #tpu.memory_space<vmem>>, vector<1x32xf32>
    %c0_39 = arith.constant 0 : index
    %c0_40 = arith.constant 0 : index
    %20 = vector.load %arg21[%c0_39, %c0_40] : memref<32x32xf32, #tpu.memory_space<vmem>>, vector<32x32xf32>
    %c0_41 = arith.constant 0 : index
    %c0_42 = arith.constant 0 : index
    %21 = vector.load %arg22[%c0_41, %c0_42] : memref<1x32xf32, #tpu.memory_space<vmem>>, vector<1x32xf32>
    %c0_43 = arith.constant 0 : index
    %c0_44 = arith.constant 0 : index
    %22 = vector.load %arg23[%c0_43, %c0_44] : memref<2x32xf32, #tpu.memory_space<vmem>>, vector<2x32xf32>
    %c0_45 = arith.constant 0 : index
    %c0_46 = arith.constant 0 : index
    %23 = vector.load %arg24[%c0_45, %c0_46] : memref<32x2xf32, #tpu.memory_space<vmem>>, vector<32x2xf32>
    %c0_47 = arith.constant 0 : index
    %c0_48 = arith.constant 0 : index
    %24 = vector.load %arg25[%c0_47, %c0_48] : memref<2x32xf32, #tpu.memory_space<vmem>>, vector<2x32xf32>
    %c0_49 = arith.constant 0 : index
    %c0_50 = arith.constant 0 : index
    %25 = vector.load %arg26[%c0_49, %c0_50] : memref<32x2xf32, #tpu.memory_space<vmem>>, vector<32x2xf32>
    %c0_51 = arith.constant 0 : index
    %c0_52 = arith.constant 0 : index
    %26 = vector.load %arg29[%c0_51, %c0_52] : memref<32x32xf32, #tpu.memory_space<vmem>>, vector<32x32xf32>
    %c0_53 = arith.constant 0 : index
    %c0_54 = arith.constant 0 : index
    %27 = vector.load %arg30[%c0_53, %c0_54] : memref<1x32xf32, #tpu.memory_space<vmem>>, vector<1x32xf32>
    %c0_55 = arith.constant 0 : index
    %c0_56 = arith.constant 0 : index
    %28 = vector.load %arg31[%c0_55, %c0_56] : memref<1x32xf32, #tpu.memory_space<vmem>>, vector<1x32xf32>
    %c0_57 = arith.constant 0 : index
    %c0_58 = arith.constant 0 : index
    %29 = vector.load %arg32[%c0_57, %c0_58] : memref<32x16xf32, #tpu.memory_space<vmem>>, vector<32x16xf32>
    %c0_59 = arith.constant 0 : index
    %c0_60 = arith.constant 0 : index
    %30 = vector.load %arg33[%c0_59, %c0_60] : memref<1x16xf32, #tpu.memory_space<vmem>>, vector<1x16xf32>
    %c0_61 = arith.constant 0 : index
    %c0_62 = arith.constant 0 : index
    %31 = vector.load %arg34[%c0_61, %c0_62] : memref<16x8xf32, #tpu.memory_space<vmem>>, vector<16x8xf32>
    %c0_63 = arith.constant 0 : index
    %c0_64 = arith.constant 0 : index
    %32 = vector.load %arg35[%c0_63, %c0_64] : memref<1x8xf32, #tpu.memory_space<vmem>>, vector<1x8xf32>
    %c0_65 = arith.constant 0 : index
    %c0_66 = arith.constant 0 : index
    %33 = vector.load %arg36[%c0_65, %c0_66] : memref<8x4xf32, #tpu.memory_space<vmem>>, vector<8x4xf32>
    %c0_67 = arith.constant 0 : index
    %c0_68 = arith.constant 0 : index
    %34 = vector.load %arg37[%c0_67, %c0_68] : memref<1x4xf32, #tpu.memory_space<vmem>>, vector<1x4xf32>
    %cst = arith.constant dense<0.000000e+00> : vector<12x32xf32>
    %35 = tpu.matmul %0, %5, %cst {dimension_numbers = #tpu.dot_dimension_numbers<[1], [0], [0], [1], [0, 0, 1, 1], [], []>} : vector<12x16xf32>, vector<16x32xf32>, vector<12x32xf32> -> vector<12x32xf32>
    %36 = vector.broadcast %6 : vector<1x32xf32> to vector<12x32xf32>
    %37 = arith.addf %35, %36 : vector<12x32xf32>
    %cst_69 = arith.constant dense<0.000000e+00> : vector<8x32xf32>
    %38 = tpu.matmul %1, %7, %cst_69 {dimension_numbers = #tpu.dot_dimension_numbers<[1], [0], [0], [1], [0, 0, 1, 1], [], []>} : vector<8x16xf32>, vector<16x32xf32>, vector<8x32xf32> -> vector<8x32xf32>
    %39 = vector.broadcast %8 : vector<1x32xf32> to vector<8x32xf32>
    %40 = arith.addf %38, %39 : vector<8x32xf32>
    %cst_70 = arith.constant dense<0.000000e+00> : vector<2x12xf32>
    %41 = tpu.matmul %9, %37, %cst_70 {dimension_numbers = #tpu.dot_dimension_numbers<[1], [1], [0], [0], [0, 0, 1, 0], [], []>} : vector<2x32xf32>, vector<12x32xf32>, vector<2x12xf32> -> vector<2x12xf32>
    %cst_71 = arith.constant dense<0.000000e+00> : vector<12x2xf32>
    %42 = tpu.matmul %37, %10, %cst_71 {dimension_numbers = #tpu.dot_dimension_numbers<[1], [0], [0], [1], [0, 0, 1, 1], [], []>} : vector<12x32xf32>, vector<32x2xf32>, vector<12x2xf32> -> vector<12x2xf32>
    %43 = vector.extract_strided_slice %42 {offsets = [0, 0], sizes = [12, 1], strides = [1, 1]} : vector<12x2xf32> to vector<12x1xf32>
    %44 = vector.extract_strided_slice %41 {offsets = [0, 0], sizes = [1, 12], strides = [1, 1]} : vector<2x12xf32> to vector<1x12xf32>
    %45 = vector.broadcast %43 : vector<12x1xf32> to vector<12x12xf32>
    %46 = vector.broadcast %44 : vector<1x12xf32> to vector<12x12xf32>
    %47 = arith.addf %45, %46 : vector<12x12xf32>
    %cst_72 = arith.constant 0.000000e+00 : f32
    %48 = vector.broadcast %cst_72 : f32 to vector<12x12xf32>
    %49 = arith.cmpf ogt, %47, %48 : vector<12x12xf32>
    %cst_73 = arith.constant 2.000000e-01 : f32
    %50 = vector.broadcast %cst_73 : f32 to vector<12x12xf32>
    %51 = arith.mulf %50, %47 : vector<12x12xf32>
    %52 = arith.select %49, %47, %51 : vector<12x12xi1>, vector<12x12xf32>
    %cst_74 = arith.constant 0.000000e+00 : f32
    %53 = vector.broadcast %cst_74 : f32 to vector<12x12xf32>
    %54 = arith.cmpf ogt, %2, %53 : vector<12x12xf32>
    %cst_75 = arith.constant -1.000000e+30 : f32
    %55 = vector.broadcast %cst_75 : f32 to vector<12x12xf32>
    %56 = arith.select %54, %52, %55 : vector<12x12xi1>, vector<12x12xf32>
    %cst_76 = arith.constant dense<0xFF800000> : vector<12xf32>
    %57 = vector.multi_reduction <maximumf>, %56, %cst_76 [1] : vector<12x12xf32> to vector<12xf32>
    %58 = vector.shape_cast %57 : vector<12xf32> to vector<12x1xf32>
    %cst_77 = arith.constant 0.000000e+00 : f32
    %59 = vector.broadcast %cst_77 : f32 to vector<12x12xf32>
    %60 = arith.cmpf ogt, %2, %59 : vector<12x12xf32>
    %61 = vector.broadcast %58 : vector<12x1xf32> to vector<12x12xf32>
    %62 = arith.subf %56, %61 : vector<12x12xf32>
    %63 = math.exp %62 : vector<12x12xf32>
    %cst_78 = arith.constant 0.000000e+00 : f32
    %64 = vector.broadcast %cst_78 : f32 to vector<12x12xf32>
    %65 = arith.select %60, %63, %64 : vector<12x12xi1>, vector<12x12xf32>
    %cst_79 = arith.constant dense<0.000000e+00> : vector<12xf32>
    %66 = vector.multi_reduction <add>, %65, %cst_79 [1] : vector<12x12xf32> to vector<12xf32>
    %67 = vector.shape_cast %66 : vector<12xf32> to vector<12x1xf32>
    %cst_80 = arith.constant 0.000000e+00 : f32
    %68 = vector.broadcast %cst_80 : f32 to vector<12x1xf32>
    %69 = arith.cmpf ogt, %67, %68 : vector<12x1xf32>
    %cst_81 = arith.constant 1.000000e+00 : f32
    %70 = vector.broadcast %cst_81 : f32 to vector<12x1xf32>
    %71 = arith.select %69, %67, %70 : vector<12x1xi1>, vector<12x1xf32>
    %72 = tpu.reciprocal %71 {approx = true} : vector<12x1xf32> -> vector<12x1xf32>
    %73 = vector.broadcast %72 : vector<12x1xf32> to vector<12x12xf32>
    %74 = arith.mulf %65, %73 : vector<12x12xf32>
    %75 = vector.extract_strided_slice %37 {offsets = [0, 0], sizes = [12, 16], strides = [1, 1]} : vector<12x32xf32> to vector<12x16xf32>
    %cst_82 = arith.constant dense<0.000000e+00> : vector<12x16xf32>
    %76 = tpu.matmul %74, %75, %cst_82 {dimension_numbers = #tpu.dot_dimension_numbers<[1], [0], [0], [1], [0, 0, 1, 1], [], []>} : vector<12x12xf32>, vector<12x16xf32>, vector<12x16xf32> -> vector<12x16xf32>
    %cst_83 = arith.constant 0.000000e+00 : f32
    %77 = vector.broadcast %cst_83 : f32 to vector<12x16xf32>
    %78 = arith.maximumf %76, %77 : vector<12x16xf32>
    %79 = vector.extract_strided_slice %42 {offsets = [0, 1], sizes = [12, 1], strides = [1, 1]} : vector<12x2xf32> to vector<12x1xf32>
    %80 = vector.extract_strided_slice %41 {offsets = [1, 0], sizes = [1, 12], strides = [1, 1]} : vector<2x12xf32> to vector<1x12xf32>
    %81 = vector.broadcast %79 : vector<12x1xf32> to vector<12x12xf32>
    %82 = vector.broadcast %80 : vector<1x12xf32> to vector<12x12xf32>
    %83 = arith.addf %81, %82 : vector<12x12xf32>
    %cst_84 = arith.constant 0.000000e+00 : f32
    %84 = vector.broadcast %cst_84 : f32 to vector<12x12xf32>
    %85 = arith.cmpf ogt, %83, %84 : vector<12x12xf32>
    %cst_85 = arith.constant 2.000000e-01 : f32
    %86 = vector.broadcast %cst_85 : f32 to vector<12x12xf32>
    %87 = arith.mulf %86, %83 : vector<12x12xf32>
    %88 = arith.select %85, %83, %87 : vector<12x12xi1>, vector<12x12xf32>
    %cst_86 = arith.constant 0.000000e+00 : f32
    %89 = vector.broadcast %cst_86 : f32 to vector<12x12xf32>
    %90 = arith.cmpf ogt, %2, %89 : vector<12x12xf32>
    %cst_87 = arith.constant -1.000000e+30 : f32
    %91 = vector.broadcast %cst_87 : f32 to vector<12x12xf32>
    %92 = arith.select %90, %88, %91 : vector<12x12xi1>, vector<12x12xf32>
    %cst_88 = arith.constant dense<0xFF800000> : vector<12xf32>
    %93 = vector.multi_reduction <maximumf>, %92, %cst_88 [1] : vector<12x12xf32> to vector<12xf32>
    %94 = vector.shape_cast %93 : vector<12xf32> to vector<12x1xf32>
    %cst_89 = arith.constant 0.000000e+00 : f32
    %95 = vector.broadcast %cst_89 : f32 to vector<12x12xf32>
    %96 = arith.cmpf ogt, %2, %95 : vector<12x12xf32>
    %97 = vector.broadcast %94 : vector<12x1xf32> to vector<12x12xf32>
    %98 = arith.subf %92, %97 : vector<12x12xf32>
    %99 = math.exp %98 : vector<12x12xf32>
    %cst_90 = arith.constant 0.000000e+00 : f32
    %100 = vector.broadcast %cst_90 : f32 to vector<12x12xf32>
    %101 = arith.select %96, %99, %100 : vector<12x12xi1>, vector<12x12xf32>
    %cst_91 = arith.constant dense<0.000000e+00> : vector<12xf32>
    %102 = vector.multi_reduction <add>, %101, %cst_91 [1] : vector<12x12xf32> to vector<12xf32>
    %103 = vector.shape_cast %102 : vector<12xf32> to vector<12x1xf32>
    %cst_92 = arith.constant 0.000000e+00 : f32
    %104 = vector.broadcast %cst_92 : f32 to vector<12x1xf32>
    %105 = arith.cmpf ogt, %103, %104 : vector<12x1xf32>
    %cst_93 = arith.constant 1.000000e+00 : f32
    %106 = vector.broadcast %cst_93 : f32 to vector<12x1xf32>
    %107 = arith.select %105, %103, %106 : vector<12x1xi1>, vector<12x1xf32>
    %108 = tpu.reciprocal %107 {approx = true} : vector<12x1xf32> -> vector<12x1xf32>
    %109 = vector.broadcast %108 : vector<12x1xf32> to vector<12x12xf32>
    %110 = arith.mulf %101, %109 : vector<12x12xf32>
    %111 = vector.extract_strided_slice %37 {offsets = [0, 16], sizes = [12, 16], strides = [1, 1]} : vector<12x32xf32> to vector<12x16xf32>
    %cst_94 = arith.constant dense<0.000000e+00> : vector<12x16xf32>
    %112 = tpu.matmul %110, %111, %cst_94 {dimension_numbers = #tpu.dot_dimension_numbers<[1], [0], [0], [1], [0, 0, 1, 1], [], []>} : vector<12x12xf32>, vector<12x16xf32>, vector<12x16xf32> -> vector<12x16xf32>
    %cst_95 = arith.constant 0.000000e+00 : f32
    %113 = vector.broadcast %cst_95 : f32 to vector<12x16xf32>
    %114 = arith.maximumf %112, %113 : vector<12x16xf32>
    %115 = tpu.concatenate %78, %114 in 1 : vector<12x16xf32>, vector<12x16xf32> -> vector<12x32xf32>
    %cst_96 = arith.constant dense<0.000000e+00> : vector<2x8xf32>
    %116 = tpu.matmul %11, %40, %cst_96 {dimension_numbers = #tpu.dot_dimension_numbers<[1], [1], [0], [0], [0, 0, 1, 0], [], []>} : vector<2x32xf32>, vector<8x32xf32>, vector<2x8xf32> -> vector<2x8xf32>
    %cst_97 = arith.constant dense<0.000000e+00> : vector<12x2xf32>
    %117 = tpu.matmul %37, %12, %cst_97 {dimension_numbers = #tpu.dot_dimension_numbers<[1], [0], [0], [1], [0, 0, 1, 1], [], []>} : vector<12x32xf32>, vector<32x2xf32>, vector<12x2xf32> -> vector<12x2xf32>
    %118 = vector.extract_strided_slice %117 {offsets = [0, 0], sizes = [12, 1], strides = [1, 1]} : vector<12x2xf32> to vector<12x1xf32>
    %119 = vector.extract_strided_slice %116 {offsets = [0, 0], sizes = [1, 8], strides = [1, 1]} : vector<2x8xf32> to vector<1x8xf32>
    %120 = vector.broadcast %118 : vector<12x1xf32> to vector<12x8xf32>
    %121 = vector.broadcast %119 : vector<1x8xf32> to vector<12x8xf32>
    %122 = arith.addf %120, %121 : vector<12x8xf32>
    %cst_98 = arith.constant 0.000000e+00 : f32
    %123 = vector.broadcast %cst_98 : f32 to vector<12x8xf32>
    %124 = arith.cmpf ogt, %122, %123 : vector<12x8xf32>
    %cst_99 = arith.constant 2.000000e-01 : f32
    %125 = vector.broadcast %cst_99 : f32 to vector<12x8xf32>
    %126 = arith.mulf %125, %122 : vector<12x8xf32>
    %127 = arith.select %124, %122, %126 : vector<12x8xi1>, vector<12x8xf32>
    %cst_100 = arith.constant 0.000000e+00 : f32
    %128 = vector.broadcast %cst_100 : f32 to vector<12x8xf32>
    %129 = arith.cmpf ogt, %3, %128 : vector<12x8xf32>
    %cst_101 = arith.constant -1.000000e+30 : f32
    %130 = vector.broadcast %cst_101 : f32 to vector<12x8xf32>
    %131 = arith.select %129, %127, %130 : vector<12x8xi1>, vector<12x8xf32>
    %cst_102 = arith.constant dense<0xFF800000> : vector<12xf32>
    %132 = vector.multi_reduction <maximumf>, %131, %cst_102 [1] : vector<12x8xf32> to vector<12xf32>
    %133 = vector.shape_cast %132 : vector<12xf32> to vector<12x1xf32>
    %cst_103 = arith.constant 0.000000e+00 : f32
    %134 = vector.broadcast %cst_103 : f32 to vector<12x8xf32>
    %135 = arith.cmpf ogt, %3, %134 : vector<12x8xf32>
    %136 = vector.broadcast %133 : vector<12x1xf32> to vector<12x8xf32>
    %137 = arith.subf %131, %136 : vector<12x8xf32>
    %138 = math.exp %137 : vector<12x8xf32>
    %cst_104 = arith.constant 0.000000e+00 : f32
    %139 = vector.broadcast %cst_104 : f32 to vector<12x8xf32>
    %140 = arith.select %135, %138, %139 : vector<12x8xi1>, vector<12x8xf32>
    %cst_105 = arith.constant dense<0.000000e+00> : vector<12xf32>
    %141 = vector.multi_reduction <add>, %140, %cst_105 [1] : vector<12x8xf32> to vector<12xf32>
    %142 = vector.shape_cast %141 : vector<12xf32> to vector<12x1xf32>
    %cst_106 = arith.constant 0.000000e+00 : f32
    %143 = vector.broadcast %cst_106 : f32 to vector<12x1xf32>
    %144 = arith.cmpf ogt, %142, %143 : vector<12x1xf32>
    %cst_107 = arith.constant 1.000000e+00 : f32
    %145 = vector.broadcast %cst_107 : f32 to vector<12x1xf32>
    %146 = arith.select %144, %142, %145 : vector<12x1xi1>, vector<12x1xf32>
    %147 = tpu.reciprocal %146 {approx = true} : vector<12x1xf32> -> vector<12x1xf32>
    %148 = vector.broadcast %147 : vector<12x1xf32> to vector<12x8xf32>
    %149 = arith.mulf %140, %148 : vector<12x8xf32>
    %150 = vector.extract_strided_slice %40 {offsets = [0, 0], sizes = [8, 16], strides = [1, 1]} : vector<8x32xf32> to vector<8x16xf32>
    %cst_108 = arith.constant dense<0.000000e+00> : vector<12x16xf32>
    %151 = tpu.matmul %149, %150, %cst_108 {dimension_numbers = #tpu.dot_dimension_numbers<[1], [0], [0], [1], [0, 0, 1, 1], [], []>} : vector<12x8xf32>, vector<8x16xf32>, vector<12x16xf32> -> vector<12x16xf32>
    %cst_109 = arith.constant 0.000000e+00 : f32
    %152 = vector.broadcast %cst_109 : f32 to vector<12x16xf32>
    %153 = arith.maximumf %151, %152 : vector<12x16xf32>
    %154 = vector.extract_strided_slice %117 {offsets = [0, 1], sizes = [12, 1], strides = [1, 1]} : vector<12x2xf32> to vector<12x1xf32>
    %155 = vector.extract_strided_slice %116 {offsets = [1, 0], sizes = [1, 8], strides = [1, 1]} : vector<2x8xf32> to vector<1x8xf32>
    %156 = vector.broadcast %154 : vector<12x1xf32> to vector<12x8xf32>
    %157 = vector.broadcast %155 : vector<1x8xf32> to vector<12x8xf32>
    %158 = arith.addf %156, %157 : vector<12x8xf32>
    %cst_110 = arith.constant 0.000000e+00 : f32
    %159 = vector.broadcast %cst_110 : f32 to vector<12x8xf32>
    %160 = arith.cmpf ogt, %158, %159 : vector<12x8xf32>
    %cst_111 = arith.constant 2.000000e-01 : f32
    %161 = vector.broadcast %cst_111 : f32 to vector<12x8xf32>
    %162 = arith.mulf %161, %158 : vector<12x8xf32>
    %163 = arith.select %160, %158, %162 : vector<12x8xi1>, vector<12x8xf32>
    %cst_112 = arith.constant 0.000000e+00 : f32
    %164 = vector.broadcast %cst_112 : f32 to vector<12x8xf32>
    %165 = arith.cmpf ogt, %3, %164 : vector<12x8xf32>
    %cst_113 = arith.constant -1.000000e+30 : f32
    %166 = vector.broadcast %cst_113 : f32 to vector<12x8xf32>
    %167 = arith.select %165, %163, %166 : vector<12x8xi1>, vector<12x8xf32>
    %cst_114 = arith.constant dense<0xFF800000> : vector<12xf32>
    %168 = vector.multi_reduction <maximumf>, %167, %cst_114 [1] : vector<12x8xf32> to vector<12xf32>
    %169 = vector.shape_cast %168 : vector<12xf32> to vector<12x1xf32>
    %cst_115 = arith.constant 0.000000e+00 : f32
    %170 = vector.broadcast %cst_115 : f32 to vector<12x8xf32>
    %171 = arith.cmpf ogt, %3, %170 : vector<12x8xf32>
    %172 = vector.broadcast %169 : vector<12x1xf32> to vector<12x8xf32>
    %173 = arith.subf %167, %172 : vector<12x8xf32>
    %174 = math.exp %173 : vector<12x8xf32>
    %cst_116 = arith.constant 0.000000e+00 : f32
    %175 = vector.broadcast %cst_116 : f32 to vector<12x8xf32>
    %176 = arith.select %171, %174, %175 : vector<12x8xi1>, vector<12x8xf32>
    %cst_117 = arith.constant dense<0.000000e+00> : vector<12xf32>
    %177 = vector.multi_reduction <add>, %176, %cst_117 [1] : vector<12x8xf32> to vector<12xf32>
    %178 = vector.shape_cast %177 : vector<12xf32> to vector<12x1xf32>
    %cst_118 = arith.constant 0.000000e+00 : f32
    %179 = vector.broadcast %cst_118 : f32 to vector<12x1xf32>
    %180 = arith.cmpf ogt, %178, %179 : vector<12x1xf32>
    %cst_119 = arith.constant 1.000000e+00 : f32
    %181 = vector.broadcast %cst_119 : f32 to vector<12x1xf32>
    %182 = arith.select %180, %178, %181 : vector<12x1xi1>, vector<12x1xf32>
    %183 = tpu.reciprocal %182 {approx = true} : vector<12x1xf32> -> vector<12x1xf32>
    %184 = vector.broadcast %183 : vector<12x1xf32> to vector<12x8xf32>
    %185 = arith.mulf %176, %184 : vector<12x8xf32>
    %186 = vector.extract_strided_slice %40 {offsets = [0, 16], sizes = [8, 16], strides = [1, 1]} : vector<8x32xf32> to vector<8x16xf32>
    %cst_120 = arith.constant dense<0.000000e+00> : vector<12x16xf32>
    %187 = tpu.matmul %185, %186, %cst_120 {dimension_numbers = #tpu.dot_dimension_numbers<[1], [0], [0], [1], [0, 0, 1, 1], [], []>} : vector<12x8xf32>, vector<8x16xf32>, vector<12x16xf32> -> vector<12x16xf32>
    %cst_121 = arith.constant 0.000000e+00 : f32
    %188 = vector.broadcast %cst_121 : f32 to vector<12x16xf32>
    %189 = arith.maximumf %187, %188 : vector<12x16xf32>
    %190 = tpu.concatenate %153, %189 in 1 : vector<12x16xf32>, vector<12x16xf32> -> vector<12x32xf32>
    %cst_122 = arith.constant dense<0.000000e+00> : vector<2x12xf32>
    %191 = tpu.matmul %13, %37, %cst_122 {dimension_numbers = #tpu.dot_dimension_numbers<[1], [1], [0], [0], [0, 0, 1, 0], [], []>} : vector<2x32xf32>, vector<12x32xf32>, vector<2x12xf32> -> vector<2x12xf32>
    %cst_123 = arith.constant dense<0.000000e+00> : vector<8x2xf32>
    %192 = tpu.matmul %40, %14, %cst_123 {dimension_numbers = #tpu.dot_dimension_numbers<[1], [0], [0], [1], [0, 0, 1, 1], [], []>} : vector<8x32xf32>, vector<32x2xf32>, vector<8x2xf32> -> vector<8x2xf32>
    %193 = vector.extract_strided_slice %192 {offsets = [0, 0], sizes = [8, 1], strides = [1, 1]} : vector<8x2xf32> to vector<8x1xf32>
    %194 = vector.extract_strided_slice %191 {offsets = [0, 0], sizes = [1, 12], strides = [1, 1]} : vector<2x12xf32> to vector<1x12xf32>
    %195 = vector.broadcast %193 : vector<8x1xf32> to vector<8x12xf32>
    %196 = vector.broadcast %194 : vector<1x12xf32> to vector<8x12xf32>
    %197 = arith.addf %195, %196 : vector<8x12xf32>
    %cst_124 = arith.constant 0.000000e+00 : f32
    %198 = vector.broadcast %cst_124 : f32 to vector<8x12xf32>
    %199 = arith.cmpf ogt, %197, %198 : vector<8x12xf32>
    %cst_125 = arith.constant 2.000000e-01 : f32
    %200 = vector.broadcast %cst_125 : f32 to vector<8x12xf32>
    %201 = arith.mulf %200, %197 : vector<8x12xf32>
    %202 = arith.select %199, %197, %201 : vector<8x12xi1>, vector<8x12xf32>
    %cst_126 = arith.constant 0.000000e+00 : f32
    %203 = vector.broadcast %cst_126 : f32 to vector<8x12xf32>
    %204 = arith.cmpf ogt, %4, %203 : vector<8x12xf32>
    %cst_127 = arith.constant -1.000000e+30 : f32
    %205 = vector.broadcast %cst_127 : f32 to vector<8x12xf32>
    %206 = arith.select %204, %202, %205 : vector<8x12xi1>, vector<8x12xf32>
    %cst_128 = arith.constant dense<0xFF800000> : vector<8xf32>
    %207 = vector.multi_reduction <maximumf>, %206, %cst_128 [1] : vector<8x12xf32> to vector<8xf32>
    %208 = vector.shape_cast %207 : vector<8xf32> to vector<8x1xf32>
    %cst_129 = arith.constant 0.000000e+00 : f32
    %209 = vector.broadcast %cst_129 : f32 to vector<8x12xf32>
    %210 = arith.cmpf ogt, %4, %209 : vector<8x12xf32>
    %211 = vector.broadcast %208 : vector<8x1xf32> to vector<8x12xf32>
    %212 = arith.subf %206, %211 : vector<8x12xf32>
    %213 = math.exp %212 : vector<8x12xf32>
    %cst_130 = arith.constant 0.000000e+00 : f32
    %214 = vector.broadcast %cst_130 : f32 to vector<8x12xf32>
    %215 = arith.select %210, %213, %214 : vector<8x12xi1>, vector<8x12xf32>
    %cst_131 = arith.constant dense<0.000000e+00> : vector<8xf32>
    %216 = vector.multi_reduction <add>, %215, %cst_131 [1] : vector<8x12xf32> to vector<8xf32>
    %217 = vector.shape_cast %216 : vector<8xf32> to vector<8x1xf32>
    %cst_132 = arith.constant 0.000000e+00 : f32
    %218 = vector.broadcast %cst_132 : f32 to vector<8x1xf32>
    %219 = arith.cmpf ogt, %217, %218 : vector<8x1xf32>
    %cst_133 = arith.constant 1.000000e+00 : f32
    %220 = vector.broadcast %cst_133 : f32 to vector<8x1xf32>
    %221 = arith.select %219, %217, %220 : vector<8x1xi1>, vector<8x1xf32>
    %222 = tpu.reciprocal %221 {approx = true} : vector<8x1xf32> -> vector<8x1xf32>
    %223 = vector.broadcast %222 : vector<8x1xf32> to vector<8x12xf32>
    %224 = arith.mulf %215, %223 : vector<8x12xf32>
    %225 = vector.extract_strided_slice %37 {offsets = [0, 0], sizes = [12, 16], strides = [1, 1]} : vector<12x32xf32> to vector<12x16xf32>
    %cst_134 = arith.constant dense<0.000000e+00> : vector<8x16xf32>
    %226 = tpu.matmul %224, %225, %cst_134 {dimension_numbers = #tpu.dot_dimension_numbers<[1], [0], [0], [1], [0, 0, 1, 1], [], []>} : vector<8x12xf32>, vector<12x16xf32>, vector<8x16xf32> -> vector<8x16xf32>
    %cst_135 = arith.constant 0.000000e+00 : f32
    %227 = vector.broadcast %cst_135 : f32 to vector<8x16xf32>
    %228 = arith.maximumf %226, %227 : vector<8x16xf32>
    %229 = vector.extract_strided_slice %192 {offsets = [0, 1], sizes = [8, 1], strides = [1, 1]} : vector<8x2xf32> to vector<8x1xf32>
    %230 = vector.extract_strided_slice %191 {offsets = [1, 0], sizes = [1, 12], strides = [1, 1]} : vector<2x12xf32> to vector<1x12xf32>
    %231 = vector.broadcast %229 : vector<8x1xf32> to vector<8x12xf32>
    %232 = vector.broadcast %230 : vector<1x12xf32> to vector<8x12xf32>
    %233 = arith.addf %231, %232 : vector<8x12xf32>
    %cst_136 = arith.constant 0.000000e+00 : f32
    %234 = vector.broadcast %cst_136 : f32 to vector<8x12xf32>
    %235 = arith.cmpf ogt, %233, %234 : vector<8x12xf32>
    %cst_137 = arith.constant 2.000000e-01 : f32
    %236 = vector.broadcast %cst_137 : f32 to vector<8x12xf32>
    %237 = arith.mulf %236, %233 : vector<8x12xf32>
    %238 = arith.select %235, %233, %237 : vector<8x12xi1>, vector<8x12xf32>
    %cst_138 = arith.constant 0.000000e+00 : f32
    %239 = vector.broadcast %cst_138 : f32 to vector<8x12xf32>
    %240 = arith.cmpf ogt, %4, %239 : vector<8x12xf32>
    %cst_139 = arith.constant -1.000000e+30 : f32
    %241 = vector.broadcast %cst_139 : f32 to vector<8x12xf32>
    %242 = arith.select %240, %238, %241 : vector<8x12xi1>, vector<8x12xf32>
    %cst_140 = arith.constant dense<0xFF800000> : vector<8xf32>
    %243 = vector.multi_reduction <maximumf>, %242, %cst_140 [1] : vector<8x12xf32> to vector<8xf32>
    %244 = vector.shape_cast %243 : vector<8xf32> to vector<8x1xf32>
    %cst_141 = arith.constant 0.000000e+00 : f32
    %245 = vector.broadcast %cst_141 : f32 to vector<8x12xf32>
    %246 = arith.cmpf ogt, %4, %245 : vector<8x12xf32>
    %247 = vector.broadcast %244 : vector<8x1xf32> to vector<8x12xf32>
    %248 = arith.subf %242, %247 : vector<8x12xf32>
    %249 = math.exp %248 : vector<8x12xf32>
    %cst_142 = arith.constant 0.000000e+00 : f32
    %250 = vector.broadcast %cst_142 : f32 to vector<8x12xf32>
    %251 = arith.select %246, %249, %250 : vector<8x12xi1>, vector<8x12xf32>
    %cst_143 = arith.constant dense<0.000000e+00> : vector<8xf32>
    %252 = vector.multi_reduction <add>, %251, %cst_143 [1] : vector<8x12xf32> to vector<8xf32>
    %253 = vector.shape_cast %252 : vector<8xf32> to vector<8x1xf32>
    %cst_144 = arith.constant 0.000000e+00 : f32
    %254 = vector.broadcast %cst_144 : f32 to vector<8x1xf32>
    %255 = arith.cmpf ogt, %253, %254 : vector<8x1xf32>
    %cst_145 = arith.constant 1.000000e+00 : f32
    %256 = vector.broadcast %cst_145 : f32 to vector<8x1xf32>
    %257 = arith.select %255, %253, %256 : vector<8x1xi1>, vector<8x1xf32>
    %258 = tpu.reciprocal %257 {approx = true} : vector<8x1xf32> -> vector<8x1xf32>
    %259 = vector.broadcast %258 : vector<8x1xf32> to vector<8x12xf32>
    %260 = arith.mulf %251, %259 : vector<8x12xf32>
    %261 = vector.extract_strided_slice %37 {offsets = [0, 16], sizes = [12, 16], strides = [1, 1]} : vector<12x32xf32> to vector<12x16xf32>
    %cst_146 = arith.constant dense<0.000000e+00> : vector<8x16xf32>
    %262 = tpu.matmul %260, %261, %cst_146 {dimension_numbers = #tpu.dot_dimension_numbers<[1], [0], [0], [1], [0, 0, 1, 1], [], []>} : vector<8x12xf32>, vector<12x16xf32>, vector<8x16xf32> -> vector<8x16xf32>
    %cst_147 = arith.constant 0.000000e+00 : f32
    %263 = vector.broadcast %cst_147 : f32 to vector<8x16xf32>
    %264 = arith.maximumf %262, %263 : vector<8x16xf32>
    %265 = tpu.concatenate %228, %264 in 1 : vector<8x16xf32>, vector<8x16xf32> -> vector<8x32xf32>
    %cst_148 = arith.constant dense<0.000000e+00> : vector<12x32xf32>
    %266 = tpu.matmul %115, %15, %cst_148 {dimension_numbers = #tpu.dot_dimension_numbers<[1], [0], [0], [1], [0, 0, 1, 1], [], []>} : vector<12x32xf32>, vector<32x32xf32>, vector<12x32xf32> -> vector<12x32xf32>
    %267 = vector.broadcast %16 : vector<1x32xf32> to vector<12x32xf32>
    %268 = arith.addf %266, %267 : vector<12x32xf32>
    %269 = math.tanh %268 : vector<12x32xf32>
    %cst_149 = arith.constant dense<0.000000e+00> : vector<32xf32>
    %270 = vector.multi_reduction <add>, %269, %cst_149 [0] : vector<12x32xf32> to vector<32xf32>
    %271 = vector.shape_cast %270 : vector<32xf32> to vector<1x32xf32>
    %cst_150 = arith.constant 1.200000e+01 : f32
    %272 = vector.broadcast %cst_150 : f32 to vector<1x32xf32>
    %273 = arith.divf %271, %272 : vector<1x32xf32>
    %274 = arith.mulf %273, %17 : vector<1x32xf32>
    %cst_151 = arith.constant dense<0.000000e+00> : vector<1xf32>
    %275 = vector.multi_reduction <add>, %274, %cst_151 [1] : vector<1x32xf32> to vector<1xf32>
    %276 = vector.shape_cast %275 : vector<1xf32> to vector<1x1xf32>
    %cst_152 = arith.constant dense<0.000000e+00> : vector<12x32xf32>
    %277 = tpu.matmul %190, %15, %cst_152 {dimension_numbers = #tpu.dot_dimension_numbers<[1], [0], [0], [1], [0, 0, 1, 1], [], []>} : vector<12x32xf32>, vector<32x32xf32>, vector<12x32xf32> -> vector<12x32xf32>
    %278 = vector.broadcast %16 : vector<1x32xf32> to vector<12x32xf32>
    %279 = arith.addf %277, %278 : vector<12x32xf32>
    %280 = math.tanh %279 : vector<12x32xf32>
    %cst_153 = arith.constant dense<0.000000e+00> : vector<32xf32>
    %281 = vector.multi_reduction <add>, %280, %cst_153 [0] : vector<12x32xf32> to vector<32xf32>
    %282 = vector.shape_cast %281 : vector<32xf32> to vector<1x32xf32>
    %cst_154 = arith.constant 1.200000e+01 : f32
    %283 = vector.broadcast %cst_154 : f32 to vector<1x32xf32>
    %284 = arith.divf %282, %283 : vector<1x32xf32>
    %285 = arith.mulf %284, %17 : vector<1x32xf32>
    %cst_155 = arith.constant dense<0.000000e+00> : vector<1xf32>
    %286 = vector.multi_reduction <add>, %285, %cst_155 [1] : vector<1x32xf32> to vector<1xf32>
    %287 = vector.shape_cast %286 : vector<1xf32> to vector<1x1xf32>
    %288 = tpu.concatenate %276, %287 in 1 : vector<1x1xf32>, vector<1x1xf32> -> vector<1x2xf32>
    %cst_156 = arith.constant dense<0xFF800000> : vector<1xf32>
    %289 = vector.multi_reduction <maximumf>, %288, %cst_156 [1] : vector<1x2xf32> to vector<1xf32>
    %290 = vector.shape_cast %289 : vector<1xf32> to vector<1x1xf32>
    %291 = vector.broadcast %290 : vector<1x1xf32> to vector<1x2xf32>
    %292 = arith.subf %288, %291 : vector<1x2xf32>
    %293 = math.exp %292 : vector<1x2xf32>
    %cst_157 = arith.constant dense<0.000000e+00> : vector<1xf32>
    %294 = vector.multi_reduction <add>, %293, %cst_157 [1] : vector<1x2xf32> to vector<1xf32>
    %295 = vector.shape_cast %294 : vector<1xf32> to vector<1x1xf32>
    %296 = vector.broadcast %295 : vector<1x1xf32> to vector<1x2xf32>
    %297 = arith.divf %293, %296 : vector<1x2xf32>
    %298 = vector.extract_strided_slice %297 {offsets = [0, 0], sizes = [1, 1], strides = [1, 1]} : vector<1x2xf32> to vector<1x1xf32>
    %299 = vector.broadcast %298 : vector<1x1xf32> to vector<12x32xf32>
    %300 = arith.mulf %299, %115 : vector<12x32xf32>
    %301 = vector.extract_strided_slice %297 {offsets = [0, 1], sizes = [1, 1], strides = [1, 1]} : vector<1x2xf32> to vector<1x1xf32>
    %302 = vector.broadcast %301 : vector<1x1xf32> to vector<12x32xf32>
    %303 = arith.mulf %302, %190 : vector<12x32xf32>
    %304 = arith.addf %300, %303 : vector<12x32xf32>
    %cst_158 = arith.constant dense<0.000000e+00> : vector<12x32xf32>
    %305 = tpu.matmul %304, %18, %cst_158 {dimension_numbers = #tpu.dot_dimension_numbers<[1], [0], [0], [1], [0, 0, 1, 1], [], []>} : vector<12x32xf32>, vector<32x32xf32>, vector<12x32xf32> -> vector<12x32xf32>
    %306 = vector.broadcast %19 : vector<1x32xf32> to vector<12x32xf32>
    %307 = arith.addf %305, %306 : vector<12x32xf32>
    %cst_159 = arith.constant dense<0.000000e+00> : vector<8x32xf32>
    %308 = tpu.matmul %265, %20, %cst_159 {dimension_numbers = #tpu.dot_dimension_numbers<[1], [0], [0], [1], [0, 0, 1, 1], [], []>} : vector<8x32xf32>, vector<32x32xf32>, vector<8x32xf32> -> vector<8x32xf32>
    %309 = vector.broadcast %21 : vector<1x32xf32> to vector<8x32xf32>
    %310 = arith.addf %308, %309 : vector<8x32xf32>
    %cst_160 = arith.constant dense<0.000000e+00> : vector<2x12xf32>
    %311 = tpu.matmul %22, %307, %cst_160 {dimension_numbers = #tpu.dot_dimension_numbers<[1], [1], [0], [0], [0, 0, 1, 0], [], []>} : vector<2x32xf32>, vector<12x32xf32>, vector<2x12xf32> -> vector<2x12xf32>
    %cst_161 = arith.constant dense<0.000000e+00> : vector<12x2xf32>
    %312 = tpu.matmul %307, %23, %cst_161 {dimension_numbers = #tpu.dot_dimension_numbers<[1], [0], [0], [1], [0, 0, 1, 1], [], []>} : vector<12x32xf32>, vector<32x2xf32>, vector<12x2xf32> -> vector<12x2xf32>
    %313 = vector.extract_strided_slice %312 {offsets = [0, 0], sizes = [12, 1], strides = [1, 1]} : vector<12x2xf32> to vector<12x1xf32>
    %314 = vector.extract_strided_slice %311 {offsets = [0, 0], sizes = [1, 12], strides = [1, 1]} : vector<2x12xf32> to vector<1x12xf32>
    %315 = vector.broadcast %313 : vector<12x1xf32> to vector<12x12xf32>
    %316 = vector.broadcast %314 : vector<1x12xf32> to vector<12x12xf32>
    %317 = arith.addf %315, %316 : vector<12x12xf32>
    %cst_162 = arith.constant 0.000000e+00 : f32
    %318 = vector.broadcast %cst_162 : f32 to vector<12x12xf32>
    %319 = arith.cmpf ogt, %317, %318 : vector<12x12xf32>
    %cst_163 = arith.constant 2.000000e-01 : f32
    %320 = vector.broadcast %cst_163 : f32 to vector<12x12xf32>
    %321 = arith.mulf %320, %317 : vector<12x12xf32>
    %322 = arith.select %319, %317, %321 : vector<12x12xi1>, vector<12x12xf32>
    %cst_164 = arith.constant 0.000000e+00 : f32
    %323 = vector.broadcast %cst_164 : f32 to vector<12x12xf32>
    %324 = arith.cmpf ogt, %2, %323 : vector<12x12xf32>
    %cst_165 = arith.constant -1.000000e+30 : f32
    %325 = vector.broadcast %cst_165 : f32 to vector<12x12xf32>
    %326 = arith.select %324, %322, %325 : vector<12x12xi1>, vector<12x12xf32>
    %cst_166 = arith.constant dense<0xFF800000> : vector<12xf32>
    %327 = vector.multi_reduction <maximumf>, %326, %cst_166 [1] : vector<12x12xf32> to vector<12xf32>
    %328 = vector.shape_cast %327 : vector<12xf32> to vector<12x1xf32>
    %cst_167 = arith.constant 0.000000e+00 : f32
    %329 = vector.broadcast %cst_167 : f32 to vector<12x12xf32>
    %330 = arith.cmpf ogt, %2, %329 : vector<12x12xf32>
    %331 = vector.broadcast %328 : vector<12x1xf32> to vector<12x12xf32>
    %332 = arith.subf %326, %331 : vector<12x12xf32>
    %333 = math.exp %332 : vector<12x12xf32>
    %cst_168 = arith.constant 0.000000e+00 : f32
    %334 = vector.broadcast %cst_168 : f32 to vector<12x12xf32>
    %335 = arith.select %330, %333, %334 : vector<12x12xi1>, vector<12x12xf32>
    %cst_169 = arith.constant dense<0.000000e+00> : vector<12xf32>
    %336 = vector.multi_reduction <add>, %335, %cst_169 [1] : vector<12x12xf32> to vector<12xf32>
    %337 = vector.shape_cast %336 : vector<12xf32> to vector<12x1xf32>
    %cst_170 = arith.constant 0.000000e+00 : f32
    %338 = vector.broadcast %cst_170 : f32 to vector<12x1xf32>
    %339 = arith.cmpf ogt, %337, %338 : vector<12x1xf32>
    %cst_171 = arith.constant 1.000000e+00 : f32
    %340 = vector.broadcast %cst_171 : f32 to vector<12x1xf32>
    %341 = arith.select %339, %337, %340 : vector<12x1xi1>, vector<12x1xf32>
    %342 = tpu.reciprocal %341 {approx = true} : vector<12x1xf32> -> vector<12x1xf32>
    %343 = vector.broadcast %342 : vector<12x1xf32> to vector<12x12xf32>
    %344 = arith.mulf %335, %343 : vector<12x12xf32>
    %345 = vector.extract_strided_slice %307 {offsets = [0, 0], sizes = [12, 16], strides = [1, 1]} : vector<12x32xf32> to vector<12x16xf32>
    %cst_172 = arith.constant dense<0.000000e+00> : vector<12x16xf32>
    %346 = tpu.matmul %344, %345, %cst_172 {dimension_numbers = #tpu.dot_dimension_numbers<[1], [0], [0], [1], [0, 0, 1, 1], [], []>} : vector<12x12xf32>, vector<12x16xf32>, vector<12x16xf32> -> vector<12x16xf32>
    %cst_173 = arith.constant 0.000000e+00 : f32
    %347 = vector.broadcast %cst_173 : f32 to vector<12x16xf32>
    %348 = arith.maximumf %346, %347 : vector<12x16xf32>
    %349 = vector.extract_strided_slice %312 {offsets = [0, 1], sizes = [12, 1], strides = [1, 1]} : vector<12x2xf32> to vector<12x1xf32>
    %350 = vector.extract_strided_slice %311 {offsets = [1, 0], sizes = [1, 12], strides = [1, 1]} : vector<2x12xf32> to vector<1x12xf32>
    %351 = vector.broadcast %349 : vector<12x1xf32> to vector<12x12xf32>
    %352 = vector.broadcast %350 : vector<1x12xf32> to vector<12x12xf32>
    %353 = arith.addf %351, %352 : vector<12x12xf32>
    %cst_174 = arith.constant 0.000000e+00 : f32
    %354 = vector.broadcast %cst_174 : f32 to vector<12x12xf32>
    %355 = arith.cmpf ogt, %353, %354 : vector<12x12xf32>
    %cst_175 = arith.constant 2.000000e-01 : f32
    %356 = vector.broadcast %cst_175 : f32 to vector<12x12xf32>
    %357 = arith.mulf %356, %353 : vector<12x12xf32>
    %358 = arith.select %355, %353, %357 : vector<12x12xi1>, vector<12x12xf32>
    %cst_176 = arith.constant 0.000000e+00 : f32
    %359 = vector.broadcast %cst_176 : f32 to vector<12x12xf32>
    %360 = arith.cmpf ogt, %2, %359 : vector<12x12xf32>
    %cst_177 = arith.constant -1.000000e+30 : f32
    %361 = vector.broadcast %cst_177 : f32 to vector<12x12xf32>
    %362 = arith.select %360, %358, %361 : vector<12x12xi1>, vector<12x12xf32>
    %cst_178 = arith.constant dense<0xFF800000> : vector<12xf32>
    %363 = vector.multi_reduction <maximumf>, %362, %cst_178 [1] : vector<12x12xf32> to vector<12xf32>
    %364 = vector.shape_cast %363 : vector<12xf32> to vector<12x1xf32>
    %cst_179 = arith.constant 0.000000e+00 : f32
    %365 = vector.broadcast %cst_179 : f32 to vector<12x12xf32>
    %366 = arith.cmpf ogt, %2, %365 : vector<12x12xf32>
    %367 = vector.broadcast %364 : vector<12x1xf32> to vector<12x12xf32>
    %368 = arith.subf %362, %367 : vector<12x12xf32>
    %369 = math.exp %368 : vector<12x12xf32>
    %cst_180 = arith.constant 0.000000e+00 : f32
    %370 = vector.broadcast %cst_180 : f32 to vector<12x12xf32>
    %371 = arith.select %366, %369, %370 : vector<12x12xi1>, vector<12x12xf32>
    %cst_181 = arith.constant dense<0.000000e+00> : vector<12xf32>
    %372 = vector.multi_reduction <add>, %371, %cst_181 [1] : vector<12x12xf32> to vector<12xf32>
    %373 = vector.shape_cast %372 : vector<12xf32> to vector<12x1xf32>
    %cst_182 = arith.constant 0.000000e+00 : f32
    %374 = vector.broadcast %cst_182 : f32 to vector<12x1xf32>
    %375 = arith.cmpf ogt, %373, %374 : vector<12x1xf32>
    %cst_183 = arith.constant 1.000000e+00 : f32
    %376 = vector.broadcast %cst_183 : f32 to vector<12x1xf32>
    %377 = arith.select %375, %373, %376 : vector<12x1xi1>, vector<12x1xf32>
    %378 = tpu.reciprocal %377 {approx = true} : vector<12x1xf32> -> vector<12x1xf32>
    %379 = vector.broadcast %378 : vector<12x1xf32> to vector<12x12xf32>
    %380 = arith.mulf %371, %379 : vector<12x12xf32>
    %381 = vector.extract_strided_slice %307 {offsets = [0, 16], sizes = [12, 16], strides = [1, 1]} : vector<12x32xf32> to vector<12x16xf32>
    %cst_184 = arith.constant dense<0.000000e+00> : vector<12x16xf32>
    %382 = tpu.matmul %380, %381, %cst_184 {dimension_numbers = #tpu.dot_dimension_numbers<[1], [0], [0], [1], [0, 0, 1, 1], [], []>} : vector<12x12xf32>, vector<12x16xf32>, vector<12x16xf32> -> vector<12x16xf32>
    %cst_185 = arith.constant 0.000000e+00 : f32
    %383 = vector.broadcast %cst_185 : f32 to vector<12x16xf32>
    %384 = arith.maximumf %382, %383 : vector<12x16xf32>
    %385 = tpu.concatenate %348, %384 in 1 : vector<12x16xf32>, vector<12x16xf32> -> vector<12x32xf32>
    %cst_186 = arith.constant dense<0.000000e+00> : vector<2x8xf32>
    %386 = tpu.matmul %24, %310, %cst_186 {dimension_numbers = #tpu.dot_dimension_numbers<[1], [1], [0], [0], [0, 0, 1, 0], [], []>} : vector<2x32xf32>, vector<8x32xf32>, vector<2x8xf32> -> vector<2x8xf32>
    %cst_187 = arith.constant dense<0.000000e+00> : vector<12x2xf32>
    %387 = tpu.matmul %307, %25, %cst_187 {dimension_numbers = #tpu.dot_dimension_numbers<[1], [0], [0], [1], [0, 0, 1, 1], [], []>} : vector<12x32xf32>, vector<32x2xf32>, vector<12x2xf32> -> vector<12x2xf32>
    %388 = vector.extract_strided_slice %387 {offsets = [0, 0], sizes = [12, 1], strides = [1, 1]} : vector<12x2xf32> to vector<12x1xf32>
    %389 = vector.extract_strided_slice %386 {offsets = [0, 0], sizes = [1, 8], strides = [1, 1]} : vector<2x8xf32> to vector<1x8xf32>
    %390 = vector.broadcast %388 : vector<12x1xf32> to vector<12x8xf32>
    %391 = vector.broadcast %389 : vector<1x8xf32> to vector<12x8xf32>
    %392 = arith.addf %390, %391 : vector<12x8xf32>
    %cst_188 = arith.constant 0.000000e+00 : f32
    %393 = vector.broadcast %cst_188 : f32 to vector<12x8xf32>
    %394 = arith.cmpf ogt, %392, %393 : vector<12x8xf32>
    %cst_189 = arith.constant 2.000000e-01 : f32
    %395 = vector.broadcast %cst_189 : f32 to vector<12x8xf32>
    %396 = arith.mulf %395, %392 : vector<12x8xf32>
    %397 = arith.select %394, %392, %396 : vector<12x8xi1>, vector<12x8xf32>
    %cst_190 = arith.constant 0.000000e+00 : f32
    %398 = vector.broadcast %cst_190 : f32 to vector<12x8xf32>
    %399 = arith.cmpf ogt, %3, %398 : vector<12x8xf32>
    %cst_191 = arith.constant -1.000000e+30 : f32
    %400 = vector.broadcast %cst_191 : f32 to vector<12x8xf32>
    %401 = arith.select %399, %397, %400 : vector<12x8xi1>, vector<12x8xf32>
    %cst_192 = arith.constant dense<0xFF800000> : vector<12xf32>
    %402 = vector.multi_reduction <maximumf>, %401, %cst_192 [1] : vector<12x8xf32> to vector<12xf32>
    %403 = vector.shape_cast %402 : vector<12xf32> to vector<12x1xf32>
    %cst_193 = arith.constant 0.000000e+00 : f32
    %404 = vector.broadcast %cst_193 : f32 to vector<12x8xf32>
    %405 = arith.cmpf ogt, %3, %404 : vector<12x8xf32>
    %406 = vector.broadcast %403 : vector<12x1xf32> to vector<12x8xf32>
    %407 = arith.subf %401, %406 : vector<12x8xf32>
    %408 = math.exp %407 : vector<12x8xf32>
    %cst_194 = arith.constant 0.000000e+00 : f32
    %409 = vector.broadcast %cst_194 : f32 to vector<12x8xf32>
    %410 = arith.select %405, %408, %409 : vector<12x8xi1>, vector<12x8xf32>
    %cst_195 = arith.constant dense<0.000000e+00> : vector<12xf32>
    %411 = vector.multi_reduction <add>, %410, %cst_195 [1] : vector<12x8xf32> to vector<12xf32>
    %412 = vector.shape_cast %411 : vector<12xf32> to vector<12x1xf32>
    %cst_196 = arith.constant 0.000000e+00 : f32
    %413 = vector.broadcast %cst_196 : f32 to vector<12x1xf32>
    %414 = arith.cmpf ogt, %412, %413 : vector<12x1xf32>
    %cst_197 = arith.constant 1.000000e+00 : f32
    %415 = vector.broadcast %cst_197 : f32 to vector<12x1xf32>
    %416 = arith.select %414, %412, %415 : vector<12x1xi1>, vector<12x1xf32>
    %417 = tpu.reciprocal %416 {approx = true} : vector<12x1xf32> -> vector<12x1xf32>
    %418 = vector.broadcast %417 : vector<12x1xf32> to vector<12x8xf32>
    %419 = arith.mulf %410, %418 : vector<12x8xf32>
    %420 = vector.extract_strided_slice %310 {offsets = [0, 0], sizes = [8, 16], strides = [1, 1]} : vector<8x32xf32> to vector<8x16xf32>
    %cst_198 = arith.constant dense<0.000000e+00> : vector<12x16xf32>
    %421 = tpu.matmul %419, %420, %cst_198 {dimension_numbers = #tpu.dot_dimension_numbers<[1], [0], [0], [1], [0, 0, 1, 1], [], []>} : vector<12x8xf32>, vector<8x16xf32>, vector<12x16xf32> -> vector<12x16xf32>
    %cst_199 = arith.constant 0.000000e+00 : f32
    %422 = vector.broadcast %cst_199 : f32 to vector<12x16xf32>
    %423 = arith.maximumf %421, %422 : vector<12x16xf32>
    %424 = vector.extract_strided_slice %387 {offsets = [0, 1], sizes = [12, 1], strides = [1, 1]} : vector<12x2xf32> to vector<12x1xf32>
    %425 = vector.extract_strided_slice %386 {offsets = [1, 0], sizes = [1, 8], strides = [1, 1]} : vector<2x8xf32> to vector<1x8xf32>
    %426 = vector.broadcast %424 : vector<12x1xf32> to vector<12x8xf32>
    %427 = vector.broadcast %425 : vector<1x8xf32> to vector<12x8xf32>
    %428 = arith.addf %426, %427 : vector<12x8xf32>
    %cst_200 = arith.constant 0.000000e+00 : f32
    %429 = vector.broadcast %cst_200 : f32 to vector<12x8xf32>
    %430 = arith.cmpf ogt, %428, %429 : vector<12x8xf32>
    %cst_201 = arith.constant 2.000000e-01 : f32
    %431 = vector.broadcast %cst_201 : f32 to vector<12x8xf32>
    %432 = arith.mulf %431, %428 : vector<12x8xf32>
    %433 = arith.select %430, %428, %432 : vector<12x8xi1>, vector<12x8xf32>
    %cst_202 = arith.constant 0.000000e+00 : f32
    %434 = vector.broadcast %cst_202 : f32 to vector<12x8xf32>
    %435 = arith.cmpf ogt, %3, %434 : vector<12x8xf32>
    %cst_203 = arith.constant -1.000000e+30 : f32
    %436 = vector.broadcast %cst_203 : f32 to vector<12x8xf32>
    %437 = arith.select %435, %433, %436 : vector<12x8xi1>, vector<12x8xf32>
    %cst_204 = arith.constant dense<0xFF800000> : vector<12xf32>
    %438 = vector.multi_reduction <maximumf>, %437, %cst_204 [1] : vector<12x8xf32> to vector<12xf32>
    %439 = vector.shape_cast %438 : vector<12xf32> to vector<12x1xf32>
    %cst_205 = arith.constant 0.000000e+00 : f32
    %440 = vector.broadcast %cst_205 : f32 to vector<12x8xf32>
    %441 = arith.cmpf ogt, %3, %440 : vector<12x8xf32>
    %442 = vector.broadcast %439 : vector<12x1xf32> to vector<12x8xf32>
    %443 = arith.subf %437, %442 : vector<12x8xf32>
    %444 = math.exp %443 : vector<12x8xf32>
    %cst_206 = arith.constant 0.000000e+00 : f32
    %445 = vector.broadcast %cst_206 : f32 to vector<12x8xf32>
    %446 = arith.select %441, %444, %445 : vector<12x8xi1>, vector<12x8xf32>
    %cst_207 = arith.constant dense<0.000000e+00> : vector<12xf32>
    %447 = vector.multi_reduction <add>, %446, %cst_207 [1] : vector<12x8xf32> to vector<12xf32>
    %448 = vector.shape_cast %447 : vector<12xf32> to vector<12x1xf32>
    %cst_208 = arith.constant 0.000000e+00 : f32
    %449 = vector.broadcast %cst_208 : f32 to vector<12x1xf32>
    %450 = arith.cmpf ogt, %448, %449 : vector<12x1xf32>
    %cst_209 = arith.constant 1.000000e+00 : f32
    %451 = vector.broadcast %cst_209 : f32 to vector<12x1xf32>
    %452 = arith.select %450, %448, %451 : vector<12x1xi1>, vector<12x1xf32>
    %453 = tpu.reciprocal %452 {approx = true} : vector<12x1xf32> -> vector<12x1xf32>
    %454 = vector.broadcast %453 : vector<12x1xf32> to vector<12x8xf32>
    %455 = arith.mulf %446, %454 : vector<12x8xf32>
    %456 = vector.extract_strided_slice %310 {offsets = [0, 16], sizes = [8, 16], strides = [1, 1]} : vector<8x32xf32> to vector<8x16xf32>
    %cst_210 = arith.constant dense<0.000000e+00> : vector<12x16xf32>
    %457 = tpu.matmul %455, %456, %cst_210 {dimension_numbers = #tpu.dot_dimension_numbers<[1], [0], [0], [1], [0, 0, 1, 1], [], []>} : vector<12x8xf32>, vector<8x16xf32>, vector<12x16xf32> -> vector<12x16xf32>
    %cst_211 = arith.constant 0.000000e+00 : f32
    %458 = vector.broadcast %cst_211 : f32 to vector<12x16xf32>
    %459 = arith.maximumf %457, %458 : vector<12x16xf32>
    %460 = tpu.concatenate %423, %459 in 1 : vector<12x16xf32>, vector<12x16xf32> -> vector<12x32xf32>
    %cst_212 = arith.constant dense<0.000000e+00> : vector<12x32xf32>
    %461 = tpu.matmul %385, %26, %cst_212 {dimension_numbers = #tpu.dot_dimension_numbers<[1], [0], [0], [1], [0, 0, 1, 1], [], []>} : vector<12x32xf32>, vector<32x32xf32>, vector<12x32xf32> -> vector<12x32xf32>
    %462 = vector.broadcast %27 : vector<1x32xf32> to vector<12x32xf32>
    %463 = arith.addf %461, %462 : vector<12x32xf32>
    %464 = math.tanh %463 : vector<12x32xf32>
    %cst_213 = arith.constant dense<0.000000e+00> : vector<32xf32>
    %465 = vector.multi_reduction <add>, %464, %cst_213 [0] : vector<12x32xf32> to vector<32xf32>
    %466 = vector.shape_cast %465 : vector<32xf32> to vector<1x32xf32>
    %cst_214 = arith.constant 1.200000e+01 : f32
    %467 = vector.broadcast %cst_214 : f32 to vector<1x32xf32>
    %468 = arith.divf %466, %467 : vector<1x32xf32>
    %469 = arith.mulf %468, %28 : vector<1x32xf32>
    %cst_215 = arith.constant dense<0.000000e+00> : vector<1xf32>
    %470 = vector.multi_reduction <add>, %469, %cst_215 [1] : vector<1x32xf32> to vector<1xf32>
    %471 = vector.shape_cast %470 : vector<1xf32> to vector<1x1xf32>
    %cst_216 = arith.constant dense<0.000000e+00> : vector<12x32xf32>
    %472 = tpu.matmul %460, %26, %cst_216 {dimension_numbers = #tpu.dot_dimension_numbers<[1], [0], [0], [1], [0, 0, 1, 1], [], []>} : vector<12x32xf32>, vector<32x32xf32>, vector<12x32xf32> -> vector<12x32xf32>
    %473 = vector.broadcast %27 : vector<1x32xf32> to vector<12x32xf32>
    %474 = arith.addf %472, %473 : vector<12x32xf32>
    %475 = math.tanh %474 : vector<12x32xf32>
    %cst_217 = arith.constant dense<0.000000e+00> : vector<32xf32>
    %476 = vector.multi_reduction <add>, %475, %cst_217 [0] : vector<12x32xf32> to vector<32xf32>
    %477 = vector.shape_cast %476 : vector<32xf32> to vector<1x32xf32>
    %cst_218 = arith.constant 1.200000e+01 : f32
    %478 = vector.broadcast %cst_218 : f32 to vector<1x32xf32>
    %479 = arith.divf %477, %478 : vector<1x32xf32>
    %480 = arith.mulf %479, %28 : vector<1x32xf32>
    %cst_219 = arith.constant dense<0.000000e+00> : vector<1xf32>
    %481 = vector.multi_reduction <add>, %480, %cst_219 [1] : vector<1x32xf32> to vector<1xf32>
    %482 = vector.shape_cast %481 : vector<1xf32> to vector<1x1xf32>
    %483 = tpu.concatenate %471, %482 in 1 : vector<1x1xf32>, vector<1x1xf32> -> vector<1x2xf32>
    %cst_220 = arith.constant dense<0xFF800000> : vector<1xf32>
    %484 = vector.multi_reduction <maximumf>, %483, %cst_220 [1] : vector<1x2xf32> to vector<1xf32>
    %485 = vector.shape_cast %484 : vector<1xf32> to vector<1x1xf32>
    %486 = vector.broadcast %485 : vector<1x1xf32> to vector<1x2xf32>
    %487 = arith.subf %483, %486 : vector<1x2xf32>
    %488 = math.exp %487 : vector<1x2xf32>
    %cst_221 = arith.constant dense<0.000000e+00> : vector<1xf32>
    %489 = vector.multi_reduction <add>, %488, %cst_221 [1] : vector<1x2xf32> to vector<1xf32>
    %490 = vector.shape_cast %489 : vector<1xf32> to vector<1x1xf32>
    %491 = vector.broadcast %490 : vector<1x1xf32> to vector<1x2xf32>
    %492 = arith.divf %488, %491 : vector<1x2xf32>
    %493 = vector.extract_strided_slice %492 {offsets = [0, 0], sizes = [1, 1], strides = [1, 1]} : vector<1x2xf32> to vector<1x1xf32>
    %494 = vector.broadcast %493 : vector<1x1xf32> to vector<12x32xf32>
    %495 = arith.mulf %494, %385 : vector<12x32xf32>
    %496 = vector.extract_strided_slice %492 {offsets = [0, 1], sizes = [1, 1], strides = [1, 1]} : vector<1x2xf32> to vector<1x1xf32>
    %497 = vector.broadcast %496 : vector<1x1xf32> to vector<12x32xf32>
    %498 = arith.mulf %497, %460 : vector<12x32xf32>
    %499 = arith.addf %495, %498 : vector<12x32xf32>
    %cst_222 = arith.constant dense<0.000000e+00> : vector<12x16xf32>
    %500 = tpu.matmul %499, %29, %cst_222 {dimension_numbers = #tpu.dot_dimension_numbers<[1], [0], [0], [1], [0, 0, 1, 1], [], []>} : vector<12x32xf32>, vector<32x16xf32>, vector<12x16xf32> -> vector<12x16xf32>
    %501 = vector.broadcast %30 : vector<1x16xf32> to vector<12x16xf32>
    %502 = arith.addf %500, %501 : vector<12x16xf32>
    %cst_223 = arith.constant dense<0.000000e+00> : vector<12x8xf32>
    %503 = tpu.matmul %502, %31, %cst_223 {dimension_numbers = #tpu.dot_dimension_numbers<[1], [0], [0], [1], [0, 0, 1, 1], [], []>} : vector<12x16xf32>, vector<16x8xf32>, vector<12x8xf32> -> vector<12x8xf32>
    %504 = vector.broadcast %32 : vector<1x8xf32> to vector<12x8xf32>
    %505 = arith.addf %503, %504 : vector<12x8xf32>
    %cst_224 = arith.constant dense<0.000000e+00> : vector<12x4xf32>
    %506 = tpu.matmul %505, %33, %cst_224 {dimension_numbers = #tpu.dot_dimension_numbers<[1], [0], [0], [1], [0, 0, 1, 1], [], []>} : vector<12x8xf32>, vector<8x4xf32>, vector<12x4xf32> -> vector<12x4xf32>
    %507 = vector.broadcast %34 : vector<1x4xf32> to vector<12x4xf32>
    %508 = arith.addf %506, %507 : vector<12x4xf32>
    %509 = arith.negf %508 : vector<12x4xf32>
    %510 = math.exp %509 : vector<12x4xf32>
    %cst_225 = arith.constant 1.000000e+00 : f32
    %511 = vector.broadcast %cst_225 : f32 to vector<12x4xf32>
    %512 = arith.addf %511, %510 : vector<12x4xf32>
    %513 = arith.divf %511, %512 : vector<12x4xf32>
    %c0_226 = arith.constant 0 : index
    %c0_227 = arith.constant 0 : index
    %514 = vector.load %arg38[%c0_226, %c0_227] : memref<12x4xf32, #tpu.memory_space<vmem>>, vector<12x4xf32>
    tpu.vector_store %arg38[%c0_226, %c0_227], %513 {strides = array<i32>} : memref<12x4xf32, #tpu.memory_space<vmem>>, vector<12x4xf32>,
    return
  }
  func.func @transform_0(%arg0: i32) -> (i32, i32) {
    %c0_i32 = arith.constant 0 : i32
    %c0_i32_0 = arith.constant 0 : i32
    %c0_i32_1 = arith.constant 0 : i32
    return %c0_i32, %c0_i32_0 : i32, i32
  }
  func.func @transform_1(%arg0: i32) -> (i32, i32) {
    %c0_i32 = arith.constant 0 : i32
    %c0_i32_0 = arith.constant 0 : i32
    %c0_i32_1 = arith.constant 0 : i32
    return %c0_i32, %c0_i32_0 : i32, i32
  }
  func.func @transform_2(%arg0: i32) -> (i32, i32) {
    %c0_i32 = arith.constant 0 : i32
    %c0_i32_0 = arith.constant 0 : i32
    %c0_i32_1 = arith.constant 0 : i32
    return %c0_i32, %c0_i32_0 : i32, i32
  }
  func.func @transform_3(%arg0: i32) -> (i32, i32) {
    %c0_i32 = arith.constant 0 : i32
    %c0_i32_0 = arith.constant 0 : i32
    %c0_i32_1 = arith.constant 0 : i32
    return %c0_i32, %c0_i32_0 : i32, i32
  }
  func.func @transform_4(%arg0: i32) -> (i32, i32) {
    %c0_i32 = arith.constant 0 : i32
    %c0_i32_0 = arith.constant 0 : i32
    %c0_i32_1 = arith.constant 0 : i32
    return %c0_i32, %c0_i32_0 : i32, i32
  }
  func.func @transform_5(%arg0: i32) -> (i32, i32) {
    %c0_i32 = arith.constant 0 : i32
    %c0_i32_0 = arith.constant 0 : i32
    %c0_i32_1 = arith.constant 0 : i32
    return %c0_i32, %c0_i32_0 : i32, i32
  }
  func.func @transform_6(%arg0: i32) -> (i32, i32) {
    %c0_i32 = arith.constant 0 : i32
    %c0_i32_0 = arith.constant 0 : i32
    %c0_i32_1 = arith.constant 0 : i32
    return %c0_i32, %c0_i32_0 : i32, i32
  }
  func.func @transform_7(%arg0: i32) -> (i32, i32) {
    %c0_i32 = arith.constant 0 : i32
    %c0_i32_0 = arith.constant 0 : i32
    %c0_i32_1 = arith.constant 0 : i32
    return %c0_i32, %c0_i32_0 : i32, i32
  }
  func.func @transform_8(%arg0: i32) -> (i32, i32) {
    %c0_i32 = arith.constant 0 : i32
    %c0_i32_0 = arith.constant 0 : i32
    %c0_i32_1 = arith.constant 0 : i32
    return %c0_i32, %c0_i32_0 : i32, i32
  }
  func.func @transform_9(%arg0: i32) -> (i32, i32) {
    %c0_i32 = arith.constant 0 : i32
    %c0_i32_0 = arith.constant 0 : i32
    %c0_i32_1 = arith.constant 0 : i32
    return %c0_i32, %c0_i32_0 : i32, i32
  }
  func.func @transform_10(%arg0: i32) -> (i32, i32) {
    %c0_i32 = arith.constant 0 : i32
    %c0_i32_0 = arith.constant 0 : i32
    %c0_i32_1 = arith.constant 0 : i32
    return %c0_i32, %c0_i32_0 : i32, i32
  }
  func.func @transform_11(%arg0: i32) -> (i32, i32) {
    %c0_i32 = arith.constant 0 : i32
    %c0_i32_0 = arith.constant 0 : i32
    %c0_i32_1 = arith.constant 0 : i32
    return %c0_i32, %c0_i32_0 : i32, i32
  }
  func.func @transform_12(%arg0: i32) -> (i32, i32) {
    %c0_i32 = arith.constant 0 : i32
    %c0_i32_0 = arith.constant 0 : i32
    %c0_i32_1 = arith.constant 0 : i32
    return %c0_i32, %c0_i32_0 : i32, i32
  }
  func.func @transform_13(%arg0: i32) -> (i32, i32) {
    %c0_i32 = arith.constant 0 : i32
    %c0_i32_0 = arith.constant 0 : i32
    %c0_i32_1 = arith.constant 0 : i32
    return %c0_i32, %c0_i32_0 : i32, i32
  }
  func.func @transform_14(%arg0: i32) -> (i32, i32) {
    %c0_i32 = arith.constant 0 : i32
    %c0_i32_0 = arith.constant 0 : i32
    %c0_i32_1 = arith.constant 0 : i32
    return %c0_i32, %c0_i32_0 : i32, i32
  }
  func.func @transform_15(%arg0: i32) -> (i32, i32) {
    %c0_i32 = arith.constant 0 : i32
    %c0_i32_0 = arith.constant 0 : i32
    %c0_i32_1 = arith.constant 0 : i32
    return %c0_i32, %c0_i32_0 : i32, i32
  }
  func.func @transform_16(%arg0: i32) -> (i32, i32) {
    %c0_i32 = arith.constant 0 : i32
    %c0_i32_0 = arith.constant 0 : i32
    %c0_i32_1 = arith.constant 0 : i32
    return %c0_i32, %c0_i32_0 : i32, i32
  }
  func.func @transform_17(%arg0: i32) -> (i32, i32) {
    %c0_i32 = arith.constant 0 : i32
    %c0_i32_0 = arith.constant 0 : i32
    %c0_i32_1 = arith.constant 0 : i32
    return %c0_i32, %c0_i32_0 : i32, i32
  }
  func.func @transform_18(%arg0: i32) -> (i32, i32) {
    %c0_i32 = arith.constant 0 : i32
    %c0_i32_0 = arith.constant 0 : i32
    %c0_i32_1 = arith.constant 0 : i32
    return %c0_i32, %c0_i32_0 : i32, i32
  }
  func.func @transform_19(%arg0: i32) -> (i32, i32) {
    %c0_i32 = arith.constant 0 : i32
    %c0_i32_0 = arith.constant 0 : i32
    %c0_i32_1 = arith.constant 0 : i32
    return %c0_i32, %c0_i32_0 : i32, i32
  }
  func.func @transform_20(%arg0: i32) -> (i32, i32) {
    %c0_i32 = arith.constant 0 : i32
    %c0_i32_0 = arith.constant 0 : i32
    %c0_i32_1 = arith.constant 0 : i32
    return %c0_i32, %c0_i32_0 : i32, i32
  }
  func.func @transform_21(%arg0: i32) -> (i32, i32) {
    %c0_i32 = arith.constant 0 : i32
    %c0_i32_0 = arith.constant 0 : i32
    %c0_i32_1 = arith.constant 0 : i32
    return %c0_i32, %c0_i32_0 : i32, i32
  }
  func.func @transform_22(%arg0: i32) -> (i32, i32) {
    %c0_i32 = arith.constant 0 : i32
    %c0_i32_0 = arith.constant 0 : i32
    %c0_i32_1 = arith.constant 0 : i32
    return %c0_i32, %c0_i32_0 : i32, i32
  }
  func.func @transform_23(%arg0: i32) -> (i32, i32) {
    %c0_i32 = arith.constant 0 : i32
    %c0_i32_0 = arith.constant 0 : i32
    %c0_i32_1 = arith.constant 0 : i32
    return %c0_i32, %c0_i32_0 : i32, i32
  }
  func.func @transform_24(%arg0: i32) -> (i32, i32) {
    %c0_i32 = arith.constant 0 : i32
    %c0_i32_0 = arith.constant 0 : i32
    %c0_i32_1 = arith.constant 0 : i32
    return %c0_i32, %c0_i32_0 : i32, i32
  }
  func.func @transform_25(%arg0: i32) -> (i32, i32) {
    %c0_i32 = arith.constant 0 : i32
    %c0_i32_0 = arith.constant 0 : i32
    %c0_i32_1 = arith.constant 0 : i32
    return %c0_i32, %c0_i32_0 : i32, i32
  }
  func.func @transform_26(%arg0: i32) -> (i32, i32) {
    %c0_i32 = arith.constant 0 : i32
    %c0_i32_0 = arith.constant 0 : i32
    %c0_i32_1 = arith.constant 0 : i32
    return %c0_i32, %c0_i32_0 : i32, i32
  }
  func.func @transform_27(%arg0: i32) -> (i32, i32) {
    %c0_i32 = arith.constant 0 : i32
    %c0_i32_0 = arith.constant 0 : i32
    %c0_i32_1 = arith.constant 0 : i32
    return %c0_i32, %c0_i32_0 : i32, i32
  }
  func.func @transform_28(%arg0: i32) -> (i32, i32) {
    %c0_i32 = arith.constant 0 : i32
    %c0_i32_0 = arith.constant 0 : i32
    %c0_i32_1 = arith.constant 0 : i32
    return %c0_i32, %c0_i32_0 : i32, i32
  }
  func.func @transform_29(%arg0: i32) -> (i32, i32) {
    %c0_i32 = arith.constant 0 : i32
    %c0_i32_0 = arith.constant 0 : i32
    %c0_i32_1 = arith.constant 0 : i32
    return %c0_i32, %c0_i32_0 : i32, i32
  }
  func.func @transform_30(%arg0: i32) -> (i32, i32) {
    %c0_i32 = arith.constant 0 : i32
    %c0_i32_0 = arith.constant 0 : i32
    %c0_i32_1 = arith.constant 0 : i32
    return %c0_i32, %c0_i32_0 : i32, i32
  }
  func.func @transform_31(%arg0: i32) -> (i32, i32) {
    %c0_i32 = arith.constant 0 : i32
    %c0_i32_0 = arith.constant 0 : i32
    %c0_i32_1 = arith.constant 0 : i32
    return %c0_i32, %c0_i32_0 : i32, i32
  }
  func.func @transform_32(%arg0: i32) -> (i32, i32) {
    %c0_i32 = arith.constant 0 : i32
    %c0_i32_0 = arith.constant 0 : i32
    %c0_i32_1 = arith.constant 0 : i32
    return %c0_i32, %c0_i32_0 : i32, i32
  }
  func.func @transform_33(%arg0: i32) -> (i32, i32) {
    %c0_i32 = arith.constant 0 : i32
    %c0_i32_0 = arith.constant 0 : i32
    %c0_i32_1 = arith.constant 0 : i32
    return %c0_i32, %c0_i32_0 : i32, i32
  }
  func.func @transform_34(%arg0: i32) -> (i32, i32) {
    %c0_i32 = arith.constant 0 : i32
    %c0_i32_0 = arith.constant 0 : i32
    %c0_i32_1 = arith.constant 0 : i32
    return %c0_i32, %c0_i32_0 : i32, i32
  }
  func.func @transform_35(%arg0: i32) -> (i32, i32) {
    %c0_i32 = arith.constant 0 : i32
    %c0_i32_0 = arith.constant 0 : i32
    %c0_i32_1 = arith.constant 0 : i32
    return %c0_i32, %c0_i32_0 : i32, i32
  }
  func.func @transform_36(%arg0: i32) -> (i32, i32) {
    %c0_i32 = arith.constant 0 : i32
    %c0_i32_0 = arith.constant 0 : i32
    %c0_i32_1 = arith.constant 0 : i32
    return %c0_i32, %c0_i32_0 : i32, i32
  }
  func.func @transform_37(%arg0: i32) -> (i32, i32) {
    %c0_i32 = arith.constant 0 : i32
    %c0_i32_0 = arith.constant 0 : i32
    %c0_i32_1 = arith.constant 0 : i32
    return %c0_i32, %c0_i32_0 : i32, i32
  }
}

</mosaic_0001>

<bundles_post_ra>
// kernel: tpu_custom_call.1
= control target key start
LH: loop header
LB: loop body
LE: loop exit
PB: predicated region body
PF: predicated region fallthrough
CT: control target
= control target key end

     0   :  { %s4221_s3 = smov 5   ;;  %v4222_v0 = vmov 0.0|0.0   ;;  %vm4223_vm0 = vmmov 0   ;;  %v4224_v1 = vmov 0.0   ;;  %s4225_s10 = smov 7   ;;  %vm231_vm1 = vcmask 130048   ;;  %s4806_s0 = inlined_call_operand.smem [shape: u32[38], index: -1, kind: input, shape index: {}] }
   0x1   :  { %s3410_s6 = sld [smem:[%s4806_s0 + %s4221_s3]]   ;;  %3904 = vmatprep.subr.bf16.mxu1 %v4222_v0  ;;  %3660 = vmatprep.mubr.msk.f32.mxu1 %vm4223_vm0, %v4224_v1  ;;  %s4226_s14 = smov 1   ;;  %v4228_v17 = vmov 0   ;;  %vm392_vm2 = vcmask 261120   ;;  %vm609_vm3 = vcmask 1043456   ;;  %vm4231_vm5 = vmmov 1  }
   0x2   :  { %s1_s9 = sld [smem:[%s4806_s0]]   ;;  %s4227_s18 = smov 10   ;;  %4099 = vset.pattern.permute.xlu1 %v4228_v17  ;;  %vm4308_vm4 = vmpackc.low %vm392_vm2, %vm392_vm2  ;;  %v4232_v29 = vmov 1   ;;  %v557_v34 = vlaneseq  ;;  %vm573_vm9 = vcmask 97280   ;;  %vm577_vm14 = vcmask 93184  }
   0x3   :  { %s3412_s13 = sld [smem:[%s4806_s0 + %s4225_s10]]   ;;  %s4229_s22 = smov 6   ;;  %vm4318_vm6 = vmpackc.low %vm609_vm3, %vm4231_vm5  ;;  %4098 = vset.pattern.permute.xlu0 %v4232_v29 }
   0x4   :  { %s3406_s17 = sld [smem:[%s4806_s0 + %s4226_s14]]   ;;  %s4230_s26 = smov 9   ;;  %v558_v35 = vshrl.u32 %v557_v34, 7 }
   0x5   :  { %s3415_s21 = sld [smem:[%s4806_s0 + %s4227_s18]]   ;;  %s4233_s30 = smov 2  }
   0x6   :  { %s3411_s25 = sld [smem:[%s4806_s0 + %s4229_s22]]   ;;  %v4340_v36 = vsub.s32 0, %v558_v35  ;;  %v4342_v37 = vsub.s32 1, %v558_v35  ;;  %s4234_s4 = smov 112  }
   0x7   :  { %v162_v2 = vld [vmem:[%s3410_s6] sm:$0xff]  ;;  %v163_v3 = vld [vmem:[%s3410_s6 + $0x8] sm:$0xff]  ;;  %s3414_s29 = sld [smem:[%s4806_s0 + %s4230_s26]]   ;;  %s4235_s5 = smov 12  }
   0x8   :  { %v154_v4 = vld [vmem:[%s1_s9] sm:$0xff]  ;;  %v3900_v5 = vpack.c.bf16 %v163_v3, %v162_v2  ;;  %v155_v11 = vld [vmem:[%s1_s9 + $0x8] sm:$0xf]  ;;  %s3407_s3 = sld [smem:[%s4806_s0 + %s4233_s30]]   ;;  %s4236_s9 = smov 8  }
   0x9   :  { %3653 = vmatprep.mubr.msk.f32.mxu0 %vm231_vm1, %v154_v4  ;;  %v165_v6 = vld [vmem:[%s3412_s13] sm:$0xff]  ;;  %v166_v7 = vld [vmem:[%s3412_s13 + $0x8] sm:$0xff]  ;;  %s3417_s8 = sld [smem:[%s4806_s0 + %s4235_s5]]   ;;  %s4237_s13 = smov 11  }
   0xa   :  { %v3905_v8 = vpack.c.bf16 %v166_v7, %v165_v6  ;;  %3901 = vmatprep.subr.bf16.mxu0 %v3900_v5  ;;  %v156_v12 = vld [vmem:[%s3406_s17] sm:$0xff]  ;;  %s3413_s12 = sld [smem:[%s4806_s0 + %s4236_s9]]   ;;  %s4238_s17 = smov 13  }
   0xb   :  { %v169_v9 = vld [vmem:[%s3415_s21] sm:$0xff]  ;;  %v170_v10 = vld [vmem:[%s3415_s21 + $0x8] sm:$0xff]  ;;  %3903 = vmatpush3.bf16.msra.mxu0 %v3900_v5  ;;  %v171_v14 = vld [vmem:[%s3415_s21 + $0x10] sm:$0xff]  ;;  %s3416_s16 = sld [smem:[%s4806_s0 + %s4237_s13]]   ;;  %s4243_s5 = smov 15  }
   0xc   :  { %3906 = vmatpush3.bf16.msra.mxu1 %v3905_v8  ;;  %v3911_v13 = vpack.c.bf16 %v170_v10, %v169_v9  ;;  %3907 = vmatprep.subr.bf16.mxu0 %v4222_v0  ;;  %v172_v15 = vld [vmem:[%s3415_s21 + $0x18] sm:$0xff]  ;;  %v3441_v18 = vld [vmem:[%s3411_s25] ss:$0 sm:$0xff]  ;;  %s3418_s20 = sld [smem:[%s4806_s0 + %s4238_s17]]   ;;  %s4239_s21 = smov 3  }
   0xd   :  { %v3915_v16 = vpack.c.bf16 %v172_v15, %v171_v14  ;;  %v168_v28 = vld [vmem:[%s3414_s29] sm:$0x3]  ;;  %s3408_s24 = sld [smem:[%s4806_s0 + %s4239_s21]]   ;;  %s4240_s25 = smov 14  }
   0xe   :  { %3912 = vmatprep.subr.bf16.mxu1 %v3911_v13  ;;  %3654 = vmatmul.mubr.msk.f32.vlgmr.msra.gmra.mrb[0].mxu0 %vm231_vm1, %v155_v11  ;;  %v4346_v42 = vld [vmem:[%s3407_s3] sm:$0xff]  ;;  %v4349_v52 = vld [vmem:[%s3407_s3 + $0x8] sm:$0xf]  ;;  %s3419_s28 = sld [smem:[%s4806_s0 + %s4240_s25]]   ;;  %s4241_s29 = smov 4  }
   0xf   :  { %3661 = vmatmul.mubr.msk.f32.vlgmr.msra.gmra.mrb[0].mxu1 %vm231_vm1, %v156_v12  ;;  %3667 = vmatprep.mubr.msk.f32.mxu0 %vm4223_vm0, %v4224_v1  ;;  %vm569_vm7 = vcmp.gt.f32.partialorder %v4346_v42, 0.0  ;;  %vm570_vm13 = vcmp.gt.f32.partialorder %v4349_v52, 0.0  ;;  %s3409_s2 = sld [smem:[%s4806_s0 + %s4241_s29]]   ;;  %s4242_s3 = smov 16  }
  0x10   :  { %3914 = vmatpush3.bf16.msra.mxu1 %v3911_v13  ;;  %s3421_s11 = sld [smem:[%s4806_s0 + %s4242_s3]]   ;;  %s4248_s25 = smov 23  }
  0x11   :  { %3916 = vmatprep.subr.bf16.mxu1 %v3915_v16  ;;  %s4249_s1 = smov 19   ;;  %s4250_s7 = smov 22  }
  0x12   :  { %s3424_s6 = sld [smem:[%s4806_s0 + %s4249_s1]]   ;;  %s4256_s1 = smov 30  }
  0x13   :  { %s3427_s10 = sld [smem:[%s4806_s0 + %s4250_s7]]  }
  0x14   :  { %3918 = vmatpush3.bf16.msra.mxu1 %v3915_v16 }
  0xe1   :  { %v3655_v19 = vpop.f32.mrb[0].mxu0 }
  0xe2   :  { %v4297_v20 = vpop.f32.mrb[0].mxu1  ;;  %v4299_v21 = vadd.f32 %v3655_v19, %v3441_v18  ;;  %v304_v22 = vpop.f32.mrb[1].mxu0 }
  0xe3   :  { %v3662_v23 = vpop.f32.mrb[1].mxu1  ;;  %v4301_v24 = vadd.f32 %v3441_v18, %v304_v22 }
  0xe5   :  { %v4314_v26 = vpack.c.bf16 %v4299_v21, %v4301_v24  ;;  %3678 = vmatprep.mubr.msk.f32.mxu1 %vm392_vm2, %v4301_v24 }
  0xe6   :  { %3679 = vmatmul.mubr.msk.f32.vlgmr.msra.gmra.mrb[2].mxu1 %vm392_vm2, %v4299_v21 }
  0xe7   :  { %3910 = vmatpush3.bf16.xpose.msk.msra.mxu0 %vm4308_vm4, %v4314_v26 }
  0xe8   :  { %3921 = vmatprep.subr.msk.bf16.mxu0 %vm4318_vm6, %v4314_v26 }
  0xee   :  { %3668 = vmatmul.mubr.msk.f32.vlgmr.msra.gmra.mrb[2].mxu0 %vm392_vm2, %v168_v28 }
  0xef   :  { %3924 = vmatpush3.bf16.msk.msra.mxu0 %vm4318_vm6, %v4314_v26 }
  0xf0   :  { %3695 = vmatprep.subr.mxu0 %v4224_v1 }
 0x1b9   :  { %v3680_v30 = vpop.f32.mrb[2].mxu1 }
 0x1ba   :  { %554 = vperm.xlu1 %4099, %v3680_v30   ;;  %v538_v31 = vpop.f32.mrb[3].mxu1 }
 0x1bb   :  { %690 = vperm.xlu0 %4098, %v538_v31  }
 0x1be   :  { %549 = vperm.xlu1 %4099, %v538_v31  }
 0x1bf   :  { %694 = vperm.xlu0 %4098, %v3680_v30  }
 0x1c1   :  { %v468_v32 = vpop.f32.mrb[2].mxu0 }
 0x1c2   :  { %v3669_v33 = vpop.f32.mrb[3].mxu0  ;;  %v560_v38 = vrot.slane %v468_v32, %v4340_v36  ;;  %v700_v39 = vrot.slane %v468_v32, %v4342_v37 }
 0x1c3   :  { %4105 = vset.pattern.permute.xlu0 %v4228_v17 }
 0x239   :  { %v555_v40 = vpop.permute.xlu1 %554 }
 0x23a   :  { %v691_v41 = vpop.permute.xlu0 %690  ;;  %v562_v43 = vadd.f32 %v560_v38, %v555_v40 }
 0x23b   :  { %v701_v44 = vadd.f32 %v700_v39, %v691_v41 }
 0x23c   :  { %v566_v49 = vmul.f32 0.2, %v562_v43  ;;  %vm564_vm11 = vcmp.gt.f32.partialorder %v562_v43, 0.0 }
 0x23d   :  { %v705_v45 = vmul.f32 0.2, %v701_v44  ;;  %v550_v46 = vpop.permute.xlu1 %549  ;;  %vm703_vm8 = vcmp.gt.f32.partialorder %v701_v44, 0.0 }
 0x23e   :  { %v561_v47 = vadd.f32 %v560_v38, %v550_v46  ;;  %v695_v48 = vpop.permute.xlu0 %694  ;;  %v568_v60 = vsel %vm564_vm11, %v562_v43, %v566_v49  ;;  %v4100_v38 = vpack.i.bf16 %v4299_v21, %v4301_v24 }
 0x23f   :  { %v702_v50 = vadd.f32 %v700_v39, %v695_v48  ;;  %v707_v51 = vsel %vm703_vm8, %v701_v44, %v705_v45  ;;  %v572_v2 = vsel %vm570_vm13, %v568_v60, -1e+30  ;;  %v174_v44 = vld [vmem:[%s3417_s8] sm:$0xff]  ;;  %v175_v45 = vld [vmem:[%s3417_s8 + $0x8] sm:$0xff] }
 0x240   :  { %v565_v53 = vmul.f32 0.2, %v561_v47  ;;  %v709_v54 = vsel %vm569_vm7, %v707_v51, -1e+30  ;;  %vm563_vm10 = vcmp.gt.f32.partialorder %v561_v47, 0.0  ;;  %v578_v3 = vsel %vm577_vm14, %v572_v2, -inf }
 0x241   :  { %v706_v55 = vmul.f32 0.2, %v702_v50  ;;  %v711_v56 = vsel %vm573_vm9, %v709_v54, -inf  ;;  %vm704_vm12 = vcmp.gt.f32.partialorder %v702_v50, 0.0 }
 0x242   :  { %712 = vmax.xlane.f32.xlu0 %v711_v56  ;;  %v567_v57 = vsel %vm563_vm10, %v561_v47, %v565_v53 }
 0x243   :  { %v708_v58 = vsel %vm704_vm12, %v702_v50, %v706_v55  ;;  %v571_v59 = vsel %vm569_vm7, %v567_v57, -1e+30  ;;  %v3931_v50 = vpack.c.bf16 %v175_v45, %v174_v44  ;;  %vm1020_vm12 = vcmask 60416  }
 0x244   :  { %v710_v61 = vsel %vm570_vm13, %v708_v58, -1e+30  ;;  %v574_v62 = vsel %vm573_vm9, %v571_v59, -inf  ;;  %v176_v58 = vld [vmem:[%s3417_s8 + $0x10] sm:$0xff] }
 0x245   :  { %v714_v63 = vsel %vm577_vm14, %v710_v61, -inf }
 0x246   :  { %715 = vmax.xlane.f32.xlu1 %v714_v63  ;;  %575 = vmax.xlane.f32.xlu0 %v574_v62 }
 0x24a   :  { %579 = vmax.xlane.f32.xlu0 %v578_v3  ;;  %v3444_v3 = vld [vmem:[%s3413_s12] ss:$0 sm:$0xff]  ;;  %s4244_s12 = smov 17  }
 0x24b   :  { %s3422_s15 = sld [smem:[%s4806_s0 + %s4244_s12]]  }
 0x2cf   :  { %v713_v4 = vpop.xlane.xlu0 %712 }
 0x2d0   :  { %v717_v5 = vsub.f32 %v709_v54, %v713_v4 }
 0x2d2   :  { %v719_v6 = vmul.f32 1.442695, %v717_v5 }
 0x2d3   :  { %v716_v7 = vpop.xlane.xlu1 %715  ;;  %v576_v8 = vpop.xlane.xlu0 %575 }
 0x2d4   :  { %4117 = vpow2.f32 %v719_v6  ;;  %v718_v9 = vsub.f32 %v710_v61, %v716_v7  ;;  %v581_v10 = vsub.f32 %v571_v59, %v576_v8  ;;  %v177_v59 = vld [vmem:[%s3417_s8 + $0x18] sm:$0xff]  ;;  %v4403_v6 = vadd.f32 %v3444_v3, %v4297_v20  ;;  %v178_v20 = vld [vmem:[%s3418_s20] sm:$0x3]  ;;  %s3420_s8 = sld [smem:[%s4806_s0 + %s4243_s5]]   ;;  %s4246_s20 = smov 18  }
 0x2d5   :  { %v3935_v62 = vpack.c.bf16 %v177_v59, %v176_v58  ;;  %s3423_s23 = sld [smem:[%s4806_s0 + %s4246_s20]]  }
 0x2d6   :  { %v721_v11 = vmul.f32 1.442695, %v718_v9  ;;  %v583_v12 = vmul.f32 1.442695, %v581_v10 }
 0x2d7   :  { %v580_v13 = vpop.xlane.xlu0 %579 }
 0x2d8   :  { %4119 = vpow2.f32 %v721_v11  ;;  %v582_v14 = vsub.f32 %v572_v2, %v580_v13 }
 0x2d9   :  { %4121 = vpow2.f32 %v583_v12 }
 0x2da   :  { %v585_v15 = vmul.f32 1.442695, %v582_v14 }
 0x2dc   :  { %4123 = vpow2.f32 %v585_v15  ;;  %v4444_v15 = vld [vmem:[%s3408_s24 + $0x8] sm:$0xf] }
 0x2dd   :  { %vm1013_vm11 = vcmp.gt.f32.partialorder %v4444_v15, 0.0 }
 0x2de   :  { %v4118_v16 = vpop.eup %4117 }
 0x2df   :  { %v723_v18 = vsel %vm569_vm7, %v4118_v16, 0.0 }
 0x2e0   :  { %v725_v19 = vsel %vm573_vm9, %v723_v18, 0.0 }
 0x2e1   :  { %726 = vadd.xlane.f32.xlu1 %v725_v19  ;;  %v4446_v19 = vld [vmem:[%s3408_s24] sm:$0xff]  ;;  %s4247_s24 = smov 127  }
 0x2e2   :  { %v4120_v22 = vpop.eup %4119 }
 0x2e3   :  { %v4122_v23 = vpop.eup %4121  ;;  %v724_v28 = vsel %vm570_vm13, %v4120_v22, 0.0 }
 0x2e4   :  { %v728_v30 = vsel %vm577_vm14, %v724_v28, 0.0  ;;  %v587_v31 = vsel %vm569_vm7, %v4122_v23, 0.0 }
 0x2e5   :  { %729 = vadd.xlane.f32.xlu0 %v728_v30  ;;  %v589_v33 = vsel %vm573_vm9, %v587_v31, 0.0 }
 0x2e6   :  { %v4124_v32 = vpop.eup %4123 }
 0x2e7   :  { %v588_v34 = vsel %vm570_vm13, %v4124_v32, 0.0 }
 0x2e8   :  { %v592_v35 = vsel %vm577_vm14, %v588_v34, 0.0 }
 0x2e9   :  { %590 = vadd.xlane.f32.xlu0 %v589_v33 }
 0x2ed   :  { %593 = vadd.xlane.f32.xlu0 %v592_v35 }
 0x2f2   :  { %4101 = vrot.lane.b32.xlu1 %v4100_v38, %s4234_s4 }
 0x36e   :  { %v727_v39 = vpop.xlane.xlu1 %726 }
 0x36f   :  { %vm731_vm15 = vcmp.gt.f32.partialorder %v727_v39, 0.0 }
 0x370   :  { %v733_v40 = vsel %vm731_vm15, %v727_v39, 1.0 }
 0x371   :  { %4125 = vrcp.f32 %v733_v40 }
 0x372   :  { %v4102_v41 = vpop.permute.xlu1 %4101  ;;  %v730_v43 = vpop.xlane.xlu0 %729 }
 0x373   :  { %v4104_v46 = vunpack.i.h.bf16 %v4102_v41  ;;  %v4103_v47 = vunpack.i.l.bf16 %v4102_v41  ;;  %vm732_vm3 = vcmp.gt.f32.partialorder %v730_v43, 0.0 }
 0x374   :  { %v734_v48 = vsel %vm732_vm3, %v730_v43, 1.0  ;;  %vm4807_vm3 = vcmp.gt.f32.partialorder %v4446_v19, 0.0 }
 0x375   :  { %v4382_v49 = vpack.c.bf16 %v4104_v46, %v4103_v47  ;;  %4127 = vrcp.f32 %v734_v48 }
 0x376   :  { %v591_v51 = vpop.xlane.xlu0 %590 }
 0x377   :  { %vm595_vm5 = vcmp.gt.f32.partialorder %v591_v51, 0.0  ;;  %3927 = vmatprep.subr.msk.bf16.mxu1 %vm4318_vm6, %v4382_v49 }
 0x378   :  { %v597_v53 = vsel %vm595_vm5, %v591_v51, 1.0  ;;  %3930 = vmatpush3.bf16.msk.msra.mxu1 %vm4318_vm6, %v4382_v49  ;;  %vm1016_vm5 = vcmask 64512  }
 0x379   :  { %4129 = vrcp.f32 %v597_v53  ;;  %3932 = vmatprep.subr.bf16.mxu1 %v3931_v50 }
 0x37a   :  { %v594_v54 = vpop.xlane.xlu0 %593 }
 0x37b   :  { %v4126_v55 = vpop.eup %4125  ;;  %vm596_vm8 = vcmp.gt.f32.partialorder %v594_v54, 0.0 }
 0x37c   :  { %v598_v56 = vsel %vm596_vm8, %v594_v54, 1.0  ;;  %v737_v57 = vmul.f32 %v4126_v55, %v723_v18 }
 0x37d   :  { %4131 = vrcp.f32 %v598_v56 }
 0x37e   :  { %3692 = vmatprep.mubr.msk.f32.mxu1 %vm573_vm9, %v737_v57 }
 0x37f   :  { %v4128_v60 = vpop.eup %4127 }
 0x380   :  { %v738_v61 = vmul.f32 %v4128_v60, %v724_v28 }
 0x382   :  { %3693 = vmatmul.mubr.msk.f32.vlgmr.msra.gmra.mrb[4].mxu1 %vm573_vm9, %v738_v61 }
 0x383   :  { %v4130_v63 = vpop.eup %4129  ;;  %3934 = vmatpush3.bf16.msra.mxu1 %v3931_v50  ;;  %3708 = vmatprep.mubr.msk.f32.mxu1 %vm392_vm2, %v4301_v24  ;;  %v173_v24 = vld [vmem:[%s3416_s16] sm:$0x3]  ;;  %s4245_s16 = smov 20  }
 0x384   :  { %3936 = vmatprep.subr.bf16.mxu1 %v3935_v62  ;;  %v601_v2 = vmul.f32 %v4130_v63, %v587_v31  ;;  %s3425_s19 = sld [smem:[%s4806_s0 + %s4245_s16]]  }
 0x386   :  { %3685 = vmatprep.mubr.msk.f32.mxu0 %vm573_vm9, %v601_v2 }
 0x387   :  { %v4132_v4 = vpop.eup %4131  ;;  %3938 = vmatpush3.bf16.msra.mxu1 %v3935_v62 }
 0x388   :  { %v602_v5 = vmul.f32 %v4132_v4, %v588_v34  ;;  %3939 = vmatprep.subr.bf16.mxu1 %v4222_v0 }
 0x38a   :  { %3709 = vmatmul.mubr.msk.f32.vlgmr.msra.gmra.mrb[6].mxu1 %vm392_vm2, %v4299_v21  ;;  %3686 = vmatmul.mubr.msk.f32.vlgmr.msra.gmra.mrb[4].mxu0 %vm573_vm9, %v602_v5 }
 0x38b   :  { %3696 = vmatpush3.xpose.msk.msra.mxu0 %vm392_vm2, %v4403_v6  ;;  %3697 = vmatprep.mubr.msk.f32.mxu0 %vm4223_vm0, %v4224_v1 }
 0x38c   :  { %3711 = vmatprep.subr.mxu0 %v4403_v6  ;;  %3725 = vmatprep.mubr.msk.f32.mxu1 %vm4223_vm0, %v4224_v1 }
 0x38e   :  { %3698 = vmatmul.mubr.msk.f32.vlgmr.msra.gmra.mrb[6].mxu0 %vm392_vm2, %v173_v24 }
 0x38f   :  { %3712 = vmatpush3.msra.mxu0 %v4403_v6 }
 0x390   :  { %3942 = vmatpush3.bf16.xpose.msk.msra.mxu1 %vm4308_vm4, %v4314_v26 }
 0x391   :  { %3949 = vmatprep.subr.bf16.mxu1 %v4222_v0 }
 0x397   :  { %3726 = vmatmul.mubr.msk.f32.vlgmr.msra.gmra.mrb[8].mxu1 %vm392_vm2, %v178_v20 }
 0x398   :  { %3952 = vmatpush3.bf16.msk.msra.mxu1 %vm4318_vm6, %v4314_v26  ;;  %3743 = vmatprep.mubr.msk.f32.mxu1 %vm4223_vm0, %v4224_v1 }
 0x455   :  { %v4430_v21 = vpop.f32.mrb[4].mxu1 }
 0x456   :  { %v4432_v7 = vpop.f32.mrb[5].mxu1 }
 0x45d   :  { %v3710_v8 = vpop.f32.mrb[6].mxu1  ;;  %v4434_v9 = vpop.f32.mrb[4].mxu0 }
 0x45e   :  { %997 = vperm.xlu1 %4099, %v3710_v8   ;;  %v981_v10 = vpop.f32.mrb[7].mxu1  ;;  %v4436_v11 = vpop.f32.mrb[5].mxu0 }
 0x45f   :  { %992 = vperm.xlu0 %4105, %v981_v10  }
 0x461   :  { %v911_v12 = vpop.f32.mrb[6].mxu0 }
 0x462   :  { %4106 = vset.pattern.permute.xlu1 %v4232_v29  ;;  %v3699_v13 = vpop.f32.mrb[7].mxu0  ;;  %v1003_v26 = vrot.slane %v911_v12, %v4340_v36  ;;  %v1140_v23 = vrot.slane %v911_v12, %v4342_v37 }
 0x463   :  { %1130 = vperm.xlu1 %4106, %v981_v10  }
 0x467   :  { %1134 = vperm.xlu1 %4106, %v3710_v8  }
 0x46b   :  { %4107 = vset.pattern.permute.xlu1 %v4228_v17 }
 0x4dd   :  { %v998_v14 = vpop.permute.xlu1 %997 }
 0x4de   :  { %v1005_v16 = vadd.f32 %v1003_v26, %v998_v14  ;;  %v993_v18 = vpop.permute.xlu0 %992 }
 0x4df   :  { %v1004_v22 = vadd.f32 %v1003_v26, %v993_v18 }
 0x4e0   :  { %v1009_v28 = vmul.f32 0.2, %v1005_v16  ;;  %vm1007_vm10 = vcmp.gt.f32.partialorder %v1005_v16, 0.0 }
 0x4e1   :  { %v1008_v30 = vmul.f32 0.2, %v1004_v22  ;;  %vm1006_vm15 = vcmp.gt.f32.partialorder %v1004_v22, 0.0 }
 0x4e2   :  { %v1131_v31 = vpop.permute.xlu1 %1130  ;;  %v1011_v32 = vsel %vm1007_vm10, %v1005_v16, %v1009_v28 }
 0x4e3   :  { %v1141_v33 = vadd.f32 %v1140_v23, %v1131_v31  ;;  %v1015_v34 = vsel %vm1013_vm11, %v1011_v32, -1e+30  ;;  %v1010_v35 = vsel %vm1006_vm15, %v1004_v22, %v1008_v30 }
 0x4e4   :  { %v1021_v38 = vsel %vm1020_vm12, %v1015_v34, -inf  ;;  %v1014_v39 = vsel %vm4807_vm3, %v1010_v35, -1e+30 }
 0x4e5   :  { %v1145_v40 = vmul.f32 0.2, %v1141_v33  ;;  %1022 = vmax.xlane.f32.xlu0 %v1021_v38  ;;  %v1017_v41 = vsel %vm1016_vm5, %v1014_v39, -inf  ;;  %vm1143_vm8 = vcmp.gt.f32.partialorder %v1141_v33, 0.0 }
 0x4e6   :  { %v1135_v43 = vpop.permute.xlu1 %1134  ;;  %1018 = vmax.xlane.f32.xlu1 %v1017_v41 }
 0x4e7   :  { %v1142_v44 = vadd.f32 %v1140_v23, %v1135_v43  ;;  %v1147_v45 = vsel %vm1143_vm8, %v1141_v33, %v1145_v40 }
 0x4e8   :  { %v1149_v46 = vsel %vm4807_vm3, %v1147_v45, -1e+30  ;;  %v179_v45 = vld [vmem:[%s3419_s28] sm:$0xff] }
 0x4e9   :  { %v1146_v47 = vmul.f32 0.2, %v1142_v44  ;;  %v1151_v48 = vsel %vm1016_vm5, %v1149_v46, -inf  ;;  %vm1144_vm10 = vcmp.gt.f32.partialorder %v1142_v44, 0.0 }
 0x4ea   :  { %1152 = vmax.xlane.f32.xlu1 %v1151_v48 }
 0x4eb   :  { %v1148_v50 = vsel %vm1144_vm10, %v1142_v44, %v1146_v47 }
 0x4ec   :  { %v1150_v51 = vsel %vm1013_vm11, %v1148_v50, -1e+30 }
 0x4ed   :  { %v1154_v53 = vsel %vm1020_vm12, %v1150_v51, -inf }
 0x4ee   :  { %1155 = vmax.xlane.f32.xlu1 %v1154_v53  ;;  %v182_v53 = vld [vmem:[%s3419_s28 + $0x18] sm:$0xff] }
 0x4fb   :  { %1179 = vrot.lane.b32.xlu0 %v4403_v6, %s4234_s4 }
 0x572   :  { %v1023_v54 = vpop.xlane.xlu0 %1022 }
 0x573   :  { %v1025_v55 = vsub.f32 %v1015_v34, %v1023_v54  ;;  %v1019_v56 = vpop.xlane.xlu1 %1018 }
 0x574   :  { %v1024_v57 = vsub.f32 %v1014_v39, %v1019_v56 }
 0x575   :  { %v1028_v58 = vmul.f32 1.442695, %v1025_v55  ;;  %v1344_v55 = vpop.f32.mrb[8].mxu1 }
 0x576   :  { %v1026_v59 = vmul.f32 1.442695, %v1024_v57  ;;  %v1180_v60 = vpop.permute.xlu0 %1179  ;;  %v3727_v56 = vpop.f32.mrb[9].mxu1 }
 0x577   :  { %4133 = vpow2.f32 %v1028_v58  ;;  %3716 = vmatprep.subr.mxu0 %v1180_v60  ;;  %v1153_v61 = vpop.xlane.xlu1 %1152 }
 0x578   :  { %4135 = vpow2.f32 %v1026_v59  ;;  %v1157_v62 = vsub.f32 %v1149_v46, %v1153_v61  ;;  %v180_v46 = vld [vmem:[%s3419_s28 + $0x8] sm:$0xff] }
 0x579   :  { %v3944_v48 = vpack.c.bf16 %v180_v46, %v179_v45 }
 0x57a   :  { %v1159_v63 = vmul.f32 1.442695, %v1157_v62 }
 0x57b   :  { %v1156_v2 = vpop.xlane.xlu1 %1155 }
 0x57c   :  { %4137 = vpow2.f32 %v1159_v63  ;;  %v1158_v3 = vsub.f32 %v1150_v51, %v1156_v2  ;;  %v181_v51 = vld [vmem:[%s3419_s28 + $0x10] sm:$0xff]  ;;  %v161_v63 = vld [vmem:[%s3409_s2] sm:$0xff]  ;;  %s3428_s28 = sld [smem:[%s4806_s0 + %s4248_s25]]  }
 0x57d   :  { %v3947_v54 = vpack.c.bf16 %v182_v53, %v181_v51  ;;  %v186_v51 = vld [vmem:[%s3420_s8 + $0x18] sm:$0xff] }
 0x57e   :  { %v1161_v4 = vmul.f32 1.442695, %v1158_v3 }
 0x580   :  { %4139 = vpow2.f32 %v1161_v4  ;;  %v1528_v4 = vrot.slane %v1344_v55, %v4342_v37 }
 0x581   :  { %v4134_v5 = vpop.eup %4133 }
 0x582   :  { %v4136_v24 = vpop.eup %4135  ;;  %v1031_v20 = vsel %vm1013_vm11, %v4134_v5, 0.0 }
 0x583   :  { %v1035_v8 = vsel %vm1020_vm12, %v1031_v20, 0.0  ;;  %v1030_v10 = vsel %vm4807_vm3, %v4136_v24, 0.0 }
 0x584   :  { %1036 = vadd.xlane.f32.xlu1 %v1035_v8  ;;  %v1032_v13 = vsel %vm1016_vm5, %v1030_v10, 0.0 }
 0x586   :  { %v4138_v12 = vpop.eup %4137 }
 0x587   :  { %v1163_v26 = vsel %vm4807_vm3, %v4138_v12, 0.0 }
 0x588   :  { %1033 = vadd.xlane.f32.xlu1 %v1032_v13  ;;  %v1165_v16 = vsel %vm1016_vm5, %v1163_v26, 0.0 }
 0x58a   :  { %v4140_v14 = vpop.eup %4139 }
 0x58b   :  { %v1164_v18 = vsel %vm1013_vm11, %v4140_v14, 0.0 }
 0x58c   :  { %1166 = vadd.xlane.f32.xlu1 %v1165_v16  ;;  %v1168_v22 = vsel %vm1020_vm12, %v1164_v18, 0.0  ;;  %v827_v16 = vmax.f32 %v4432_v7, 0.0 }
 0x590   :  { %1169 = vadd.xlane.f32.xlu1 %v1168_v22 }
 0x611   :  { %v1037_v23 = vpop.xlane.xlu1 %1036 }
 0x612   :  { %vm1039_vm15 = vcmp.gt.f32.partialorder %v1037_v23, 0.0 }
 0x613   :  { %v1041_v28 = vsel %vm1039_vm15, %v1037_v23, 1.0  ;;  %vm1431_vm15 = vcmp.gt.f32.partialorder %v161_v63, 0.0 }
 0x614   :  { %4141 = vrcp.f32 %v1041_v28 }
 0x615   :  { %v1034_v30 = vpop.xlane.xlu1 %1033 }
 0x616   :  { %vm1038_vm8 = vcmp.gt.f32.partialorder %v1034_v30, 0.0 }
 0x617   :  { %v1040_v31 = vsel %vm1038_vm8, %v1034_v30, 1.0 }
 0x618   :  { %4143 = vrcp.f32 %v1040_v31 }
 0x619   :  { %v1167_v32 = vpop.xlane.xlu1 %1166 }
 0x61a   :  { %vm1171_vm10 = vcmp.gt.f32.partialorder %v1167_v32, 0.0 }
 0x61b   :  { %v1173_v33 = vsel %vm1171_vm10, %v1167_v32, 1.0 }
 0x61c   :  { %4145 = vrcp.f32 %v1173_v33 }
 0x61d   :  { %v1170_v34 = vpop.xlane.xlu1 %1169 }
 0x61e   :  { %vm1172_vm3 = vcmp.gt.f32.partialorder %v1170_v34, 0.0  ;;  %v4142_v38 = vpop.eup %4141 }
 0x61f   :  { %v1174_v35 = vsel %vm1172_vm3, %v1170_v34, 1.0  ;;  %v1045_v41 = vmul.f32 %v4142_v38, %v1031_v20 }
 0x620   :  { %4147 = vrcp.f32 %v1174_v35 }
 0x622   :  { %v4144_v39 = vpop.eup %4143 }
 0x623   :  { %v1044_v40 = vmul.f32 %v4144_v39, %v1030_v10 }
 0x625   :  { %3713 = vmatprep.mubr.msk.f32.mxu0 %vm1016_vm5, %v1044_v40 }
 0x626   :  { %v4146_v43 = vpop.eup %4145  ;;  %3714 = vmatmul.mubr.msk.f32.vlgmr.msra.gmra.mrb[8].mxu0 %vm1016_vm5, %v1045_v41  ;;  %v183_v41 = vld [vmem:[%s3420_s8] sm:$0xff] }
 0x627   :  { %3717 = vmatpush3.msra.mxu0 %v1180_v60  ;;  %v1177_v44 = vmul.f32 %v4146_v43, %v1163_v26  ;;  %v184_v43 = vld [vmem:[%s3420_s8 + $0x8] sm:$0xff] }
 0x628   :  { %3943 = vmatprep.subr.bf16.mxu0 %v4222_v0 }
 0x629   :  { %3718 = vmatprep.mubr.msk.f32.mxu0 %vm1016_vm5, %v1177_v44  ;;  %v3957_v44 = vpack.c.bf16 %v184_v43, %v183_v41 }
 0x62a   :  { %v4148_v47 = vpop.eup %4147 }
 0x62b   :  { %v1178_v50 = vmul.f32 %v4148_v47, %v1164_v18  ;;  %v828_v18 = vmax.f32 %v4430_v21, 0.0  ;;  %3958 = vmatprep.subr.bf16.mxu1 %v3957_v44 }
 0x62d   :  { %3719 = vmatmul.mubr.msk.f32.vlgmr.msra.gmra.mrb[10].mxu0 %vm1016_vm5, %v1178_v50  ;;  %v185_v50 = vld [vmem:[%s3420_s8 + $0x10] sm:$0xff] }
 0x62e   :  { %3945 = vmatpush3.bf16.msra.mxu0 %v3944_v48  ;;  %3736 = vmatprep.mubr.msk.f32.mxu0 %vm4223_vm0, %v4224_v1 }
 0x62f   :  { %3946 = vmatprep.subr.bf16.mxu0 %v4222_v0 }
 0x632   :  { %3948 = vmatpush3.bf16.msra.mxu0 %v3947_v54 }
 0x633   :  { %3953 = vmatprep.subr.bf16.mxu0 %v4222_v0 }
 0x635   :  { %3737 = vmatmul.mubr.msk.f32.vlgmr.msra.gmra.mrb[12].mxu0 %vm392_vm2, %v4403_v6 }
 0x636   :  { %3956 = vmatpush3.bf16.msk.msra.mxu0 %vm4318_vm6, %v4382_v49  ;;  %3750 = vmatprep.mubr.msk.f32.mxu0 %vm4223_vm0, %v4224_v1  ;;  %v1426_v49 = vrot.slane %v1344_v55, %v4340_v36  ;;  %v687_v55 = vmax.f32 %v4436_v11, 0.0  ;;  %v688_v11 = vmax.f32 %v4434_v9, 0.0 }
 0x637   :  { %3966 = vmatprep.subr.bf16.mxu0 %v3957_v44 }
 0x6f9   :  { %v4496_v57 = vpop.f32.mrb[8].mxu0 }
 0x6fa   :  { %v4498_v58 = vpop.f32.mrb[9].mxu0  ;;  %v1128_v9 = vmax.f32 %v4496_v57, 0.0 }
 0x700   :  { %v3720_v59 = vpop.f32.mrb[10].mxu0 }
 0x701   :  { %v1254_v60 = vpop.f32.mrb[11].mxu0  ;;  %v1264_v22 = vmax.f32 %v3720_v59, 0.0  ;;  %v3961_v59 = vpack.c.bf16 %v186_v51, %v185_v50 }
 0x702   :  { %v1263_v40 = vmax.f32 %v1254_v60, 0.0 }
 0x708   :  { %v1414_v61 = vpop.f32.mrb[12].mxu0 }
 0x709   :  { %1420 = vperm.xlu1 %4107, %v1414_v61   ;;  %v3738_v62 = vpop.f32.mrb[13].mxu0 }
 0x70d   :  { %4108 = vset.pattern.permute.xlu1 %v4232_v29 }
 0x70e   :  { %1522 = vperm.xlu1 %4108, %v1414_v61  }
 0x788   :  { %v1421_v6 = vpop.permute.xlu1 %1420 }
 0x789   :  { %v1427_v2 = vadd.f32 %v1426_v49, %v1421_v6  ;;  %v1127_v49 = vmax.f32 %v4498_v58, 0.0 }
 0x78b   :  { %v1429_v3 = vmul.f32 0.2, %v1427_v2  ;;  %vm1428_vm3 = vcmp.gt.f32.partialorder %v1427_v2, 0.0 }
 0x78d   :  { %v1523_v5 = vpop.permute.xlu1 %1522  ;;  %v1430_v24 = vsel %vm1428_vm3, %v1427_v2, %v1429_v3 }
 0x78e   :  { %v1529_v20 = vadd.f32 %v1528_v4, %v1523_v5  ;;  %v1432_v8 = vsel %vm1431_vm15, %v1430_v24, -1e+30 }
 0x78f   :  { %v1433_v10 = vsel %vm573_vm9, %v1432_v8, -inf }
 0x790   :  { %v1531_v12 = vmul.f32 0.2, %v1529_v20  ;;  %1434 = vmax.xlane.f32.xlu0 %v1433_v10  ;;  %vm1530_vm8 = vcmp.gt.f32.partialorder %v1529_v20, 0.0 }
 0x792   :  { %v1532_v13 = vsel %vm1530_vm8, %v1529_v20, %v1531_v12  ;;  %vm1729_vm8 = vcmask 253952  }
 0x793   :  { %v1533_v26 = vsel %vm1431_vm15, %v1532_v13, -1e+30 }
 0x794   :  { %v1534_v14 = vsel %vm573_vm9, %v1533_v26, -inf }
 0x795   :  { %1535 = vmax.xlane.f32.xlu1 %v1534_v14 }
 0x7a6   :  { %831 = vrot.lane.b32.xlu1 %v827_v16, %s4242_s3 }
 0x7aa   :  { %833 = vrot.lane.b32.xlu1 %v828_v18, %s4242_s3 }
 0x7ae   :  { %1269 = vrot.lane.b32.xlu1 %v1264_v22, %s4242_s3 }
 0x81d   :  { %v1435_v23 = vpop.xlane.xlu0 %1434 }
 0x81e   :  { %v1436_v28 = vsub.f32 %v1432_v8, %v1435_v23  ;;  %v3473_v8 = vld [vmem:[%s3421_s11] ss:$0 sm:$0xff]  ;;  %s4251_s11 = smov 25  }
 0x81f   :  { %s4656_s14 = sld [smem:[%s4806_s0 + %s4251_s11]]  }
 0x820   :  { %v1437_v30 = vmul.f32 1.442695, %v1436_v28 }
 0x822   :  { %4149 = vpow2.f32 %v1437_v30  ;;  %v1536_v31 = vpop.xlane.xlu1 %1535 }
 0x823   :  { %v1537_v32 = vsub.f32 %v1533_v26, %v1536_v31 }
 0x825   :  { %v1538_v33 = vmul.f32 1.442695, %v1537_v32 }
 0x826   :  { %v832_v54 = vpop.permute.xlu1 %831 }
 0x827   :  { %4151 = vpow2.f32 %v1538_v33  ;;  %v4525_v60 = vsel %vm231_vm1, %v687_v55, %v832_v54 }
 0x82a   :  { %v834_v6 = vpop.permute.xlu1 %833 }
 0x82b   :  { %v4539_v3 = vsel %vm231_vm1, %v688_v11, %v834_v6 }
 0x82c   :  { %v4150_v34 = vpop.eup %4149 }
 0x82d   :  { %v1439_v7 = vsel %vm1431_vm15, %v4150_v34, 0.0 }
 0x82e   :  { %v1440_v35 = vsel %vm573_vm9, %v1439_v7, 0.0  ;;  %v1270_v58 = vpop.permute.xlu1 %1269 }
 0x82f   :  { %1441 = vadd.xlane.f32.xlu0 %v1440_v35  ;;  %v4546_v4 = vsel %vm231_vm1, %v1128_v9, %v1270_v58  ;;  %v194_v58 = vld [vmem:[%s3425_s19] sm:$0xff]  ;;  %v195_v9 = vld [vmem:[%s3425_s19 + $0x8] sm:$0xff] }
 0x831   :  { %v4152_v21 = vpop.eup %4151 }
 0x832   :  { %v1540_v38 = vsel %vm1431_vm15, %v4152_v21, 0.0  ;;  %vm1717_vm15 = vcmask 257024  }
 0x833   :  { %v1541_v39 = vsel %vm573_vm9, %v1540_v38, 0.0 }
 0x834   :  { %1542 = vadd.xlane.f32.xlu0 %v1541_v39 }
 0x84a   :  { %1267 = vrot.lane.b32.xlu0 %v1263_v40, %s4242_s3 }
 0x8bc   :  { %v1442_v45 = vpop.xlane.xlu0 %1441 }
 0x8bd   :  { %vm1443_vm10 = vcmp.gt.f32.partialorder %v1442_v45, 0.0 }
 0x8be   :  { %v1444_v46 = vsel %vm1443_vm10, %v1442_v45, 1.0  ;;  %vm4809_vm10 = vcmask 7168  }
 0x8bf   :  { %4153 = vrcp.f32 %v1444_v46 }
 0x8c1   :  { %v1543_v47 = vpop.xlane.xlu0 %1542 }
 0x8c2   :  { %vm1544_vm3 = vcmp.gt.f32.partialorder %v1543_v47, 0.0 }
 0x8c3   :  { %v1545_v48 = vsel %vm1544_vm3, %v1543_v47, 1.0  ;;  %vm4808_vm3 = vcmask 8192  }
 0x8c4   :  { %4155 = vrcp.f32 %v1545_v48  ;;  %v188_v48 = vld [vmem:[%s3422_s15] sm:$0x1]  ;;  %s4252_s15 = smov 21  }
 0x8c5   :  { %v1268_v62 = vpop.permute.xlu0 %1267  ;;  %s3426_s18 = sld [smem:[%s4806_s0 + %s4252_s15]]   ;;  %s4259_s15 = smov 32  }
 0x8c6   :  { %v4533_v2 = vsel %vm231_vm1, %v1127_v49, %v1268_v62 }
 0x8c9   :  { %v4154_v53 = vpop.eup %4153 }
 0x8ca   :  { %v1446_v56 = vmul.f32 %v4154_v53, %v1439_v7 }
 0x8cc   :  { %3744 = vmatmul.mubr.msk.f32.vlgmr.msra.gmra.mrb[10].mxu1 %vm573_vm9, %v1446_v56 }
 0x8cd   :  { %3960 = vmatpush3.bf16.msra.mxu1 %v3957_v44  ;;  %3761 = vmatprep.mubr.msk.f32.mxu1 %vm392_vm2, %v4525_v60 }
 0x8ce   :  { %v4156_v61 = vpop.eup %4155  ;;  %3962 = vmatprep.subr.bf16.mxu1 %v3961_v59 }
 0x8cf   :  { %v1547_v63 = vmul.f32 %v4156_v61, %v1540_v38 }
 0x8d1   :  { %3964 = vmatpush3.bf16.msra.mxu1 %v3961_v59  ;;  %3751 = vmatmul.mubr.msk.f32.vlgmr.msra.gmra.mrb[14].mxu0 %vm573_vm9, %v1547_v63 }
 0x8d2   :  { %3968 = vmatpush3.bf16.msra.mxu0 %v3957_v44  ;;  %3772 = vmatprep.mubr.msk.f32.mxu0 %vm392_vm2, %v4533_v2 }
 0x8d3   :  { %3970 = vmatprep.subr.bf16.mxu0 %v3961_v59 }
 0x8d4   :  { %3762 = vmatmul.mubr.msk.f32.vlgmr.msra.gmra.mrb[12].mxu1 %vm392_vm2, %v4539_v3 }
 0x8d6   :  { %3972 = vmatpush3.bf16.msra.mxu0 %v3961_v59 }
 0x8d7   :  { %3981 = vmatprep.subr.bf16.mxu0 %v4222_v0 }
 0x8d9   :  { %3773 = vmatmul.mubr.msk.f32.vlgmr.msra.gmra.mrb[16].mxu0 %vm392_vm2, %v4546_v4 }
 0x8da   :  { %3794 = vmatprep.mubr.msk.f32.mxu0 %vm4223_vm0, %v4224_v1 }
 0x99f   :  { %v4556_v5 = vpop.f32.mrb[10].mxu1 }
 0x9a0   :  { %v3745_v57 = vpop.f32.mrb[11].mxu1 }
 0x9a1   :  { %v3982_v57 = vpack.c.bf16 %v195_v9, %v194_v58 }
 0x9a3   :  { %3983 = vmatpush3.bf16.msra.mxu0 %v3982_v57 }
 0x9a4   :  { %v4558_v24 = vpop.f32.mrb[14].mxu0  ;;  %3984 = vmatprep.subr.bf16.mxu0 %v4222_v0 }
 0x9a5   :  { %v3752_v20 = vpop.f32.mrb[15].mxu0 }
 0x9a7   :  { %v3763_v10 = vpop.f32.mrb[12].mxu1 }
 0x9a8   :  { %v1711_v12 = vadd.f32 %v3763_v10, %v3473_v8  ;;  %v1705_v13 = vpop.f32.mrb[13].mxu1 }
 0x9a9   :  { %v1706_v26 = vadd.f32 %v3473_v8, %v1705_v13 }
 0x9aa   :  { %4157 = vtanh.f32 %v1711_v12 }
 0x9ab   :  { %4159 = vtanh.f32 %v1706_v26  ;;  %v196_v26 = vld [vmem:[%s3425_s19 + $0x10] sm:$0xff] }
 0x9ac   :  { %v3774_v14 = vpop.f32.mrb[16].mxu0 }
 0x9ad   :  { %v1811_v16 = vadd.f32 %v3774_v14, %v3473_v8  ;;  %v1805_v18 = vpop.f32.mrb[17].mxu0  ;;  %v197_v14 = vld [vmem:[%s3425_s19 + $0x18] sm:$0xff]  ;;  %s4253_s19 = smov 24  }
 0x9ae   :  { %v1806_v22 = vadd.f32 %v3473_v8, %v1805_v18  ;;  %v1621_v18 = vmax.f32 %v4558_v24, 0.0  ;;  %s3429_s22 = sld [smem:[%s4806_s0 + %s4253_s19]]   ;;  %s4260_s19 = smov 35  }
 0x9af   :  { %4161 = vtanh.f32 %v1811_v16  ;;  %v3985_v16 = vpack.c.bf16 %v197_v14, %v196_v26 }
 0x9b0   :  { %4163 = vtanh.f32 %v1806_v22 }
 0x9b1   :  { %3986 = vmatpush3.bf16.msra.mxu0 %v3985_v16 }
 0x9b4   :  { %v4158_v23 = vpop.eup %4157 }
 0x9b5   :  { %v4160_v28 = vpop.eup %4159  ;;  %v1718_v30 = vsel %vm1717_vm15, %v4158_v23, 0.0  ;;  %v1520_v23 = vmax.f32 %v4556_v5, 0.0  ;;  %v200_v5 = vld [vmem:[%s3428_s28] sm:$0xff] }
 0x9b6   :  { %v1716_v31 = vsel %vm392_vm2, %v4160_v28, 0.0 }
 0x9b7   :  { %v1719_v32 = vadd.f32 %v1718_v30, %v1716_v31  ;;  %v189_v31 = vld [vmem:[%s3423_s23] sm:$0xff] }
 0x9b9   :  { %v4162_v33 = vpop.eup %4161  ;;  %v1720_v34 = vrot.slane %v1719_v32, 4 }
 0x9ba   :  { %v4164_v7 = vpop.eup %4163  ;;  %v1817_v35 = vsel %vm1717_vm15, %v4162_v33, 0.0 }
 0x9bb   :  { %v1721_v21 = vadd.f32 %v1720_v34, %v1719_v32  ;;  %v1816_v38 = vsel %vm392_vm2, %v4164_v7, 0.0  ;;  %v190_v32 = vld [vmem:[%s3423_s23 + $0x8] sm:$0xff]  ;;  %v191_v7 = vld [vmem:[%s3423_s23 + $0x10] sm:$0xff] }
 0x9bc   :  { %v1818_v39 = vadd.f32 %v1817_v35, %v1816_v38  ;;  %v3973_v33 = vpack.c.bf16 %v190_v32, %v189_v31  ;;  %v192_v35 = vld [vmem:[%s3423_s23 + $0x18] sm:$0xff]  ;;  %v201_v38 = vld [vmem:[%s3428_s28 + $0x8] sm:$0xff]  ;;  %s4254_s23 = smov 28  }
 0x9bd   :  { %v1722_v40 = vrot.slane %v1721_v21, 2  ;;  %s3431_s27 = sld [smem:[%s4806_s0 + %s4254_s23]]   ;;  %s4261_s23 = smov 34  }
 0x9be   :  { %v1819_v41 = vrot.slane %v1818_v39, 4  ;;  %3974 = vmatprep.subr.bf16.mxu1 %v3973_v33 }
 0x9bf   :  { %v1723_v43 = vadd.f32 %v1722_v40, %v1721_v21  ;;  %3976 = vmatpush3.bf16.msra.mxu1 %v3973_v33  ;;  %v3977_v21 = vpack.c.bf16 %v192_v35, %v191_v7 }
 0x9c0   :  { %v1820_v44 = vadd.f32 %v1819_v41, %v1818_v39  ;;  %v3991_v39 = vpack.c.bf16 %v201_v38, %v200_v5 }
 0x9c1   :  { %v1724_v45 = vrot.slane %v1723_v43, 1  ;;  %3978 = vmatprep.subr.bf16.mxu1 %v3977_v21 }
 0x9c2   :  { %v1821_v46 = vrot.slane %v1820_v44, 2  ;;  %3992 = vmatprep.subr.bf16.mxu0 %v3991_v39 }
 0x9c3   :  { %v1725_v47 = vadd.f32 %v1724_v45, %v1723_v43  ;;  %3980 = vmatpush3.bf16.msra.mxu1 %v3977_v21 }
 0x9c4   :  { %v1822_v50 = vadd.f32 %v1821_v46, %v1820_v44  ;;  %3987 = vmatprep.subr.bf16.mxu1 %v4222_v0 }
 0x9c5   :  { %v1727_v51 = vmul.f32 0.083333336, %v1725_v47 }
 0x9c6   :  { %v1823_v53 = vrot.slane %v1822_v50, 1 }
 0x9c7   :  { %v1728_v54 = vmul.f32 %v1727_v51, %v188_v48 }
 0x9c8   :  { %v1824_v55 = vadd.f32 %v1823_v53, %v1822_v50  ;;  %v202_v53 = vld [vmem:[%s3428_s28 + $0x10] sm:$0xff] }
 0x9c9   :  { %v1730_v56 = vsel %vm1729_vm8, %v1728_v54, 0.0 }
 0x9ca   :  { %1731 = vadd.xlane.f32.xlu0 %v1730_v56  ;;  %v1825_v59 = vmul.f32 0.083333336, %v1824_v55 }
 0x9cc   :  { %v1826_v61 = vmul.f32 %v1825_v59, %v188_v48 }
 0x9ce   :  { %v1827_v62 = vsel %vm1729_vm8, %v1826_v61, 0.0  ;;  %v199_v61 = vld [vmem:[%s3427_s10] sm:$0x3] }
 0x9cf   :  { %1828 = vadd.xlane.f32.xlu1 %v1827_v62 }
 0xa57   :  { %v1732_v49 = vpop.xlane.xlu0 %1731 }
 0xa5c   :  { %v1829_v6 = vpop.xlane.xlu1 %1828 }
 0xa5d   :  { %v1831_v63 = vsel %vm4809_vm10, %v1732_v49, %v1829_v6 }
 0xa5e   :  { %v1833_v11 = vsel %vm4808_vm3, %v1831_v63, -inf }
 0xa5f   :  { %1834 = vmax.xlane.f32.xlu0 %v1833_v11 }
 0xaec   :  { %v1835_v20 = vpop.xlane.xlu0 %1834 }
 0xaed   :  { %v1836_v8 = vsub.f32 %v1831_v63, %v1835_v20 }
 0xaef   :  { %v1837_v10 = vmul.f32 1.442695, %v1836_v8 }
 0xaf1   :  { %4165 = vpow2.f32 %v1837_v10 }
 0xafb   :  { %v4166_v12 = vpop.eup %4165 }
 0xafc   :  { %v1839_v13 = vsel %vm4808_vm3, %v4166_v12, 0.0 }
 0xafd   :  { %1840 = vadd.xlane.f32.xlu0 %v1839_v13 }
 0xb13   :  { %1623 = vrot.lane.b32.xlu0 %v1621_v18, %s4242_s3 }
 0xb8a   :  { %v1841_v22 = vpop.xlane.xlu0 %1840 }
 0xb8b   :  { %4167 = vrcp.f32 %v1841_v22 }
 0xb8e   :  { %v1624_v28 = vpop.permute.xlu0 %1623 }
 0xb8f   :  { %v1626_v30 = vsel %vm231_vm1, %v1520_v23, %v1624_v28 }
 0xb90   :  { %3795 = vmatmul.mubr.msk.f32.vlgmr.msra.gmra.mrb[18].mxu0 %vm392_vm2, %v1626_v30 }
 0xb91   :  { %3994 = vmatpush3.bf16.msra.mxu0 %v3991_v39 }
 0xb95   :  { %v4168_v24 = vpop.eup %4167 }
 0xb96   :  { %v1843_v34 = vmul.f32 %v4168_v24, %v4166_v12 }
 0xb98   :  { %1850 = vrot.lane.b32.xlu1 %v1843_v34, %s4247_s24  ;;  %4047 = vpush %v1843_v34 }
 0xbc9   :  { %s4048_s29 = spop %4047 }
 0xbca   :  { %v1846_v41 = vstv %s4048_s29 }
 0xbcb   :  { %v1848_v44 = vmul.f32 %v1846_v41, %v4525_v60  ;;  %v1849_v0 = vmul.f32 %v1846_v41, %v4539_v3  ;;  %v203_v60 = vld [vmem:[%s3428_s28 + $0x18] sm:$0xff] }
 0xbcc   :  { %v3995_v54 = vpack.c.bf16 %v203_v60, %v202_v53 }
 0xbce   :  { %3996 = vmatprep.subr.bf16.mxu0 %v3995_v54 }
 0xbcf   :  { %3998 = vmatpush3.bf16.msra.mxu0 %v3995_v54 }
 0xc0a   :  { %v1851_v40 = vpop.permute.xlu1 %1850 }
 0xc0b   :  { %4049 = vpush %v1851_v40 }
 0xc3c   :  { %s4050_s30 = spop %4049 }
 0xc3d   :  { %v1853_v43 = vstv %s4050_s30 }
 0xc3e   :  { %v1855_v45 = vmul.f32 %v1853_v43, %v4533_v2  ;;  %v1856_v46 = vmul.f32 %v1853_v43, %v4546_v4  ;;  %v3478_v2 = vld [vmem:[%s3424_s6] ss:$0 sm:$0xff]  ;;  %s3433_s6 = sld [smem:[%s4806_s0 + %s4256_s1]]   ;;  %s4263_s1 = smov 37  }
 0xc40   :  { %v1857_v47 = vadd.f32 %v1855_v45, %v1848_v44  ;;  %v1858_v48 = vadd.f32 %v1856_v46, %v1849_v0 }
 0xc42   :  { %3783 = vmatprep.mubr.msk.f32.mxu1 %vm392_vm2, %v1857_v47 }
 0xc43   :  { %3784 = vmatmul.mubr.msk.f32.vlgmr.msra.gmra.mrb[14].mxu1 %vm392_vm2, %v1858_v48 }
 0xc44   :  { %3801 = vmatprep.mubr.msk.f32.mxu1 %vm4223_vm0, %v4224_v1 }
 0xc63   :  { %v4597_v50 = vpop.f32.mrb[18].mxu0 }
 0xc64   :  { %v3796_v51 = vpop.f32.mrb[19].mxu0 }
 0xd16   :  { %v3785_v3 = vpop.f32.mrb[14].mxu1 }
 0xd17   :  { %v4602_v4 = vadd.f32 %v3785_v3, %v3478_v2  ;;  %v1937_v55 = vpop.f32.mrb[15].mxu1 }
 0xd18   :  { %v4604_v56 = vadd.f32 %v3478_v2, %v1937_v55 }
 0xd1a   :  { %v3988_v59 = vpack.c.bf16 %v4602_v4, %v4604_v56  ;;  %3812 = vmatprep.mubr.msk.f32.mxu0 %vm392_vm2, %v4604_v56 }
 0xd1b   :  { %3813 = vmatmul.mubr.msk.f32.vlgmr.msra.gmra.mrb[20].mxu0 %vm392_vm2, %v4602_v4 }
 0xd1c   :  { %3990 = vmatpush3.bf16.xpose.msk.msra.mxu1 %vm4308_vm4, %v3988_v59 }
 0xd1d   :  { %4001 = vmatprep.subr.msk.bf16.mxu1 %vm4318_vm6, %v3988_v59 }
 0xd23   :  { %3802 = vmatmul.mubr.msk.f32.vlgmr.msra.gmra.mrb[16].mxu1 %vm392_vm2, %v199_v61 }
 0xd24   :  { %4004 = vmatpush3.bf16.msk.msra.mxu1 %vm4318_vm6, %v3988_v59 }
 0xd25   :  { %3829 = vmatprep.subr.mxu1 %v4224_v1 }
 0xdee   :  { %v3814_v62 = vpop.f32.mrb[20].mxu0 }
 0xdef   :  { %v2170_v49 = vpop.f32.mrb[21].mxu0 }
 0xdf0   :  { %2181 = vperm.xlu0 %4105, %v2170_v49   ;;  %2317 = vperm.xlu1 %4108, %v2170_v49  }
 0xdf4   :  { %2321 = vperm.xlu1 %4108, %v3814_v62  }
 0xdf6   :  { %v2100_v6 = vpop.f32.mrb[16].mxu1 }
 0xdf7   :  { %v3803_v63 = vpop.f32.mrb[17].mxu1  ;;  %v2192_v25 = vrot.slane %v2100_v6, %v4340_v36  ;;  %v2327_v11 = vrot.slane %v2100_v6, %v4342_v37  ;;  %v4110_v6 = vpack.i.bf16 %v4602_v4, %v4604_v56 }
 0xdf8   :  { %4109 = vset.pattern.permute.xlu1 %v4228_v17 }
 0xdf9   :  { %2186 = vperm.xlu1 %4109, %v3814_v62  }
 0xe6f   :  { %v2182_v58 = vpop.permute.xlu0 %2181  ;;  %v2318_v9 = vpop.permute.xlu1 %2317 }
 0xe70   :  { %v2193_v57 = vadd.f32 %v2192_v25, %v2182_v58  ;;  %v2328_v20 = vadd.f32 %v2327_v11, %v2318_v9 }
 0xe72   :  { %v2197_v8 = vmul.f32 0.2, %v2193_v57  ;;  %v2332_v10 = vmul.f32 0.2, %v2328_v20  ;;  %vm2330_vm4 = vcmp.gt.f32.partialorder %v2328_v20, 0.0  ;;  %vm2195_vm3 = vcmp.gt.f32.partialorder %v2193_v57, 0.0 }
 0xe73   :  { %v2322_v12 = vpop.permute.xlu1 %2321 }
 0xe74   :  { %v2329_v13 = vadd.f32 %v2327_v11, %v2322_v12  ;;  %v2334_v26 = vsel %vm2330_vm4, %v2328_v20, %v2332_v10  ;;  %v2199_v14 = vsel %vm2195_vm3, %v2193_v57, %v2197_v8  ;;  %v206_v11 = vld [vmem:[%s4656_s14 + $0x8] sm:$0xff] }
 0xe75   :  { %v2336_v17 = vsel %vm569_vm7, %v2334_v26, -1e+30  ;;  %v2201_v22 = vsel %vm569_vm7, %v2199_v14, -1e+30 }
 0xe76   :  { %v2333_v16 = vmul.f32 0.2, %v2329_v13  ;;  %v2338_v18 = vsel %vm573_vm9, %v2336_v17, -inf  ;;  %vm2331_vm10 = vcmp.gt.f32.partialorder %v2329_v13, 0.0  ;;  %v2203_v32 = vsel %vm573_vm9, %v2201_v22, -inf }
 0xe77   :  { %2339 = vmax.xlane.f32.xlu0 %v2338_v18  ;;  %v207_v18 = vld [vmem:[%s4656_s14 + $0x10] sm:$0xff] }
 0xe78   :  { %v2187_v23 = vpop.permute.xlu1 %2186  ;;  %v2335_v28 = vsel %vm2331_vm10, %v2329_v13, %v2333_v16 }
 0xe79   :  { %v2194_v30 = vadd.f32 %v2192_v25, %v2187_v23  ;;  %v2337_v31 = vsel %vm570_vm13, %v2335_v28, -1e+30  ;;  %v205_v25 = vld [vmem:[%s4656_s14] sm:$0xff] }
 0xe7a   :  { %v2341_v33 = vsel %vm577_vm14, %v2337_v31, -inf  ;;  %v4011_v10 = vpack.c.bf16 %v206_v11, %v205_v25 }
 0xe7b   :  { %v2198_v24 = vmul.f32 0.2, %v2194_v30  ;;  %2204 = vmax.xlane.f32.xlu0 %v2203_v32  ;;  %2342 = vmax.xlane.f32.xlu1 %v2341_v33  ;;  %vm2196_vm3 = vcmp.gt.f32.partialorder %v2194_v30, 0.0  ;;  %v3481_v32 = vld [vmem:[%s3426_s18] ss:$0 sm:$0xff]  ;;  %s3435_s18 = sld [smem:[%s4806_s0 + %s4259_s15]]  }
 0xe7d   :  { %v2200_v34 = vsel %vm2196_vm3, %v2194_v30, %v2198_v24 }
 0xe7e   :  { %v2202_v7 = vsel %vm570_vm13, %v2200_v34, -1e+30  ;;  %v4678_v34 = vadd.f32 %v3481_v32, %v4597_v50 }
 0xe7f   :  { %v2206_v35 = vsel %vm577_vm14, %v2202_v7, -inf }
 0xe80   :  { %2207 = vmax.xlane.f32.xlu0 %v2206_v35 }
 0xf04   :  { %v2340_v21 = vpop.xlane.xlu0 %2339 }
 0xf05   :  { %v2344_v5 = vsub.f32 %v2336_v17, %v2340_v21 }
 0xf07   :  { %v2346_v38 = vmul.f32 1.442695, %v2344_v5 }
 0xf08   :  { %v2205_v39 = vpop.xlane.xlu0 %2204  ;;  %v2343_v40 = vpop.xlane.xlu1 %2342 }
 0xf09   :  { %4169 = vpow2.f32 %v2346_v38  ;;  %v2209_v41 = vsub.f32 %v2201_v22, %v2205_v39  ;;  %v2345_v43 = vsub.f32 %v2337_v31, %v2343_v40  ;;  %v208_v22 = vld [vmem:[%s4656_s14 + $0x18] sm:$0xff] }
 0xf0a   :  { %v4015_v28 = vpack.c.bf16 %v208_v22, %v207_v18 }
 0xf0b   :  { %v2211_v44 = vmul.f32 1.442695, %v2209_v41  ;;  %v2348_v0 = vmul.f32 1.442695, %v2345_v43 }
 0xf0d   :  { %4171 = vpow2.f32 %v2211_v44  ;;  %v2208_v45 = vpop.xlane.xlu0 %2207 }
 0xf0e   :  { %4173 = vpow2.f32 %v2348_v0  ;;  %v2210_v46 = vsub.f32 %v2202_v7, %v2208_v45 }
 0xf10   :  { %v2213_v47 = vmul.f32 1.442695, %v2210_v46 }
 0xf12   :  { %4175 = vpow2.f32 %v2213_v47 }
 0xf13   :  { %v4170_v48 = vpop.eup %4169 }
 0xf14   :  { %v2350_v51 = vsel %vm569_vm7, %v4170_v48, 0.0 }
 0xf15   :  { %v2352_v53 = vsel %vm573_vm9, %v2350_v51, 0.0 }
 0xf16   :  { %2353 = vadd.xlane.f32.xlu1 %v2352_v53 }
 0xf17   :  { %v4172_v60 = vpop.eup %4171 }
 0xf18   :  { %v4174_v54 = vpop.eup %4173  ;;  %v2215_v55 = vsel %vm569_vm7, %v4172_v60, 0.0 }
 0xf19   :  { %v2351_v2 = vsel %vm570_vm13, %v4174_v54, 0.0  ;;  %v2217_v61 = vsel %vm573_vm9, %v2215_v55, 0.0 }
 0xf1a   :  { %v2355_v3 = vsel %vm577_vm14, %v2351_v2, 0.0 }
 0xf1b   :  { %2356 = vadd.xlane.f32.xlu0 %v2355_v3 }
 0xf1c   :  { %v4176_v59 = vpop.eup %4175 }
 0xf1d   :  { %v2216_v62 = vsel %vm570_vm13, %v4176_v59, 0.0 }
 0xf1e   :  { %v2220_v49 = vsel %vm577_vm14, %v2216_v62, 0.0 }
 0xf1f   :  { %2218 = vadd.xlane.f32.xlu0 %v2217_v61 }
 0xf23   :  { %2221 = vadd.xlane.f32.xlu0 %v2220_v49 }
 0xf27   :  { %4111 = vrot.lane.b32.xlu1 %v4110_v6, %s4234_s4 }
 0xfa3   :  { %v2354_v42 = vpop.xlane.xlu1 %2353 }
 0xfa4   :  { %vm2358_vm7 = vcmp.gt.f32.partialorder %v2354_v42, 0.0 }
 0xfa5   :  { %v2360_v52 = vsel %vm2358_vm7, %v2354_v42, 1.0 }
 0xfa6   :  { %4177 = vrcp.f32 %v2360_v52 }
 0xfa7   :  { %v4112_v63 = vpop.permute.xlu1 %4111 }
 0xfa8   :  { %v2357_v58 = vpop.xlane.xlu0 %2356  ;;  %v4114_v9 = vunpack.i.h.bf16 %v4112_v63  ;;  %v4113_v57 = vunpack.i.l.bf16 %v4112_v63 }
 0xfa9   :  { %vm2359_vm13 = vcmp.gt.f32.partialorder %v2357_v58, 0.0 }
 0xfaa   :  { %v2361_v20 = vsel %vm2359_vm13, %v2357_v58, 1.0  ;;  %v4005_v8 = vpack.c.bf16 %v4114_v9, %v4113_v57 }
 0xfab   :  { %4179 = vrcp.f32 %v2361_v20 }
 0xfac   :  { %v2219_v12 = vpop.xlane.xlu0 %2218  ;;  %4007 = vmatprep.subr.msk.bf16.mxu0 %vm4318_vm6, %v4005_v8 }
 0xfad   :  { %vm2223_vm14 = vcmp.gt.f32.partialorder %v2219_v12, 0.0  ;;  %4010 = vmatpush3.bf16.msk.msra.mxu0 %vm4318_vm6, %v4005_v8 }
 0xfae   :  { %v2225_v13 = vsel %vm2223_vm14, %v2219_v12, 1.0  ;;  %4012 = vmatprep.subr.bf16.mxu0 %v4011_v10 }
 0xfaf   :  { %4181 = vrcp.f32 %v2225_v13 }
 0xfb0   :  { %v4178_v26 = vpop.eup %4177  ;;  %v2222_v14 = vpop.xlane.xlu0 %2221 }
 0xfb1   :  { %vm2224_vm10 = vcmp.gt.f32.partialorder %v2222_v14, 0.0  ;;  %v2364_v17 = vmul.f32 %v4178_v26, %v2350_v51 }
 0xfb2   :  { %v2226_v16 = vsel %vm2224_vm10, %v2222_v14, 1.0 }
 0xfb3   :  { %4183 = vrcp.f32 %v2226_v16  ;;  %3826 = vmatprep.mubr.msk.f32.mxu0 %vm573_vm9, %v2364_v17 }
 0xfb5   :  { %v4180_v27 = vpop.eup %4179 }
 0xfb6   :  { %v2365_v23 = vmul.f32 %v4180_v27, %v2351_v2 }
 0xfb8   :  { %3827 = vmatmul.mubr.msk.f32.vlgmr.msra.gmra.mrb[22].mxu0 %vm573_vm9, %v2365_v23 }
 0xfb9   :  { %v4182_v30 = vpop.eup %4181  ;;  %4014 = vmatpush3.bf16.msra.mxu0 %v4011_v10  ;;  %3842 = vmatprep.mubr.msk.f32.mxu0 %vm392_vm2, %v4604_v56  ;;  %v204_v56 = vld [vmem:[%s3429_s22] sm:$0x3]  ;;  %s3438_s22 = sld [smem:[%s4806_s0 + %s4260_s19]]  }
 0xfba   :  { %4016 = vmatprep.subr.bf16.mxu0 %v4015_v28  ;;  %v2229_v31 = vmul.f32 %v4182_v30, %v2215_v55 }
 0xfbc   :  { %3819 = vmatprep.mubr.msk.f32.mxu1 %vm573_vm9, %v2229_v31 }
 0xfbd   :  { %v4184_v33 = vpop.eup %4183  ;;  %4018 = vmatpush3.bf16.msra.mxu0 %v4015_v28 }
 0xfbe   :  { %v2230_v24 = vmul.f32 %v4184_v33, %v2216_v62  ;;  %v209_v33 = vld [vmem:[%s3431_s27] sm:$0xff] }
 0xfc0   :  { %3843 = vmatmul.mubr.msk.f32.vlgmr.msra.gmra.mrb[24].mxu0 %vm392_vm2, %v4602_v4  ;;  %3820 = vmatmul.mubr.msk.f32.vlgmr.msra.gmra.mrb[18].mxu1 %vm573_vm9, %v2230_v24  ;;  %vm4814_vm9 = vcmp.gt.f32.partialorder %v4446_v19, 0.0  ;;  %v210_v24 = vld [vmem:[%s3431_s27 + $0x8] sm:$0xff]  ;;  %v211_v19 = vld [vmem:[%s3431_s27 + $0x10] sm:$0xff] }
 0xfc1   :  { %3830 = vmatpush3.xpose.msk.msra.mxu1 %vm392_vm2, %v4678_v34  ;;  %3831 = vmatprep.mubr.msk.f32.mxu1 %vm4223_vm0, %v4224_v1  ;;  %vm4815_vm3 = vmmov %vm4814_vm9 }
 0xfc2   :  { %3845 = vmatprep.subr.mxu1 %v4678_v34  ;;  %vm4816_vm13 = vmmov %vm4815_vm3 }
 0xfc3   :  { %vm4817_vm14 = vmmov %vm4815_vm3 }
 0xfc4   :  { %3832 = vmatmul.mubr.msk.f32.vlgmr.msra.gmra.mrb[20].mxu1 %vm392_vm2, %v204_v56  ;;  %v4019_v56 = vpack.c.bf16 %v210_v24, %v209_v33 }
 0xfc5   :  { %3846 = vmatpush3.msra.mxu1 %v4678_v34 }
 0xfc6   :  { %4020 = vmatprep.subr.bf16.mxu0 %v4019_v56 }
 0xfc7   :  { %4022 = vmatpush3.bf16.msra.mxu0 %v4019_v56 }
0x108b   :  { %v4690_v50 = vpop.f32.mrb[22].mxu0 }
0x108c   :  { %v4692_v7 = vpop.f32.mrb[23].mxu0  ;;  %v2455_v15 = vmax.f32 %v4690_v50, 0.0 }
0x1093   :  { %v3844_v4 = vpop.f32.mrb[24].mxu0  ;;  %v4694_v35 = vpop.f32.mrb[18].mxu1 }
0x1094   :  { %2624 = vperm.xlu1 %4109, %v3844_v4   ;;  %v2608_v21 = vpop.f32.mrb[25].mxu0  ;;  %v4696_v5 = vpop.f32.mrb[19].mxu1  ;;  %v2315_v50 = vmax.f32 %v4694_v35, 0.0 }
0x1095   :  { %2619 = vperm.xlu0 %4105, %v2608_v21  }
0x1097   :  { %v2538_v1 = vpop.f32.mrb[20].mxu1 }
0x1098   :  { %4115 = vset.pattern.permute.xlu1 %v4232_v29  ;;  %v3833_v38 = vpop.f32.mrb[21].mxu1  ;;  %v2630_v39 = vrot.slane %v2538_v1, %v4340_v36  ;;  %v2763_v44 = vrot.slane %v2538_v1, %v4342_v37  ;;  %v2454_v1 = vmax.f32 %v4692_v7, 0.0 }
0x1099   :  { %2753 = vperm.xlu1 %4115, %v2608_v21   ;;  %4116 = vset.pattern.permute.xlu0 %v4232_v29 }
0x109d   :  { %2757 = vperm.xlu1 %4115, %v3844_v4   ;;  %v212_v4 = vld [vmem:[%s3431_s27 + $0x18] sm:$0xff]  ;;  %s3437_s27 = sld [smem:[%s4806_s0 + %s4261_s23]]  }
0x109e   :  { %v4023_v21 = vpack.c.bf16 %v212_v4, %v211_v19 }
0x10a0   :  { %4024 = vmatprep.subr.bf16.mxu0 %v4023_v21 }
0x10a1   :  { %4026 = vmatpush3.bf16.msra.mxu0 %v4023_v21 }
0x1113   :  { %v2625_v40 = vpop.permute.xlu1 %2624 }
0x1114   :  { %v2632_v41 = vadd.f32 %v2630_v39, %v2625_v40  ;;  %v2620_v43 = vpop.permute.xlu0 %2619 }
0x1115   :  { %v2631_v0 = vadd.f32 %v2630_v39, %v2620_v43 }
0x1116   :  { %v2636_v45 = vmul.f32 0.2, %v2632_v41  ;;  %vm2634_vm0 = vcmp.gt.f32.partialorder %v2632_v41, 0.0 }
0x1117   :  { %v2635_v46 = vmul.f32 0.2, %v2631_v0  ;;  %vm2633_vm6 = vcmp.gt.f32.partialorder %v2631_v0, 0.0 }
0x1118   :  { %v2754_v47 = vpop.permute.xlu1 %2753  ;;  %v2638_v48 = vsel %vm2634_vm0, %v2632_v41, %v2636_v45  ;;  %v2314_v45 = vmax.f32 %v4696_v5, 0.0 }
0x1119   :  { %v2764_v51 = vadd.f32 %v2763_v44, %v2754_v47  ;;  %v2640_v53 = vsel %vm1013_vm11, %v2638_v48, -1e+30  ;;  %v2637_v29 = vsel %vm2633_vm6, %v2631_v0, %v2635_v46  ;;  %vm4818_vm6 = vcmask 7168  }
0x111a   :  { %v2644_v60 = vsel %vm1020_vm12, %v2640_v53, -inf  ;;  %v2639_v36 = vsel %vm4814_vm9, %v2637_v29, -1e+30  ;;  %vm4819_vm9 = vcmask 8192  }
0x111b   :  { %v2768_v54 = vmul.f32 0.2, %v2764_v51  ;;  %2645 = vmax.xlane.f32.xlu0 %v2644_v60  ;;  %v2641_v37 = vsel %vm1016_vm5, %v2639_v36, -inf  ;;  %vm2766_vm4 = vcmp.gt.f32.partialorder %v2764_v51, 0.0 }
0x111c   :  { %v2758_v2 = vpop.permute.xlu1 %2757  ;;  %2642 = vmax.xlane.f32.xlu1 %v2641_v37 }
0x111d   :  { %v2765_v3 = vadd.f32 %v2763_v44, %v2758_v2  ;;  %v2770_v55 = vsel %vm2766_vm4, %v2764_v51, %v2768_v54 }
0x111e   :  { %v2772_v59 = vsel %vm4815_vm3, %v2770_v55, -1e+30 }
0x111f   :  { %v2769_v61 = vmul.f32 0.2, %v2765_v3  ;;  %v2774_v62 = vsel %vm1016_vm5, %v2772_v59, -inf  ;;  %vm2767_vm7 = vcmp.gt.f32.partialorder %v2765_v3, 0.0 }
0x1120   :  { %2775 = vmax.xlane.f32.xlu0 %v2774_v62 }
0x1121   :  { %v2771_v49 = vsel %vm2767_vm7, %v2765_v3, %v2769_v61 }
0x1122   :  { %v2773_v6 = vsel %vm1013_vm11, %v2771_v49, -1e+30 }
0x1123   :  { %v2777_v42 = vsel %vm1020_vm12, %v2773_v6, -inf }
0x1124   :  { %2778 = vmax.xlane.f32.xlu1 %v2777_v42 }
0x11a8   :  { %v2646_v52 = vpop.xlane.xlu0 %2645 }
0x11a9   :  { %v2648_v63 = vsub.f32 %v2640_v53, %v2646_v52  ;;  %v2643_v25 = vpop.xlane.xlu1 %2642 }
0x11aa   :  { %v2647_v11 = vsub.f32 %v2639_v36, %v2643_v25 }
0x11ab   :  { %v2651_v58 = vmul.f32 1.442695, %v2648_v63 }
0x11ac   :  { %v2649_v9 = vmul.f32 1.442695, %v2647_v11 }
0x11ad   :  { %4185 = vpow2.f32 %v2651_v58  ;;  %v2776_v57 = vpop.xlane.xlu0 %2775 }
0x11ae   :  { %4187 = vpow2.f32 %v2649_v9  ;;  %v2780_v20 = vsub.f32 %v2772_v59, %v2776_v57 }
0x11b0   :  { %v2782_v8 = vmul.f32 1.442695, %v2780_v20 }
0x11b1   :  { %v2779_v10 = vpop.xlane.xlu1 %2778 }
0x11b2   :  { %4189 = vpow2.f32 %v2782_v8  ;;  %v2781_v12 = vsub.f32 %v2773_v6, %v2779_v10 }
0x11b4   :  { %v2784_v13 = vmul.f32 1.442695, %v2781_v12 }
0x11b6   :  { %4191 = vpow2.f32 %v2784_v13 }
0x11b7   :  { %v4186_v26 = vpop.eup %4185 }
0x11b8   :  { %v4188_v14 = vpop.eup %4187  ;;  %v2654_v17 = vsel %vm1013_vm11, %v4186_v26, 0.0 }
0x11b9   :  { %v2658_v16 = vsel %vm1020_vm12, %v2654_v17, 0.0  ;;  %v2653_v18 = vsel %vm4816_vm13, %v4188_v14, 0.0  ;;  %v214_v14 = vld [vmem:[%s3433_s6] sm:$0x1]  ;;  %s3440_s6 = sld [smem:[%s4806_s0 + %s4263_s1]]  }
0x11ba   :  { %2659 = vadd.xlane.f32.xlu1 %v2658_v16  ;;  %v2655_v22 = vsel %vm1016_vm5, %v2653_v18, 0.0 }
0x11bb   :  { %2656 = vadd.xlane.f32.xlu0 %v2655_v22 }
0x11bc   :  { %v4190_v27 = vpop.eup %4189 }
0x11bd   :  { %v2786_v23 = vsel %vm4817_vm14, %v4190_v27, 0.0 }
0x11be   :  { %v2788_v28 = vsel %vm1016_vm5, %v2786_v23, 0.0 }
0x11bf   :  { %2789 = vadd.xlane.f32.xlu0 %v2788_v28 }
0x11c0   :  { %v4192_v30 = vpop.eup %4191 }
0x11c1   :  { %v2787_v31 = vsel %vm1013_vm11, %v4192_v30, 0.0 }
0x11c2   :  { %v2791_v32 = vsel %vm1020_vm12, %v2787_v31, 0.0 }
0x11c3   :  { %2792 = vadd.xlane.f32.xlu1 %v2791_v32 }
0x11d4   :  { %2458 = vrot.lane.b32.xlu1 %v2454_v1, %s4242_s3 }
0x11d5   :  { %2802 = vrot.lane.b32.xlu0 %v4678_v34, %s4234_s4  ;;  %s4255_s4 = smov 29  }
0x11d6   :  { %s3432_s30 = sld [smem:[%s4806_s0 + %s4255_s4]]   ;;  %s4262_s4 = smov 36  }
0x11d9   :  { %2460 = vrot.lane.b32.xlu0 %v2455_v15, %s4242_s3 }
0x11dc   :  { %v3502_v2 = vld [vmem:[%s3432_s30] ss:$0 sm:$0xff]  ;;  %s3439_s30 = sld [smem:[%s4806_s0 + %s4262_s4]]  }
0x1247   :  { %v2660_v38 = vpop.xlane.xlu1 %2659 }
0x1248   :  { %vm2662_vm11 = vcmp.gt.f32.partialorder %v2660_v38, 0.0  ;;  %v2657_v39 = vpop.xlane.xlu0 %2656 }
0x1249   :  { %v2664_v40 = vsel %vm2662_vm11, %v2660_v38, 1.0  ;;  %vm2661_vm12 = vcmp.gt.f32.partialorder %v2657_v39, 0.0 }
0x124a   :  { %4193 = vrcp.f32 %v2664_v40  ;;  %v2663_v41 = vsel %vm2661_vm12, %v2657_v39, 1.0 }
0x124b   :  { %4195 = vrcp.f32 %v2663_v41 }
0x124c   :  { %v2790_v7 = vpop.xlane.xlu0 %2789 }
0x124d   :  { %vm2794_vm10 = vcmp.gt.f32.partialorder %v2790_v7, 0.0 }
0x124e   :  { %v2796_v43 = vsel %vm2794_vm10, %v2790_v7, 1.0 }
0x124f   :  { %4197 = vrcp.f32 %v2796_v43 }
0x1250   :  { %v2793_v44 = vpop.xlane.xlu1 %2792  ;;  %v2803_v0 = vpop.permute.xlu0 %2802 }
0x1251   :  { %vm2795_vm0 = vcmp.gt.f32.partialorder %v2793_v44, 0.0  ;;  %3850 = vmatprep.subr.mxu1 %v2803_v0 }
0x1252   :  { %v2797_v34 = vsel %vm2795_vm0, %v2793_v44, 1.0 }
0x1253   :  { %4199 = vrcp.f32 %v2797_v34 }
0x1254   :  { %v4194_v46 = vpop.eup %4193  ;;  %v2461_v47 = vpop.permute.xlu0 %2460 }
0x1255   :  { %v2459_v48 = vpop.permute.xlu1 %2458  ;;  %v4196_v51 = vpop.eup %4195  ;;  %v4738_v53 = vsel %vm231_vm1, %v2315_v50, %v2461_v47  ;;  %v2668_v35 = vmul.f32 %v4194_v46, %v2654_v17 }
0x1256   :  { %v4741_v29 = vsel %vm231_vm1, %v2314_v45, %v2459_v48  ;;  %v2667_v60 = vmul.f32 %v4196_v51, %v2653_v18 }
0x1257   :  { %3863 = vmatprep.mubr.msk.f32.mxu0 %vm392_vm2, %v4741_v29 }
0x1258   :  { %3864 = vmatmul.mubr.msk.f32.vlgmr.msra.gmra.mrb[26].mxu0 %vm392_vm2, %v4738_v53  ;;  %3847 = vmatprep.mubr.msk.f32.mxu1 %vm1016_vm5, %v2667_v60 }
0x1259   :  { %v4198_v5 = vpop.eup %4197  ;;  %3848 = vmatmul.mubr.msk.f32.vlgmr.msra.gmra.mrb[22].mxu1 %vm1016_vm5, %v2668_v35 }
0x125a   :  { %3851 = vmatpush3.msra.mxu1 %v2803_v0  ;;  %v2800_v36 = vmul.f32 %v4198_v5, %v2786_v23 }
0x125b   :  { %4028 = vmatprep.subr.bf16.mxu1 %v4019_v56 }
0x125c   :  { %3852 = vmatprep.mubr.msk.f32.mxu1 %vm1016_vm5, %v2800_v36 }
0x125d   :  { %v4200_v54 = vpop.eup %4199 }
0x125e   :  { %v2801_v37 = vmul.f32 %v4200_v54, %v2787_v31 }
0x1260   :  { %3853 = vmatmul.mubr.msk.f32.vlgmr.msra.gmra.mrb[24].mxu1 %vm1016_vm5, %v2801_v37 }
0x1261   :  { %4030 = vmatpush3.bf16.msra.mxu1 %v4019_v56 }
0x1262   :  { %4032 = vmatprep.subr.bf16.mxu1 %v4023_v21 }
0x1265   :  { %4034 = vmatpush3.bf16.msra.mxu1 %v4023_v21 }
0x132b   :  { %v3865_v3 = vpop.f32.mrb[26].mxu0 }
0x132c   :  { %v2982_v55 = vadd.f32 %v3865_v3, %v3502_v2  ;;  %v2976_v59 = vpop.f32.mrb[27].mxu0  ;;  %v3849_v62 = vpop.f32.mrb[22].mxu1 }
0x132d   :  { %v2977_v61 = vadd.f32 %v3502_v2, %v2976_v59  ;;  %v2741_v49 = vpop.f32.mrb[23].mxu1  ;;  %v2751_v28 = vmax.f32 %v3849_v62, 0.0 }
0x132e   :  { %4201 = vtanh.f32 %v2982_v55  ;;  %v2750_v22 = vmax.f32 %v2741_v49, 0.0 }
0x132f   :  { %4203 = vtanh.f32 %v2977_v61 }
0x1333   :  { %v3854_v6 = vpop.f32.mrb[24].mxu1 }
0x1334   :  { %v2877_v42 = vpop.f32.mrb[25].mxu1  ;;  %v2887_v58 = vmax.f32 %v3854_v6, 0.0 }
0x1335   :  { %v2886_v52 = vmax.f32 %v2877_v42, 0.0 }
0x1337   :  { %2890 = vrot.lane.b32.xlu1 %v2886_v52, %s4242_s3 }
0x1338   :  { %v4202_v63 = vpop.eup %4201 }
0x1339   :  { %v4204_v25 = vpop.eup %4203  ;;  %v2988_v11 = vsel %vm1717_vm15, %v4202_v63, 0.0 }
0x133a   :  { %v2987_v9 = vsel %vm392_vm2, %v4204_v25, 0.0 }
0x133b   :  { %v2989_v57 = vadd.f32 %v2988_v11, %v2987_v9  ;;  %2892 = vrot.lane.b32.xlu1 %v2887_v58, %s4242_s3  ;;  %s4257_s3 = smov 31  }
0x133c   :  { %s3434_s9 = sld [smem:[%s4806_s0 + %s4257_s3]]  }
0x133d   :  { %v2990_v20 = vrot.slane %v2989_v57, 4 }
0x133f   :  { %v2991_v8 = vadd.f32 %v2990_v20, %v2989_v57 }
0x1341   :  { %v2992_v10 = vrot.slane %v2991_v8, 2 }
0x1342   :  { %v215_v54 = vld [vmem:[%s3434_s9] sm:$0xff]  ;;  %v216_v37 = vld [vmem:[%s3434_s9 + $0x8] sm:$0xff]  ;;  %v217_v59 = vld [vmem:[%s3434_s9 + $0x10] sm:$0xff] }
0x1343   :  { %v2993_v12 = vadd.f32 %v2992_v10, %v2991_v8  ;;  %v218_v61 = vld [vmem:[%s3434_s9 + $0x18] sm:$0xff] }
0x1344   :  { %v4039_v62 = vpack.c.bf16 %v218_v61, %v217_v59 }
0x1345   :  { %v2994_v13 = vrot.slane %v2993_v12, 1 }
0x1347   :  { %v2995_v26 = vadd.f32 %v2994_v13, %v2993_v12 }
0x1349   :  { %v2996_v17 = vmul.f32 0.083333336, %v2995_v26  ;;  %v223_v26 = vld [vmem:[%s3438_s22] sm:$0xff] }
0x134b   :  { %v2997_v16 = vmul.f32 %v2996_v17, %v214_v14 }
0x134d   :  { %v2998_v18 = vsel %vm1729_vm8, %v2997_v16, 0.0 }
0x134e   :  { %2999 = vadd.xlane.f32.xlu0 %v2998_v18 }
0x13a9   :  { %v2891_v27 = vpop.permute.xlu1 %2890 }
0x13aa   :  { %v4763_v23 = vsel %vm231_vm1, %v2750_v22, %v2891_v27  ;;  %v3513_v27 = vld [vmem:[%s3439_s30] ss:$0 sm:$0xff] }
0x13ab   :  { %3874 = vmatprep.mubr.msk.f32.mxu1 %vm392_vm2, %v4763_v23 }
0x13ad   :  { %v2893_v30 = vpop.permute.xlu1 %2892 }
0x13ae   :  { %v2897_v31 = vsel %vm231_vm1, %v2751_v28, %v2893_v30 }
0x13af   :  { %3875 = vmatmul.mubr.msk.f32.vlgmr.msra.gmra.mrb[26].mxu1 %vm392_vm2, %v2897_v31 }
0x13db   :  { %v3000_v50 = vpop.xlane.xlu0 %2999 }
0x1482   :  { %v3876_v32 = vpop.f32.mrb[26].mxu1 }
0x1483   :  { %v3079_v33 = vadd.f32 %v3876_v32, %v3502_v2  ;;  %v3073_v24 = vpop.f32.mrb[27].mxu1 }
0x1484   :  { %v3074_v56 = vadd.f32 %v3502_v2, %v3073_v24  ;;  %v4035_v2 = vpack.c.bf16 %v216_v37, %v215_v54 }
0x1485   :  { %4205 = vtanh.f32 %v3079_v33 }
0x1486   :  { %4207 = vtanh.f32 %v3074_v56  ;;  %4036 = vmatprep.subr.bf16.mxu0 %v4035_v2 }
0x1487   :  { %4038 = vmatpush3.bf16.msra.mxu0 %v4035_v2 }
0x1488   :  { %4040 = vmatprep.subr.bf16.mxu0 %v4039_v62 }
0x148b   :  { %4042 = vmatpush3.bf16.msra.mxu0 %v4039_v62 }
0x148f   :  { %v4206_v19 = vpop.eup %4205 }
0x1490   :  { %v4208_v4 = vpop.eup %4207  ;;  %v3085_v21 = vsel %vm1717_vm15, %v4206_v19, 0.0  ;;  %vm4820_vm15 = vmmov %vm4819_vm9 }
0x1491   :  { %v3084_v1 = vsel %vm392_vm2, %v4208_v4, 0.0 }
0x1492   :  { %v3086_v15 = vadd.f32 %v3085_v21, %v3084_v1 }
0x1494   :  { %v3087_v38 = vrot.slane %v3086_v15, 4 }
0x1496   :  { %v3088_v39 = vadd.f32 %v3087_v38, %v3086_v15 }
0x1498   :  { %v3089_v40 = vrot.slane %v3088_v39, 2 }
0x149a   :  { %v3090_v41 = vadd.f32 %v3089_v40, %v3088_v39 }
0x149c   :  { %v3091_v7 = vrot.slane %v3090_v41, 1 }
0x149e   :  { %v3092_v43 = vadd.f32 %v3091_v7, %v3090_v41 }
0x14a0   :  { %v3093_v44 = vmul.f32 0.083333336, %v3092_v43 }
0x14a2   :  { %v3094_v0 = vmul.f32 %v3093_v44, %v214_v14  ;;  %v3510_v14 = vld [vmem:[%s3437_s27] ss:$0 sm:$0xff] }
0x14a4   :  { %v3095_v34 = vsel %vm1729_vm8, %v3094_v0, 0.0 }
0x14a5   :  { %3096 = vadd.xlane.f32.xlu1 %v3095_v34 }
0x1532   :  { %v3097_v45 = vpop.xlane.xlu1 %3096 }
0x1533   :  { %v3098_v46 = vsel %vm4818_vm6, %v3000_v50, %v3097_v45 }
0x1534   :  { %v3099_v47 = vsel %vm4819_vm9, %v3098_v46, -inf }
0x1535   :  { %3100 = vmax.xlane.f32.xlu0 %v3099_v47 }
0x15c2   :  { %v3101_v48 = vpop.xlane.xlu0 %3100 }
0x15c3   :  { %v3102_v51 = vsub.f32 %v3098_v46, %v3101_v48 }
0x15c5   :  { %v3103_v60 = vmul.f32 1.442695, %v3102_v51 }
0x15c7   :  { %4209 = vpow2.f32 %v3103_v60 }
0x15d1   :  { %v4210_v35 = vpop.eup %4209 }
0x15d2   :  { %v3105_v5 = vsel %vm4820_vm15, %v4210_v35, 0.0 }
0x15d3   :  { %3106 = vadd.xlane.f32.xlu0 %v3105_v5 }
0x1660   :  { %v3107_v36 = vpop.xlane.xlu0 %3106 }
0x1661   :  { %4211 = vrcp.f32 %v3107_v36 }
0x166b   :  { %v4212_v3 = vpop.eup %4211 }
0x166c   :  { %v3109_v55 = vmul.f32 %v4212_v3, %v4210_v35 }
0x166e   :  { %3116 = vrot.lane.b32.xlu1 %v3109_v55, %s4247_s24  ;;  %4051 = vpush %v3109_v55  ;;  %s4258_s24 = smov 33  }
0x166f   :  { %s3436_s14 = sld [smem:[%s4806_s0 + %s4258_s24]]  }
0x1675   :  { %v220_v57 = vld [vmem:[%s3436_s14] sm:$0xff]  ;;  %v221_v20 = vld [vmem:[%s3436_s14 + $0x8] sm:$0xff] }
0x1676   :  { %v4043_v8 = vpack.c.bf16 %v221_v20, %v220_v57 }
0x1678   :  { %4044 = vmatprep.subr.bf16.mxu1 %v4043_v8 }
0x1679   :  { %4046 = vmatpush3.bf16.msra.mxu1 %v4043_v8 }
0x167a   :  { %3895 = vmatprep.subr.mxu1 %v223_v26 }
0x169f   :  { %s4052_s10 = spop %4051 }
0x16a0   :  { %v3112_v6 = vstv %s4052_s10 }
0x16a1   :  { %v3114_v52 = vmul.f32 %v3112_v6, %v4741_v29  ;;  %v3115_v63 = vmul.f32 %v3112_v6, %v4738_v53  ;;  %v3507_v53 = vld [vmem:[%s3435_s18] ss:$0 sm:$0xff] }
0x16e0   :  { %v3117_v49 = vpop.permute.xlu1 %3116 }
0x16e1   :  { %4053 = vpush %v3117_v49 }
0x1712   :  { %s4054_s11 = spop %4053 }
0x1713   :  { %v3119_v42 = vstv %s4054_s11 }
0x1714   :  { %v3121_v25 = vmul.f32 %v3119_v42, %v4763_v23  ;;  %v3122_v11 = vmul.f32 %v3119_v42, %v2897_v31 }
0x1716   :  { %v3123_v58 = vadd.f32 %v3121_v25, %v3114_v52  ;;  %v3124_v9 = vadd.f32 %v3122_v11, %v3115_v63 }
0x1718   :  { %3885 = vmatprep.mubr.msk.f32.mxu0 %vm392_vm2, %v3123_v58 }
0x1719   :  { %3886 = vmatmul.mubr.msk.f32.vlgmr.msra.gmra.mrb[28].mxu0 %vm392_vm2, %v3124_v9  ;;  %vm3398_vm2 = vcmask 31744  }
0x17ec   :  { %v3887_v29 = vpop.f32.mrb[28].mxu0 }
0x17ed   :  { %v3203_v10 = vpop.f32.mrb[29].mxu0  ;;  %v3209_v13 = vadd.f32 %v3887_v29, %v3507_v53 }
0x17ee   :  { %v3204_v12 = vadd.f32 %v3507_v53, %v3203_v10 }
0x17f0   :  { %3892 = vmatprep.mubr.msk.f32.mxu1 %vm231_vm1, %v3204_v12 }
0x17f1   :  { %3893 = vmatmul.mubr.msk.f32.vlgmr.msra.gmra.mrb[28].mxu1 %vm231_vm1, %v3209_v13  ;;  %vm3400_vm1 = vcmask 27648  }
0x17f2   :  { %3896 = vmatpush3.msra.mxu1 %v223_v26 }
0x18c4   :  { %v3894_v17 = vpop.f32.mrb[28].mxu1 }
0x18c5   :  { %v3290_v16 = vpop.f32.mrb[29].mxu1  ;;  %v3296_v22 = vadd.f32 %v3894_v17, %v3510_v14 }
0x18c6   :  { %v3291_v18 = vadd.f32 %v3510_v14, %v3290_v16 }
0x18c8   :  { %3897 = vmatprep.mubr.msk.f32.mxu1 %vm1016_vm5, %v3291_v18 }
0x18c9   :  { %3898 = vmatmul.mubr.msk.f32.vlgmr.msra.gmra.mrb[30].mxu1 %vm1016_vm5, %v3296_v22 }
0x199c   :  { %v3899_v23 = vpop.f32.mrb[30].mxu1 }
0x199d   :  { %v3383_v28 = vadd.f32 %v3899_v23, %v3513_v27  ;;  %v3377_v30 = vpop.f32.mrb[31].mxu1 }
0x199e   :  { %v3378_v31 = vadd.f32 %v3513_v27, %v3377_v30 }
0x199f   :  { %v3517_v32 = vmul.f32 -1.442695, %v3383_v28 }
0x19a0   :  { %v3516_v33 = vmul.f32 -1.442695, %v3378_v31 }
0x19a1   :  { %4213 = vpow2.f32 %v3517_v32 }
0x19a2   :  { %4215 = vpow2.f32 %v3516_v33 }
0x19ab   :  { %v4214_v24 = vpop.eup %4213 }
0x19ac   :  { %v4216_v56 = vpop.eup %4215  ;;  %v3393_v19 = vadd.f32 1.0, %v4214_v24 }
0x19ad   :  { %v3392_v4 = vadd.f32 1.0, %v4216_v56 }
0x19ae   :  { %4217 = vrcp.f32 %v3393_v19 }
0x19af   :  { %4219 = vrcp.f32 %v3392_v4 }
0x19b8   :  { %v4218_v21 = vpop.eup %4217 }
0x19b9   :  { %v4220_v1 = vpop.eup %4219  ;;  %3401 = vst.msk [vmem:[%s3440_s6 + $0x8] sm:$0xf] %vm3400_vm1, %v4218_v21 }
0x19ba   :  { %3399 = vst.msk [vmem:[%s3440_s6] sm:$0xff] %vm3398_vm2, %v4220_v1 }

</bundles_post_ra>
